<compile_context>
chip_gen: v5e
topology: v5e:2x2
jax: 0.10.0
libtpu: 0.0.40
codegen_flags: <defaults>
</compile_context>

<pallas_src>
import jax
import jax.numpy as jnp
from jax import lax
from jax.experimental import pallas as pl
from jax.experimental.pallas import tpu as pltpu

# ----------------------------- problem sizes (small, synthetic) -----------------------------
B = 2          # batch
J = 17         # num_joint
V = 48         # num_vertx (stand-in for the 431 down-sampled SMPL verts)
FEAT = 64      # joint_dim == vertx_dim == 64 (forced by img_feat.reshape(-1, 32, 64))
IMG_TOK = 32   # img feature tokens after reshape
C = J + V + IMG_TOK     # concat channel dim = num_vertx + num_joint + 32
UP1 = 96       # stand-in for 1732
UP2 = 160      # stand-in for 6890


# ----------------------------- fused Residual kernel -----------------------------
def residual_kernel(joint_ref, img_ref, onehot_ref, sel_ref,
                    wj_ref, bj_ref, wv_ref, bv_ref,
                    wv2j_j_ref, wv2j_v_ref, wv2j_i_ref, bv2j_ref,
                    wj2v_j_ref, wj2v_v_ref, wj2v_i_ref, bj2v_ref,
                    wjc_ref, bjc_ref, wvc_ref, bvc_ref,
                    wcol1_ref, bc1_ref, wcol2_ref, bc2_ref,
                    jout_ref, vout_ref):
    nb = joint_ref.shape[0]
    p_prev = sel_ref[0]          # (3,3): row l selects row l-1 (zero row at l=0)
    eye3 = sel_ref[1]            # (3,3) identity
    p_next = sel_ref[2]          # (3,3): row l selects row l+1 (zero row at l=2)
    onehot = onehot_ref[...]     # (V, J) one-hot vertex->joint map

    def t3(x):
        # (N, 3) -> (3, N) as I3 @ x^T (contract last dims of both operands); exact.
        return lax.dot_general(eye3, x, (((1,), (1,)), ((), ())),
                               preferred_element_type=jnp.float32)

    def conv1d_t(xt, wcol_ref, brow_ref):
        # xt: (3, Cin), rows = the 3 sequence positions (transposed NCL input).
        # im2col: single (3, 3*Cin) @ (3*Cin, Cout) matmul -> lane-dense (3, Cout).
        a_prev = jnp.dot(p_prev, xt, preferred_element_type=jnp.float32)   # x[l-1] rows
        a_next = jnp.dot(p_next, xt, preferred_element_type=jnp.float32)   # x[l+1] rows
        xcol = jnp.concatenate([a_prev, xt, a_next], axis=1)               # (3, 3*Cin)
        return (jnp.dot(xcol, wcol_ref[...], preferred_element_type=jnp.float32)
                + brow_ref[...])

    for b in range(nb):                        # tiny, static batch -> unrolled
        joint = joint_ref[b]                   # (J, 3)
        img = img_ref[b]                       # (32, 64)
        # joint -> vertex gather as a one-hot matmul
        vertx = jnp.dot(onehot, joint, preferred_element_type=jnp.float32)   # (V, 3)

        for blk in range(3):
            jf = (jnp.dot(joint, wj_ref[blk], preferred_element_type=jnp.float32)
                  + bj_ref[blk])               # (J, 64)
            vf = (jnp.dot(vertx, wv_ref[blk], preferred_element_type=jnp.float32)
                  + bv_ref[blk])               # (V, 64)
            # proj_j2v_dim on the virtual concat [jf; vf; img]; weights pre-split,
            # biases pre-broadcast -> no unaligned slices / XLU broadcasts in-kernel.
            vof = (jnp.dot(wj2v_j_ref[blk], jf, preferred_element_type=jnp.float32)
                   + jnp.dot(wj2v_v_ref[blk], vf, preferred_element_type=jnp.float32)
                   + jnp.dot(wj2v_i_ref[blk], img, preferred_element_type=jnp.float32)
                   + bj2v_ref[blk])            # (V, 64)
            if blk == 2:
                # joints1/joints2 are never consumed by the module; only block 3's
                # joint head is materialized.
                jof = (jnp.dot(wv2j_j_ref[blk], jf, preferred_element_type=jnp.float32)
                       + jnp.dot(wv2j_v_ref[blk], vf, preferred_element_type=jnp.float32)
                       + jnp.dot(wv2j_i_ref[blk], img, preferred_element_type=jnp.float32)
                       + bv2j_ref[blk])        # (J, 64)
                j3 = (jnp.dot(jof, wjc_ref[blk], preferred_element_type=jnp.float32)
                      + bjc_ref[blk] + joint)                               # (J, 3)
                jout_ref[b] = t3(j3)                                        # (3, J)
            vertx = (jnp.dot(vof, wvc_ref[blk], preferred_element_type=jnp.float32)
                     + bvc_ref[blk] + vertx)                                # (V, 3)

        xt = t3(vertx)                            # (3, V) lane-dense conv input
        y1 = conv1d_t(xt, wcol1_ref, bc1_ref)     # (3, UP1)
        vout_ref[b] = conv1d_t(y1, wcol2_ref, bc2_ref)   # (3, UP2) lane-dense store


# ----------------------------- wrapper -----------------------------
def _split_block(p):
    """Pre-split concat-weights and pre-broadcast per-row biases (all in plain JAX)."""
    wj, bj, wv, bv, wv2j, bv2j, wj2v, bj2v, wjc, bjc, wvc, bvc = p
    nj, nv, feat = wv2j.shape[0], wj2v.shape[0], wj.shape[1]
    return [wj, bj, wv, bv,
            wv2j[:, :nj], wv2j[:, nj:nj + nv], wv2j[:, nj + nv:],
            jnp.broadcast_to(bv2j, (nj, feat)),
            wj2v[:, :nj], wj2v[:, nj:nj + nv], wj2v[:, nj + nv:],
            jnp.broadcast_to(bj2v, (nv, feat)),
            wjc, bjc, wvc, bvc]


@jax.jit
def residual_forward(joint, img_feat, vj_relation, blocks, conv_params):
    b, nj, _ = joint.shape
    nv = vj_relation.shape[0]
    img = img_feat.reshape(b, IMG_TOK, FEAT)

    # One-hot vertex->joint gather matrix (V, J).
    onehot = (vj_relation[:, None] == jnp.arange(nj, dtype=vj_relation.dtype)[None, :]
              ).astype(jnp.float32)

    # Row-selection matrices for the in-kernel transposes / im2col shifts.
    sel = jnp.stack([
        jnp.array([[0., 0., 0.], [1., 0., 0.], [0., 1., 0.]], jnp.float32),  # select l-1
        jnp.eye(3, dtype=jnp.float32),                                       # identity
        jnp.array([[0., 1., 0.], [0., 0., 1.], [0., 0., 0.]], jnp.float32),  # select l+1
    ])

    # Stack the 3 blocks' (split) params -> 16 arrays with a leading dim of 3.
    stacked = [jnp.stack(xs) for xs in zip(*[_split_block(p) for p in blocks])]

    # Conv weights in im2col layout: Wcol[k*Cin + i, o] = w[k, o, i]; biases as rows.
    w1, b1, w2, b2 = conv_params
    up1, up2 = w1.shape[1], w2.shape[1]
    wcol1 = jnp.transpose(w1, (0, 2, 1)).reshape(3 * nv, up1)
    wcol2 = jnp.transpose(w2, (0, 2, 1)).reshape(3 * up1, up2)
    b1row = b1.reshape(1, up1)
    b2row = b2.reshape(1, up2)

    args = [joint, img, onehot, sel] + stacked + [wcol1, b1row, wcol2, b2row]

    def _full(shape):
        nd = len(shape)
        return pl.BlockSpec(shape, lambda i, _nd=nd: (0,) * _nd)

    jout_t, vout_t = pl.pallas_call(
        residual_kernel,
        out_shape=(jax.ShapeDtypeStruct((b, 3, nj), jnp.float32),
                   jax.ShapeDtypeStruct((b, 3, up2), jnp.float32)),
        grid=(1,),                                  # whole problem in one grid step
        in_specs=[_full(a.shape) for a in args],
        out_specs=[_full((b, 3, nj)), _full((b, 3, up2))],
        compiler_params=pltpu.CompilerParams(dimension_semantics=("arbitrary",)),
    )(*args)

    # lane-dense kernel outputs -> module (B, N, 3) layout
    return jnp.transpose(jout_t, (0, 2, 1)), jnp.transpose(vout_t, (0, 2, 1))


# ----------------------------- pure-JAX reference (for verification) -----------------------------
def coevo_ref(joint, vertx, img, params):
    wj, bj, wv, bv, wv2j, bv2j, wj2v, bj2v, wjc, bjc, wvc, bvc = params
    jf = joint @ wj + bj
    vf = vertx @ wv + bv
    concat = jnp.concatenate([jf, vf, img], axis=1)                     # (B, C, 64)
    jof = jnp.einsum('jc,bcd->bjd', wv2j, concat) + bv2j[None]
    vof = jnp.einsum('vc,bcd->bvd', wj2v, concat) + bj2v[None]
    return jof @ wjc + bjc + joint, vof @ wvc + bvc + vertx


def conv1d_ref(x, w, b):   # x (B, Cin, 3), w (3, Cout, Cin), b (Cout, 1)
    xp = jnp.pad(x, ((0, 0), (0, 0), (1, 1)))
    cols = []
    for l in range(3):
        col = sum(jnp.einsum('oi,bi->bo', w[k], xp[:, :, l + k]) for k in range(3))
        cols.append(col)
    return jnp.stack(cols, axis=-1) + b[None]


def residual_ref(joint, img_feat, vj_relation, blocks, conv_params):
    img = img_feat.reshape(-1, IMG_TOK, FEAT)
    vertxs = joint[:, vj_relation, :3]
    joints1, vertxs = coevo_ref(joint, vertxs, img, blocks[0])
    joints2, vertxs = coevo_ref(joint, vertxs, img, blocks[1])
    joints3, vertxs = coevo_ref(joint, vertxs, img, blocks[2])
    w1, b1, w2, b2 = conv_params
    return joints3, conv1d_ref(conv1d_ref(vertxs, w1, b1), w2, b2)


# ----------------------------- deterministic parameter init -----------------------------
def init_coevo_params(key):
    ks = jax.random.split(key, 12)
    s = 0.05
    return (
        jax.random.normal(ks[0], (3, FEAT)) * s,  jax.random.normal(ks[1], (1, FEAT)) * s,   # joint_proj
        jax.random.normal(ks[2], (3, FEAT)) * s,  jax.random.normal(ks[3], (1, FEAT)) * s,   # vertx_proj
        jax.random.normal(ks[4], (J, C)) * s,     jax.random.normal(ks[5], (J, 1)) * s,      # proj_v2j_dim
        jax.random.normal(ks[6], (V, C)) * s,     jax.random.normal(ks[7], (V, 1)) * s,      # proj_j2v_dim
        jax.random.normal(ks[8], (FEAT, 3)) * s,  jax.random.normal(ks[9], (1, 3)) * s,      # proj_joint_feat2coor
        jax.random.normal(ks[10], (FEAT, 3)) * s, jax.random.normal(ks[11], (1, 3)) * s,     # proj_vertx_feat2coor
    )


if __name__ == "__main__":
    key = jax.random.PRNGKey(0)
    k_in, k_img, k_rel, k_b1, k_b2, k_b3, k_c1, k_c2, k_c3, k_c4 = jax.random.split(key, 10)

    joint = jax.random.normal(k_in, (B, J, 3), dtype=jnp.float32)
    img_feat = jax.random.normal(k_img, (B, IMG_TOK * FEAT), dtype=jnp.float32)

    # Synthetic vertex -> joint index map (stands in for build_verts_joints_relation).
    vj_relation = jax.random.randint(k_rel, (V,), 0, J)

    blocks = (init_coevo_params(k_b1), init_coevo_params(k_b2), init_coevo_params(k_b3))
    conv_params = (
        jax.random.normal(k_c1, (3, UP1, V)) * 0.05,   # upsample_conv1 weight (tap-major)
        jax.random.normal(k_c2, (UP1, 1)) * 0.05,      # upsample_conv1 bias
        jax.random.normal(k_c3, (3, UP2, UP1)) * 0.05, # upsample_conv2 weight
        jax.random.normal(k_c4, (UP2, 1)) * 0.05,      # upsample_conv2 bias
    )

    joints_out, verts_out = residual_forward(joint, img_feat, vj_relation, blocks, conv_params)
    joints_out = jax.block_until_ready(joints_out)
    verts_out = jax.block_until_ready(verts_out)

    joints_ref, verts_ref = residual_ref(joint, img_feat, vj_relation, blocks, conv_params)

    assert joints_out.shape == (B, J, 3)
    assert verts_out.shape == (B, UP2, 3)
    assert jnp.allclose(joints_out, joints_ref, rtol=1e-4, atol=1e-4)
    assert jnp.allclose(verts_out, verts_ref, rtol=1e-4, atol=1e-4)

    print("KERNEL_OK")
</pallas_src>

<mosaic_0001>
module attributes {stable_mosaic.version = 11 : i64} {
  func.func @residual_kernel(%arg0: i32, %arg1: memref<2x17x3xf32, #tpu.memory_space<vmem>>, %arg2: memref<2x32x64xf32, #tpu.memory_space<vmem>>, %arg3: memref<48x17xf32, #tpu.memory_space<vmem>>, %arg4: memref<3x3x3xf32, #tpu.memory_space<vmem>>, %arg5: memref<3x3x64xf32, #tpu.memory_space<vmem>>, %arg6: memref<3x1x64xf32, #tpu.memory_space<vmem>>, %arg7: memref<3x3x64xf32, #tpu.memory_space<vmem>>, %arg8: memref<3x1x64xf32, #tpu.memory_space<vmem>>, %arg9: memref<3x17x17xf32, #tpu.memory_space<vmem>>, %arg10: memref<3x17x48xf32, #tpu.memory_space<vmem>>, %arg11: memref<3x17x32xf32, #tpu.memory_space<vmem>>, %arg12: memref<3x17x64xf32, #tpu.memory_space<vmem>>, %arg13: memref<3x48x17xf32, #tpu.memory_space<vmem>>, %arg14: memref<3x48x48xf32, #tpu.memory_space<vmem>>, %arg15: memref<3x48x32xf32, #tpu.memory_space<vmem>>, %arg16: memref<3x48x64xf32, #tpu.memory_space<vmem>>, %arg17: memref<3x64x3xf32, #tpu.memory_space<vmem>>, %arg18: memref<3x1x3xf32, #tpu.memory_space<vmem>>, %arg19: memref<3x64x3xf32, #tpu.memory_space<vmem>>, %arg20: memref<3x1x3xf32, #tpu.memory_space<vmem>>, %arg21: memref<144x96xf32, #tpu.memory_space<vmem>>, %arg22: memref<1x96xf32, #tpu.memory_space<vmem>>, %arg23: memref<288x160xf32, #tpu.memory_space<vmem>>, %arg24: memref<1x160xf32, #tpu.memory_space<vmem>>, %arg25: memref<2x3x17xf32, #tpu.memory_space<vmem>>, %arg26: memref<2x3x160xf32, #tpu.memory_space<vmem>>) attributes {dimension_semantics = [#tpu.dimension_semantics<arbitrary>], iteration_bounds = array<i64: 1>, scalar_prefetch = 0 : i64, scratch_operands = 0 : i64, tpu.core_type = #tpu.core_type<tc>, window_params = [{pipeline_mode = #tpu.pipeline_mode<synchronous>, transform_indices = @transform_0, window_bounds = array<i64: 2, 17, 3>}, {pipeline_mode = #tpu.pipeline_mode<synchronous>, transform_indices = @transform_1, window_bounds = array<i64: 2, 32, 64>}, {pipeline_mode = #tpu.pipeline_mode<synchronous>, transform_indices = @transform_2, window_bounds = array<i64: 48, 17>}, {pipeline_mode = #tpu.pipeline_mode<synchronous>, transform_indices = @transform_3, window_bounds = array<i64: 3, 3, 3>}, {pipeline_mode = #tpu.pipeline_mode<synchronous>, transform_indices = @transform_4, window_bounds = array<i64: 3, 3, 64>}, {pipeline_mode = #tpu.pipeline_mode<synchronous>, transform_indices = @transform_5, window_bounds = array<i64: 3, 1, 64>}, {pipeline_mode = #tpu.pipeline_mode<synchronous>, transform_indices = @transform_6, window_bounds = array<i64: 3, 3, 64>}, {pipeline_mode = #tpu.pipeline_mode<synchronous>, transform_indices = @transform_7, window_bounds = array<i64: 3, 1, 64>}, {pipeline_mode = #tpu.pipeline_mode<synchronous>, transform_indices = @transform_8, window_bounds = array<i64: 3, 17, 17>}, {pipeline_mode = #tpu.pipeline_mode<synchronous>, transform_indices = @transform_9, window_bounds = array<i64: 3, 17, 48>}, {pipeline_mode = #tpu.pipeline_mode<synchronous>, transform_indices = @transform_10, window_bounds = array<i64: 3, 17, 32>}, {pipeline_mode = #tpu.pipeline_mode<synchronous>, transform_indices = @transform_11, window_bounds = array<i64: 3, 17, 64>}, {pipeline_mode = #tpu.pipeline_mode<synchronous>, transform_indices = @transform_12, window_bounds = array<i64: 3, 48, 17>}, {pipeline_mode = #tpu.pipeline_mode<synchronous>, transform_indices = @transform_13, window_bounds = array<i64: 3, 48, 48>}, {pipeline_mode = #tpu.pipeline_mode<synchronous>, transform_indices = @transform_14, window_bounds = array<i64: 3, 48, 32>}, {pipeline_mode = #tpu.pipeline_mode<synchronous>, transform_indices = @transform_15, window_bounds = array<i64: 3, 48, 64>}, {pipeline_mode = #tpu.pipeline_mode<synchronous>, transform_indices = @transform_16, window_bounds = array<i64: 3, 64, 3>}, {pipeline_mode = #tpu.pipeline_mode<synchronous>, transform_indices = @transform_17, window_bounds = array<i64: 3, 1, 3>}, {pipeline_mode = #tpu.pipeline_mode<synchronous>, transform_indices = @transform_18, window_bounds = array<i64: 3, 64, 3>}, {pipeline_mode = #tpu.pipeline_mode<synchronous>, transform_indices = @transform_19, window_bounds = array<i64: 3, 1, 3>}, {pipeline_mode = #tpu.pipeline_mode<synchronous>, transform_indices = @transform_20, window_bounds = array<i64: 144, 96>}, {pipeline_mode = #tpu.pipeline_mode<synchronous>, transform_indices = @transform_21, window_bounds = array<i64: 1, 96>}, {pipeline_mode = #tpu.pipeline_mode<synchronous>, transform_indices = @transform_22, window_bounds = array<i64: 288, 160>}, {pipeline_mode = #tpu.pipeline_mode<synchronous>, transform_indices = @transform_23, window_bounds = array<i64: 1, 160>}, {pipeline_mode = #tpu.pipeline_mode<synchronous>, transform_indices = @transform_24, window_bounds = array<i64: 2, 3, 17>}, {pipeline_mode = #tpu.pipeline_mode<synchronous>, transform_indices = @transform_25, window_bounds = array<i64: 2, 3, 160>}]} {
    %c0 = arith.constant 0 : index
    %c0_0 = arith.constant 0 : index
    %c0_1 = arith.constant 0 : index
    %0 = vector.load %arg4[%c0, %c0_0, %c0_1] : memref<3x3x3xf32, #tpu.memory_space<vmem>>, vector<1x3x3xf32>
    %1 = vector.shape_cast %0 : vector<1x3x3xf32> to vector<3x3xf32>
    %c1 = arith.constant 1 : index
    %c0_2 = arith.constant 0 : index
    %c0_3 = arith.constant 0 : index
    %2 = vector.load %arg4[%c1, %c0_2, %c0_3] : memref<3x3x3xf32, #tpu.memory_space<vmem>>, vector<1x3x3xf32>
    %3 = vector.shape_cast %2 : vector<1x3x3xf32> to vector<3x3xf32>
    %c2 = arith.constant 2 : index
    %c0_4 = arith.constant 0 : index
    %c0_5 = arith.constant 0 : index
    %4 = vector.load %arg4[%c2, %c0_4, %c0_5] : memref<3x3x3xf32, #tpu.memory_space<vmem>>, vector<1x3x3xf32>
    %5 = vector.shape_cast %4 : vector<1x3x3xf32> to vector<3x3xf32>
    %c0_6 = arith.constant 0 : index
    %c0_7 = arith.constant 0 : index
    %6 = vector.load %arg3[%c0_6, %c0_7] : memref<48x17xf32, #tpu.memory_space<vmem>>, vector<48x17xf32>
    %c0_8 = arith.constant 0 : index
    %c0_9 = arith.constant 0 : index
    %c0_10 = arith.constant 0 : index
    %7 = vector.load %arg1[%c0_8, %c0_9, %c0_10] : memref<2x17x3xf32, #tpu.memory_space<vmem>>, vector<1x17x3xf32>
    %8 = vector.shape_cast %7 : vector<1x17x3xf32> to vector<17x3xf32>
    %c0_11 = arith.constant 0 : index
    %c0_12 = arith.constant 0 : index
    %c0_13 = arith.constant 0 : index
    %9 = vector.load %arg2[%c0_11, %c0_12, %c0_13] : memref<2x32x64xf32, #tpu.memory_space<vmem>>, vector<1x32x64xf32>
    %10 = vector.shape_cast %9 : vector<1x32x64xf32> to vector<32x64xf32>
    %cst = arith.constant dense<0.000000e+00> : vector<48x3xf32>
    %11 = tpu.matmul %6, %8, %cst {dimension_numbers = #tpu.dot_dimension_numbers<[1], [0], [0], [1], [0, 0, 1, 1], [], []>} : vector<48x17xf32>, vector<17x3xf32>, vector<48x3xf32> -> vector<48x3xf32>
    %c0_14 = arith.constant 0 : index
    %c0_15 = arith.constant 0 : index
    %c0_16 = arith.constant 0 : index
    %12 = vector.load %arg5[%c0_14, %c0_15, %c0_16] : memref<3x3x64xf32, #tpu.memory_space<vmem>>, vector<1x3x64xf32>
    %13 = vector.shape_cast %12 : vector<1x3x64xf32> to vector<3x64xf32>
    %cst_17 = arith.constant dense<0.000000e+00> : vector<17x64xf32>
    %14 = tpu.matmul %8, %13, %cst_17 {dimension_numbers = #tpu.dot_dimension_numbers<[1], [0], [0], [1], [0, 0, 1, 1], [], []>} : vector<17x3xf32>, vector<3x64xf32>, vector<17x64xf32> -> vector<17x64xf32>
    %c0_18 = arith.constant 0 : index
    %c0_19 = arith.constant 0 : index
    %c0_20 = arith.constant 0 : index
    %15 = vector.load %arg6[%c0_18, %c0_19, %c0_20] : memref<3x1x64xf32, #tpu.memory_space<vmem>>, vector<1x1x64xf32>
    %16 = vector.shape_cast %15 : vector<1x1x64xf32> to vector<1x64xf32>
    %17 = vector.broadcast %16 : vector<1x64xf32> to vector<17x64xf32>
    %18 = arith.addf %14, %17 : vector<17x64xf32>
    %c0_21 = arith.constant 0 : index
    %c0_22 = arith.constant 0 : index
    %c0_23 = arith.constant 0 : index
    %19 = vector.load %arg7[%c0_21, %c0_22, %c0_23] : memref<3x3x64xf32, #tpu.memory_space<vmem>>, vector<1x3x64xf32>
    %20 = vector.shape_cast %19 : vector<1x3x64xf32> to vector<3x64xf32>
    %cst_24 = arith.constant dense<0.000000e+00> : vector<48x64xf32>
    %21 = tpu.matmul %11, %20, %cst_24 {dimension_numbers = #tpu.dot_dimension_numbers<[1], [0], [0], [1], [0, 0, 1, 1], [], []>} : vector<48x3xf32>, vector<3x64xf32>, vector<48x64xf32> -> vector<48x64xf32>
    %c0_25 = arith.constant 0 : index
    %c0_26 = arith.constant 0 : index
    %c0_27 = arith.constant 0 : index
    %22 = vector.load %arg8[%c0_25, %c0_26, %c0_27] : memref<3x1x64xf32, #tpu.memory_space<vmem>>, vector<1x1x64xf32>
    %23 = vector.shape_cast %22 : vector<1x1x64xf32> to vector<1x64xf32>
    %24 = vector.broadcast %23 : vector<1x64xf32> to vector<48x64xf32>
    %25 = arith.addf %21, %24 : vector<48x64xf32>
    %c0_28 = arith.constant 0 : index
    %c0_29 = arith.constant 0 : index
    %c0_30 = arith.constant 0 : index
    %26 = vector.load %arg13[%c0_28, %c0_29, %c0_30] : memref<3x48x17xf32, #tpu.memory_space<vmem>>, vector<1x48x17xf32>
    %27 = vector.shape_cast %26 : vector<1x48x17xf32> to vector<48x17xf32>
    %cst_31 = arith.constant dense<0.000000e+00> : vector<48x64xf32>
    %28 = tpu.matmul %27, %18, %cst_31 {dimension_numbers = #tpu.dot_dimension_numbers<[1], [0], [0], [1], [0, 0, 1, 1], [], []>} : vector<48x17xf32>, vector<17x64xf32>, vector<48x64xf32> -> vector<48x64xf32>
    %c0_32 = arith.constant 0 : index
    %c0_33 = arith.constant 0 : index
    %c0_34 = arith.constant 0 : index
    %29 = vector.load %arg14[%c0_32, %c0_33, %c0_34] : memref<3x48x48xf32, #tpu.memory_space<vmem>>, vector<1x48x48xf32>
    %30 = vector.shape_cast %29 : vector<1x48x48xf32> to vector<48x48xf32>
    %cst_35 = arith.constant dense<0.000000e+00> : vector<48x64xf32>
    %31 = tpu.matmul %30, %25, %cst_35 {dimension_numbers = #tpu.dot_dimension_numbers<[1], [0], [0], [1], [0, 0, 1, 1], [], []>} : vector<48x48xf32>, vector<48x64xf32>, vector<48x64xf32> -> vector<48x64xf32>
    %32 = arith.addf %28, %31 : vector<48x64xf32>
    %c0_36 = arith.constant 0 : index
    %c0_37 = arith.constant 0 : index
    %c0_38 = arith.constant 0 : index
    %33 = vector.load %arg15[%c0_36, %c0_37, %c0_38] : memref<3x48x32xf32, #tpu.memory_space<vmem>>, vector<1x48x32xf32>
    %34 = vector.shape_cast %33 : vector<1x48x32xf32> to vector<48x32xf32>
    %cst_39 = arith.constant dense<0.000000e+00> : vector<48x64xf32>
    %35 = tpu.matmul %34, %10, %cst_39 {dimension_numbers = #tpu.dot_dimension_numbers<[1], [0], [0], [1], [0, 0, 1, 1], [], []>} : vector<48x32xf32>, vector<32x64xf32>, vector<48x64xf32> -> vector<48x64xf32>
    %36 = arith.addf %32, %35 : vector<48x64xf32>
    %c0_40 = arith.constant 0 : index
    %c0_41 = arith.constant 0 : index
    %c0_42 = arith.constant 0 : index
    %37 = vector.load %arg16[%c0_40, %c0_41, %c0_42] : memref<3x48x64xf32, #tpu.memory_space<vmem>>, vector<1x48x64xf32>
    %38 = vector.shape_cast %37 : vector<1x48x64xf32> to vector<48x64xf32>
    %39 = arith.addf %36, %38 : vector<48x64xf32>
    %c0_43 = arith.constant 0 : index
    %c0_44 = arith.constant 0 : index
    %c0_45 = arith.constant 0 : index
    %40 = vector.load %arg19[%c0_43, %c0_44, %c0_45] : memref<3x64x3xf32, #tpu.memory_space<vmem>>, vector<1x64x3xf32>
    %41 = vector.shape_cast %40 : vector<1x64x3xf32> to vector<64x3xf32>
    %cst_46 = arith.constant dense<0.000000e+00> : vector<48x3xf32>
    %42 = tpu.matmul %39, %41, %cst_46 {dimension_numbers = #tpu.dot_dimension_numbers<[1], [0], [0], [1], [0, 0, 1, 1], [], []>} : vector<48x64xf32>, vector<64x3xf32>, vector<48x3xf32> -> vector<48x3xf32>
    %c0_47 = arith.constant 0 : index
    %c0_48 = arith.constant 0 : index
    %c0_49 = arith.constant 0 : index
    %43 = vector.load %arg20[%c0_47, %c0_48, %c0_49] : memref<3x1x3xf32, #tpu.memory_space<vmem>>, vector<1x1x3xf32>
    %44 = vector.shape_cast %43 : vector<1x1x3xf32> to vector<1x3xf32>
    %45 = vector.broadcast %44 : vector<1x3xf32> to vector<48x3xf32>
    %46 = arith.addf %42, %45 : vector<48x3xf32>
    %47 = arith.addf %46, %11 : vector<48x3xf32>
    %c1_50 = arith.constant 1 : index
    %c0_51 = arith.constant 0 : index
    %c0_52 = arith.constant 0 : index
    %48 = vector.load %arg5[%c1_50, %c0_51, %c0_52] : memref<3x3x64xf32, #tpu.memory_space<vmem>>, vector<1x3x64xf32>
    %49 = vector.shape_cast %48 : vector<1x3x64xf32> to vector<3x64xf32>
    %cst_53 = arith.constant dense<0.000000e+00> : vector<17x64xf32>
    %50 = tpu.matmul %8, %49, %cst_53 {dimension_numbers = #tpu.dot_dimension_numbers<[1], [0], [0], [1], [0, 0, 1, 1], [], []>} : vector<17x3xf32>, vector<3x64xf32>, vector<17x64xf32> -> vector<17x64xf32>
    %c1_54 = arith.constant 1 : index
    %c0_55 = arith.constant 0 : index
    %c0_56 = arith.constant 0 : index
    %51 = vector.load %arg6[%c1_54, %c0_55, %c0_56] : memref<3x1x64xf32, #tpu.memory_space<vmem>>, vector<1x1x64xf32>
    %52 = vector.shape_cast %51 : vector<1x1x64xf32> to vector<1x64xf32>
    %53 = vector.broadcast %52 : vector<1x64xf32> to vector<17x64xf32>
    %54 = arith.addf %50, %53 : vector<17x64xf32>
    %c1_57 = arith.constant 1 : index
    %c0_58 = arith.constant 0 : index
    %c0_59 = arith.constant 0 : index
    %55 = vector.load %arg7[%c1_57, %c0_58, %c0_59] : memref<3x3x64xf32, #tpu.memory_space<vmem>>, vector<1x3x64xf32>
    %56 = vector.shape_cast %55 : vector<1x3x64xf32> to vector<3x64xf32>
    %cst_60 = arith.constant dense<0.000000e+00> : vector<48x64xf32>
    %57 = tpu.matmul %47, %56, %cst_60 {dimension_numbers = #tpu.dot_dimension_numbers<[1], [0], [0], [1], [0, 0, 1, 1], [], []>} : vector<48x3xf32>, vector<3x64xf32>, vector<48x64xf32> -> vector<48x64xf32>
    %c1_61 = arith.constant 1 : index
    %c0_62 = arith.constant 0 : index
    %c0_63 = arith.constant 0 : index
    %58 = vector.load %arg8[%c1_61, %c0_62, %c0_63] : memref<3x1x64xf32, #tpu.memory_space<vmem>>, vector<1x1x64xf32>
    %59 = vector.shape_cast %58 : vector<1x1x64xf32> to vector<1x64xf32>
    %60 = vector.broadcast %59 : vector<1x64xf32> to vector<48x64xf32>
    %61 = arith.addf %57, %60 : vector<48x64xf32>
    %c1_64 = arith.constant 1 : index
    %c0_65 = arith.constant 0 : index
    %c0_66 = arith.constant 0 : index
    %62 = vector.load %arg13[%c1_64, %c0_65, %c0_66] : memref<3x48x17xf32, #tpu.memory_space<vmem>>, vector<1x48x17xf32>
    %63 = vector.shape_cast %62 : vector<1x48x17xf32> to vector<48x17xf32>
    %cst_67 = arith.constant dense<0.000000e+00> : vector<48x64xf32>
    %64 = tpu.matmul %63, %54, %cst_67 {dimension_numbers = #tpu.dot_dimension_numbers<[1], [0], [0], [1], [0, 0, 1, 1], [], []>} : vector<48x17xf32>, vector<17x64xf32>, vector<48x64xf32> -> vector<48x64xf32>
    %c1_68 = arith.constant 1 : index
    %c0_69 = arith.constant 0 : index
    %c0_70 = arith.constant 0 : index
    %65 = vector.load %arg14[%c1_68, %c0_69, %c0_70] : memref<3x48x48xf32, #tpu.memory_space<vmem>>, vector<1x48x48xf32>
    %66 = vector.shape_cast %65 : vector<1x48x48xf32> to vector<48x48xf32>
    %cst_71 = arith.constant dense<0.000000e+00> : vector<48x64xf32>
    %67 = tpu.matmul %66, %61, %cst_71 {dimension_numbers = #tpu.dot_dimension_numbers<[1], [0], [0], [1], [0, 0, 1, 1], [], []>} : vector<48x48xf32>, vector<48x64xf32>, vector<48x64xf32> -> vector<48x64xf32>
    %68 = arith.addf %64, %67 : vector<48x64xf32>
    %c1_72 = arith.constant 1 : index
    %c0_73 = arith.constant 0 : index
    %c0_74 = arith.constant 0 : index
    %69 = vector.load %arg15[%c1_72, %c0_73, %c0_74] : memref<3x48x32xf32, #tpu.memory_space<vmem>>, vector<1x48x32xf32>
    %70 = vector.shape_cast %69 : vector<1x48x32xf32> to vector<48x32xf32>
    %cst_75 = arith.constant dense<0.000000e+00> : vector<48x64xf32>
    %71 = tpu.matmul %70, %10, %cst_75 {dimension_numbers = #tpu.dot_dimension_numbers<[1], [0], [0], [1], [0, 0, 1, 1], [], []>} : vector<48x32xf32>, vector<32x64xf32>, vector<48x64xf32> -> vector<48x64xf32>
    %72 = arith.addf %68, %71 : vector<48x64xf32>
    %c1_76 = arith.constant 1 : index
    %c0_77 = arith.constant 0 : index
    %c0_78 = arith.constant 0 : index
    %73 = vector.load %arg16[%c1_76, %c0_77, %c0_78] : memref<3x48x64xf32, #tpu.memory_space<vmem>>, vector<1x48x64xf32>
    %74 = vector.shape_cast %73 : vector<1x48x64xf32> to vector<48x64xf32>
    %75 = arith.addf %72, %74 : vector<48x64xf32>
    %c1_79 = arith.constant 1 : index
    %c0_80 = arith.constant 0 : index
    %c0_81 = arith.constant 0 : index
    %76 = vector.load %arg19[%c1_79, %c0_80, %c0_81] : memref<3x64x3xf32, #tpu.memory_space<vmem>>, vector<1x64x3xf32>
    %77 = vector.shape_cast %76 : vector<1x64x3xf32> to vector<64x3xf32>
    %cst_82 = arith.constant dense<0.000000e+00> : vector<48x3xf32>
    %78 = tpu.matmul %75, %77, %cst_82 {dimension_numbers = #tpu.dot_dimension_numbers<[1], [0], [0], [1], [0, 0, 1, 1], [], []>} : vector<48x64xf32>, vector<64x3xf32>, vector<48x3xf32> -> vector<48x3xf32>
    %c1_83 = arith.constant 1 : index
    %c0_84 = arith.constant 0 : index
    %c0_85 = arith.constant 0 : index
    %79 = vector.load %arg20[%c1_83, %c0_84, %c0_85] : memref<3x1x3xf32, #tpu.memory_space<vmem>>, vector<1x1x3xf32>
    %80 = vector.shape_cast %79 : vector<1x1x3xf32> to vector<1x3xf32>
    %81 = vector.broadcast %80 : vector<1x3xf32> to vector<48x3xf32>
    %82 = arith.addf %78, %81 : vector<48x3xf32>
    %83 = arith.addf %82, %47 : vector<48x3xf32>
    %c2_86 = arith.constant 2 : index
    %c0_87 = arith.constant 0 : index
    %c0_88 = arith.constant 0 : index
    %84 = vector.load %arg5[%c2_86, %c0_87, %c0_88] : memref<3x3x64xf32, #tpu.memory_space<vmem>>, vector<1x3x64xf32>
    %85 = vector.shape_cast %84 : vector<1x3x64xf32> to vector<3x64xf32>
    %cst_89 = arith.constant dense<0.000000e+00> : vector<17x64xf32>
    %86 = tpu.matmul %8, %85, %cst_89 {dimension_numbers = #tpu.dot_dimension_numbers<[1], [0], [0], [1], [0, 0, 1, 1], [], []>} : vector<17x3xf32>, vector<3x64xf32>, vector<17x64xf32> -> vector<17x64xf32>
    %c2_90 = arith.constant 2 : index
    %c0_91 = arith.constant 0 : index
    %c0_92 = arith.constant 0 : index
    %87 = vector.load %arg6[%c2_90, %c0_91, %c0_92] : memref<3x1x64xf32, #tpu.memory_space<vmem>>, vector<1x1x64xf32>
    %88 = vector.shape_cast %87 : vector<1x1x64xf32> to vector<1x64xf32>
    %89 = vector.broadcast %88 : vector<1x64xf32> to vector<17x64xf32>
    %90 = arith.addf %86, %89 : vector<17x64xf32>
    %c2_93 = arith.constant 2 : index
    %c0_94 = arith.constant 0 : index
    %c0_95 = arith.constant 0 : index
    %91 = vector.load %arg7[%c2_93, %c0_94, %c0_95] : memref<3x3x64xf32, #tpu.memory_space<vmem>>, vector<1x3x64xf32>
    %92 = vector.shape_cast %91 : vector<1x3x64xf32> to vector<3x64xf32>
    %cst_96 = arith.constant dense<0.000000e+00> : vector<48x64xf32>
    %93 = tpu.matmul %83, %92, %cst_96 {dimension_numbers = #tpu.dot_dimension_numbers<[1], [0], [0], [1], [0, 0, 1, 1], [], []>} : vector<48x3xf32>, vector<3x64xf32>, vector<48x64xf32> -> vector<48x64xf32>
    %c2_97 = arith.constant 2 : index
    %c0_98 = arith.constant 0 : index
    %c0_99 = arith.constant 0 : index
    %94 = vector.load %arg8[%c2_97, %c0_98, %c0_99] : memref<3x1x64xf32, #tpu.memory_space<vmem>>, vector<1x1x64xf32>
    %95 = vector.shape_cast %94 : vector<1x1x64xf32> to vector<1x64xf32>
    %96 = vector.broadcast %95 : vector<1x64xf32> to vector<48x64xf32>
    %97 = arith.addf %93, %96 : vector<48x64xf32>
    %c2_100 = arith.constant 2 : index
    %c0_101 = arith.constant 0 : index
    %c0_102 = arith.constant 0 : index
    %98 = vector.load %arg13[%c2_100, %c0_101, %c0_102] : memref<3x48x17xf32, #tpu.memory_space<vmem>>, vector<1x48x17xf32>
    %99 = vector.shape_cast %98 : vector<1x48x17xf32> to vector<48x17xf32>
    %cst_103 = arith.constant dense<0.000000e+00> : vector<48x64xf32>
    %100 = tpu.matmul %99, %90, %cst_103 {dimension_numbers = #tpu.dot_dimension_numbers<[1], [0], [0], [1], [0, 0, 1, 1], [], []>} : vector<48x17xf32>, vector<17x64xf32>, vector<48x64xf32> -> vector<48x64xf32>
    %c2_104 = arith.constant 2 : index
    %c0_105 = arith.constant 0 : index
    %c0_106 = arith.constant 0 : index
    %101 = vector.load %arg14[%c2_104, %c0_105, %c0_106] : memref<3x48x48xf32, #tpu.memory_space<vmem>>, vector<1x48x48xf32>
    %102 = vector.shape_cast %101 : vector<1x48x48xf32> to vector<48x48xf32>
    %cst_107 = arith.constant dense<0.000000e+00> : vector<48x64xf32>
    %103 = tpu.matmul %102, %97, %cst_107 {dimension_numbers = #tpu.dot_dimension_numbers<[1], [0], [0], [1], [0, 0, 1, 1], [], []>} : vector<48x48xf32>, vector<48x64xf32>, vector<48x64xf32> -> vector<48x64xf32>
    %104 = arith.addf %100, %103 : vector<48x64xf32>
    %c2_108 = arith.constant 2 : index
    %c0_109 = arith.constant 0 : index
    %c0_110 = arith.constant 0 : index
    %105 = vector.load %arg15[%c2_108, %c0_109, %c0_110] : memref<3x48x32xf32, #tpu.memory_space<vmem>>, vector<1x48x32xf32>
    %106 = vector.shape_cast %105 : vector<1x48x32xf32> to vector<48x32xf32>
    %cst_111 = arith.constant dense<0.000000e+00> : vector<48x64xf32>
    %107 = tpu.matmul %106, %10, %cst_111 {dimension_numbers = #tpu.dot_dimension_numbers<[1], [0], [0], [1], [0, 0, 1, 1], [], []>} : vector<48x32xf32>, vector<32x64xf32>, vector<48x64xf32> -> vector<48x64xf32>
    %108 = arith.addf %104, %107 : vector<48x64xf32>
    %c2_112 = arith.constant 2 : index
    %c0_113 = arith.constant 0 : index
    %c0_114 = arith.constant 0 : index
    %109 = vector.load %arg16[%c2_112, %c0_113, %c0_114] : memref<3x48x64xf32, #tpu.memory_space<vmem>>, vector<1x48x64xf32>
    %110 = vector.shape_cast %109 : vector<1x48x64xf32> to vector<48x64xf32>
    %111 = arith.addf %108, %110 : vector<48x64xf32>
    %c2_115 = arith.constant 2 : index
    %c0_116 = arith.constant 0 : index
    %c0_117 = arith.constant 0 : index
    %112 = vector.load %arg9[%c2_115, %c0_116, %c0_117] : memref<3x17x17xf32, #tpu.memory_space<vmem>>, vector<1x17x17xf32>
    %113 = vector.shape_cast %112 : vector<1x17x17xf32> to vector<17x17xf32>
    %cst_118 = arith.constant dense<0.000000e+00> : vector<17x64xf32>
    %114 = tpu.matmul %113, %90, %cst_118 {dimension_numbers = #tpu.dot_dimension_numbers<[1], [0], [0], [1], [0, 0, 1, 1], [], []>} : vector<17x17xf32>, vector<17x64xf32>, vector<17x64xf32> -> vector<17x64xf32>
    %c2_119 = arith.constant 2 : index
    %c0_120 = arith.constant 0 : index
    %c0_121 = arith.constant 0 : index
    %115 = vector.load %arg10[%c2_119, %c0_120, %c0_121] : memref<3x17x48xf32, #tpu.memory_space<vmem>>, vector<1x17x48xf32>
    %116 = vector.shape_cast %115 : vector<1x17x48xf32> to vector<17x48xf32>
    %cst_122 = arith.constant dense<0.000000e+00> : vector<17x64xf32>
    %117 = tpu.matmul %116, %97, %cst_122 {dimension_numbers = #tpu.dot_dimension_numbers<[1], [0], [0], [1], [0, 0, 1, 1], [], []>} : vector<17x48xf32>, vector<48x64xf32>, vector<17x64xf32> -> vector<17x64xf32>
    %118 = arith.addf %114, %117 : vector<17x64xf32>
    %c2_123 = arith.constant 2 : index
    %c0_124 = arith.constant 0 : index
    %c0_125 = arith.constant 0 : index
    %119 = vector.load %arg11[%c2_123, %c0_124, %c0_125] : memref<3x17x32xf32, #tpu.memory_space<vmem>>, vector<1x17x32xf32>
    %120 = vector.shape_cast %119 : vector<1x17x32xf32> to vector<17x32xf32>
    %cst_126 = arith.constant dense<0.000000e+00> : vector<17x64xf32>
    %121 = tpu.matmul %120, %10, %cst_126 {dimension_numbers = #tpu.dot_dimension_numbers<[1], [0], [0], [1], [0, 0, 1, 1], [], []>} : vector<17x32xf32>, vector<32x64xf32>, vector<17x64xf32> -> vector<17x64xf32>
    %122 = arith.addf %118, %121 : vector<17x64xf32>
    %c2_127 = arith.constant 2 : index
    %c0_128 = arith.constant 0 : index
    %c0_129 = arith.constant 0 : index
    %123 = vector.load %arg12[%c2_127, %c0_128, %c0_129] : memref<3x17x64xf32, #tpu.memory_space<vmem>>, vector<1x17x64xf32>
    %124 = vector.shape_cast %123 : vector<1x17x64xf32> to vector<17x64xf32>
    %125 = arith.addf %122, %124 : vector<17x64xf32>
    %c2_130 = arith.constant 2 : index
    %c0_131 = arith.constant 0 : index
    %c0_132 = arith.constant 0 : index
    %126 = vector.load %arg17[%c2_130, %c0_131, %c0_132] : memref<3x64x3xf32, #tpu.memory_space<vmem>>, vector<1x64x3xf32>
    %127 = vector.shape_cast %126 : vector<1x64x3xf32> to vector<64x3xf32>
    %cst_133 = arith.constant dense<0.000000e+00> : vector<17x3xf32>
    %128 = tpu.matmul %125, %127, %cst_133 {dimension_numbers = #tpu.dot_dimension_numbers<[1], [0], [0], [1], [0, 0, 1, 1], [], []>} : vector<17x64xf32>, vector<64x3xf32>, vector<17x3xf32> -> vector<17x3xf32>
    %c2_134 = arith.constant 2 : index
    %c0_135 = arith.constant 0 : index
    %c0_136 = arith.constant 0 : index
    %129 = vector.load %arg18[%c2_134, %c0_135, %c0_136] : memref<3x1x3xf32, #tpu.memory_space<vmem>>, vector<1x1x3xf32>
    %130 = vector.shape_cast %129 : vector<1x1x3xf32> to vector<1x3xf32>
    %131 = vector.broadcast %130 : vector<1x3xf32> to vector<17x3xf32>
    %132 = arith.addf %128, %131 : vector<17x3xf32>
    %133 = arith.addf %132, %8 : vector<17x3xf32>
    %cst_137 = arith.constant dense<0.000000e+00> : vector<3x17xf32>
    %134 = tpu.matmul %3, %133, %cst_137 {dimension_numbers = #tpu.dot_dimension_numbers<[1], [1], [0], [0], [0, 0, 1, 0], [], []>} : vector<3x3xf32>, vector<17x3xf32>, vector<3x17xf32> -> vector<3x17xf32>
    %c0_138 = arith.constant 0 : index
    %c0_139 = arith.constant 0 : index
    %c0_140 = arith.constant 0 : index
    %135 = vector.load %arg25[%c0_138, %c0_139, %c0_140] : memref<2x3x17xf32, #tpu.memory_space<vmem>>, vector<1x3x17xf32>
    %136 = vector.shape_cast %135 : vector<1x3x17xf32> to vector<3x17xf32>
    %137 = vector.shape_cast %134 : vector<3x17xf32> to vector<1x3x17xf32>
    tpu.vector_store %arg25[%c0_138, %c0_139, %c0_140], %137 {strides = array<i32>} : memref<2x3x17xf32, #tpu.memory_space<vmem>>, vector<1x3x17xf32>,
    %c2_141 = arith.constant 2 : index
    %c0_142 = arith.constant 0 : index
    %c0_143 = arith.constant 0 : index
    %138 = vector.load %arg19[%c2_141, %c0_142, %c0_143] : memref<3x64x3xf32, #tpu.memory_space<vmem>>, vector<1x64x3xf32>
    %139 = vector.shape_cast %138 : vector<1x64x3xf32> to vector<64x3xf32>
    %cst_144 = arith.constant dense<0.000000e+00> : vector<48x3xf32>
    %140 = tpu.matmul %111, %139, %cst_144 {dimension_numbers = #tpu.dot_dimension_numbers<[1], [0], [0], [1], [0, 0, 1, 1], [], []>} : vector<48x64xf32>, vector<64x3xf32>, vector<48x3xf32> -> vector<48x3xf32>
    %c2_145 = arith.constant 2 : index
    %c0_146 = arith.constant 0 : index
    %c0_147 = arith.constant 0 : index
    %141 = vector.load %arg20[%c2_145, %c0_146, %c0_147] : memref<3x1x3xf32, #tpu.memory_space<vmem>>, vector<1x1x3xf32>
    %142 = vector.shape_cast %141 : vector<1x1x3xf32> to vector<1x3xf32>
    %143 = vector.broadcast %142 : vector<1x3xf32> to vector<48x3xf32>
    %144 = arith.addf %140, %143 : vector<48x3xf32>
    %145 = arith.addf %144, %83 : vector<48x3xf32>
    %cst_148 = arith.constant dense<0.000000e+00> : vector<3x48xf32>
    %146 = tpu.matmul %3, %145, %cst_148 {dimension_numbers = #tpu.dot_dimension_numbers<[1], [1], [0], [0], [0, 0, 1, 0], [], []>} : vector<3x3xf32>, vector<48x3xf32>, vector<3x48xf32> -> vector<3x48xf32>
    %cst_149 = arith.constant dense<0.000000e+00> : vector<3x48xf32>
    %147 = tpu.matmul %1, %146, %cst_149 {dimension_numbers = #tpu.dot_dimension_numbers<[1], [0], [0], [1], [0, 0, 1, 1], [], []>} : vector<3x3xf32>, vector<3x48xf32>, vector<3x48xf32> -> vector<3x48xf32>
    %cst_150 = arith.constant dense<0.000000e+00> : vector<3x48xf32>
    %148 = tpu.matmul %5, %146, %cst_150 {dimension_numbers = #tpu.dot_dimension_numbers<[1], [0], [0], [1], [0, 0, 1, 1], [], []>} : vector<3x3xf32>, vector<3x48xf32>, vector<3x48xf32> -> vector<3x48xf32>
    %149 = tpu.concatenate %147, %146, %148 in 1 : vector<3x48xf32>, vector<3x48xf32>, vector<3x48xf32> -> vector<3x144xf32>
    %c0_151 = arith.constant 0 : index
    %c0_152 = arith.constant 0 : index
    %150 = vector.load %arg21[%c0_151, %c0_152] : memref<144x96xf32, #tpu.memory_space<vmem>>, vector<144x96xf32>
    %cst_153 = arith.constant dense<0.000000e+00> : vector<3x96xf32>
    %151 = tpu.matmul %149, %150, %cst_153 {dimension_numbers = #tpu.dot_dimension_numbers<[1], [0], [0], [1], [0, 0, 1, 1], [], []>} : vector<3x144xf32>, vector<144x96xf32>, vector<3x96xf32> -> vector<3x96xf32>
    %c0_154 = arith.constant 0 : index
    %c0_155 = arith.constant 0 : index
    %152 = vector.load %arg22[%c0_154, %c0_155] : memref<1x96xf32, #tpu.memory_space<vmem>>, vector<1x96xf32>
    %153 = vector.broadcast %152 : vector<1x96xf32> to vector<3x96xf32>
    %154 = arith.addf %151, %153 : vector<3x96xf32>
    %cst_156 = arith.constant dense<0.000000e+00> : vector<3x96xf32>
    %155 = tpu.matmul %1, %154, %cst_156 {dimension_numbers = #tpu.dot_dimension_numbers<[1], [0], [0], [1], [0, 0, 1, 1], [], []>} : vector<3x3xf32>, vector<3x96xf32>, vector<3x96xf32> -> vector<3x96xf32>
    %cst_157 = arith.constant dense<0.000000e+00> : vector<3x96xf32>
    %156 = tpu.matmul %5, %154, %cst_157 {dimension_numbers = #tpu.dot_dimension_numbers<[1], [0], [0], [1], [0, 0, 1, 1], [], []>} : vector<3x3xf32>, vector<3x96xf32>, vector<3x96xf32> -> vector<3x96xf32>
    %157 = tpu.concatenate %155, %154, %156 in 1 : vector<3x96xf32>, vector<3x96xf32>, vector<3x96xf32> -> vector<3x288xf32>
    %c0_158 = arith.constant 0 : index
    %c0_159 = arith.constant 0 : index
    %158 = vector.load %arg23[%c0_158, %c0_159] : memref<288x160xf32, #tpu.memory_space<vmem>>, vector<288x160xf32>
    %cst_160 = arith.constant dense<0.000000e+00> : vector<3x160xf32>
    %159 = tpu.matmul %157, %158, %cst_160 {dimension_numbers = #tpu.dot_dimension_numbers<[1], [0], [0], [1], [0, 0, 1, 1], [], []>} : vector<3x288xf32>, vector<288x160xf32>, vector<3x160xf32> -> vector<3x160xf32>
    %c0_161 = arith.constant 0 : index
    %c0_162 = arith.constant 0 : index
    %160 = vector.load %arg24[%c0_161, %c0_162] : memref<1x160xf32, #tpu.memory_space<vmem>>, vector<1x160xf32>
    %161 = vector.broadcast %160 : vector<1x160xf32> to vector<3x160xf32>
    %162 = arith.addf %159, %161 : vector<3x160xf32>
    %c0_163 = arith.constant 0 : index
    %c0_164 = arith.constant 0 : index
    %c0_165 = arith.constant 0 : index
    %163 = vector.load %arg26[%c0_163, %c0_164, %c0_165] : memref<2x3x160xf32, #tpu.memory_space<vmem>>, vector<1x3x160xf32>
    %164 = vector.shape_cast %163 : vector<1x3x160xf32> to vector<3x160xf32>
    %165 = vector.shape_cast %162 : vector<3x160xf32> to vector<1x3x160xf32>
    tpu.vector_store %arg26[%c0_163, %c0_164, %c0_165], %165 {strides = array<i32>} : memref<2x3x160xf32, #tpu.memory_space<vmem>>, vector<1x3x160xf32>,
    %c1_166 = arith.constant 1 : index
    %c0_167 = arith.constant 0 : index
    %c0_168 = arith.constant 0 : index
    %166 = vector.load %arg1[%c1_166, %c0_167, %c0_168] : memref<2x17x3xf32, #tpu.memory_space<vmem>>, vector<1x17x3xf32>
    %167 = vector.shape_cast %166 : vector<1x17x3xf32> to vector<17x3xf32>
    %c1_169 = arith.constant 1 : index
    %c0_170 = arith.constant 0 : index
    %c0_171 = arith.constant 0 : index
    %168 = vector.load %arg2[%c1_169, %c0_170, %c0_171] : memref<2x32x64xf32, #tpu.memory_space<vmem>>, vector<1x32x64xf32>
    %169 = vector.shape_cast %168 : vector<1x32x64xf32> to vector<32x64xf32>
    %cst_172 = arith.constant dense<0.000000e+00> : vector<48x3xf32>
    %170 = tpu.matmul %6, %167, %cst_172 {dimension_numbers = #tpu.dot_dimension_numbers<[1], [0], [0], [1], [0, 0, 1, 1], [], []>} : vector<48x17xf32>, vector<17x3xf32>, vector<48x3xf32> -> vector<48x3xf32>
    %c0_173 = arith.constant 0 : index
    %c0_174 = arith.constant 0 : index
    %c0_175 = arith.constant 0 : index
    %171 = vector.load %arg5[%c0_173, %c0_174, %c0_175] : memref<3x3x64xf32, #tpu.memory_space<vmem>>, vector<1x3x64xf32>
    %172 = vector.shape_cast %171 : vector<1x3x64xf32> to vector<3x64xf32>
    %cst_176 = arith.constant dense<0.000000e+00> : vector<17x64xf32>
    %173 = tpu.matmul %167, %172, %cst_176 {dimension_numbers = #tpu.dot_dimension_numbers<[1], [0], [0], [1], [0, 0, 1, 1], [], []>} : vector<17x3xf32>, vector<3x64xf32>, vector<17x64xf32> -> vector<17x64xf32>
    %c0_177 = arith.constant 0 : index
    %c0_178 = arith.constant 0 : index
    %c0_179 = arith.constant 0 : index
    %174 = vector.load %arg6[%c0_177, %c0_178, %c0_179] : memref<3x1x64xf32, #tpu.memory_space<vmem>>, vector<1x1x64xf32>
    %175 = vector.shape_cast %174 : vector<1x1x64xf32> to vector<1x64xf32>
    %176 = vector.broadcast %175 : vector<1x64xf32> to vector<17x64xf32>
    %177 = arith.addf %173, %176 : vector<17x64xf32>
    %c0_180 = arith.constant 0 : index
    %c0_181 = arith.constant 0 : index
    %c0_182 = arith.constant 0 : index
    %178 = vector.load %arg7[%c0_180, %c0_181, %c0_182] : memref<3x3x64xf32, #tpu.memory_space<vmem>>, vector<1x3x64xf32>
    %179 = vector.shape_cast %178 : vector<1x3x64xf32> to vector<3x64xf32>
    %cst_183 = arith.constant dense<0.000000e+00> : vector<48x64xf32>
    %180 = tpu.matmul %170, %179, %cst_183 {dimension_numbers = #tpu.dot_dimension_numbers<[1], [0], [0], [1], [0, 0, 1, 1], [], []>} : vector<48x3xf32>, vector<3x64xf32>, vector<48x64xf32> -> vector<48x64xf32>
    %c0_184 = arith.constant 0 : index
    %c0_185 = arith.constant 0 : index
    %c0_186 = arith.constant 0 : index
    %181 = vector.load %arg8[%c0_184, %c0_185, %c0_186] : memref<3x1x64xf32, #tpu.memory_space<vmem>>, vector<1x1x64xf32>
    %182 = vector.shape_cast %181 : vector<1x1x64xf32> to vector<1x64xf32>
    %183 = vector.broadcast %182 : vector<1x64xf32> to vector<48x64xf32>
    %184 = arith.addf %180, %183 : vector<48x64xf32>
    %c0_187 = arith.constant 0 : index
    %c0_188 = arith.constant 0 : index
    %c0_189 = arith.constant 0 : index
    %185 = vector.load %arg13[%c0_187, %c0_188, %c0_189] : memref<3x48x17xf32, #tpu.memory_space<vmem>>, vector<1x48x17xf32>
    %186 = vector.shape_cast %185 : vector<1x48x17xf32> to vector<48x17xf32>
    %cst_190 = arith.constant dense<0.000000e+00> : vector<48x64xf32>
    %187 = tpu.matmul %186, %177, %cst_190 {dimension_numbers = #tpu.dot_dimension_numbers<[1], [0], [0], [1], [0, 0, 1, 1], [], []>} : vector<48x17xf32>, vector<17x64xf32>, vector<48x64xf32> -> vector<48x64xf32>
    %c0_191 = arith.constant 0 : index
    %c0_192 = arith.constant 0 : index
    %c0_193 = arith.constant 0 : index
    %188 = vector.load %arg14[%c0_191, %c0_192, %c0_193] : memref<3x48x48xf32, #tpu.memory_space<vmem>>, vector<1x48x48xf32>
    %189 = vector.shape_cast %188 : vector<1x48x48xf32> to vector<48x48xf32>
    %cst_194 = arith.constant dense<0.000000e+00> : vector<48x64xf32>
    %190 = tpu.matmul %189, %184, %cst_194 {dimension_numbers = #tpu.dot_dimension_numbers<[1], [0], [0], [1], [0, 0, 1, 1], [], []>} : vector<48x48xf32>, vector<48x64xf32>, vector<48x64xf32> -> vector<48x64xf32>
    %191 = arith.addf %187, %190 : vector<48x64xf32>
    %c0_195 = arith.constant 0 : index
    %c0_196 = arith.constant 0 : index
    %c0_197 = arith.constant 0 : index
    %192 = vector.load %arg15[%c0_195, %c0_196, %c0_197] : memref<3x48x32xf32, #tpu.memory_space<vmem>>, vector<1x48x32xf32>
    %193 = vector.shape_cast %192 : vector<1x48x32xf32> to vector<48x32xf32>
    %cst_198 = arith.constant dense<0.000000e+00> : vector<48x64xf32>
    %194 = tpu.matmul %193, %169, %cst_198 {dimension_numbers = #tpu.dot_dimension_numbers<[1], [0], [0], [1], [0, 0, 1, 1], [], []>} : vector<48x32xf32>, vector<32x64xf32>, vector<48x64xf32> -> vector<48x64xf32>
    %195 = arith.addf %191, %194 : vector<48x64xf32>
    %c0_199 = arith.constant 0 : index
    %c0_200 = arith.constant 0 : index
    %c0_201 = arith.constant 0 : index
    %196 = vector.load %arg16[%c0_199, %c0_200, %c0_201] : memref<3x48x64xf32, #tpu.memory_space<vmem>>, vector<1x48x64xf32>
    %197 = vector.shape_cast %196 : vector<1x48x64xf32> to vector<48x64xf32>
    %198 = arith.addf %195, %197 : vector<48x64xf32>
    %c0_202 = arith.constant 0 : index
    %c0_203 = arith.constant 0 : index
    %c0_204 = arith.constant 0 : index
    %199 = vector.load %arg19[%c0_202, %c0_203, %c0_204] : memref<3x64x3xf32, #tpu.memory_space<vmem>>, vector<1x64x3xf32>
    %200 = vector.shape_cast %199 : vector<1x64x3xf32> to vector<64x3xf32>
    %cst_205 = arith.constant dense<0.000000e+00> : vector<48x3xf32>
    %201 = tpu.matmul %198, %200, %cst_205 {dimension_numbers = #tpu.dot_dimension_numbers<[1], [0], [0], [1], [0, 0, 1, 1], [], []>} : vector<48x64xf32>, vector<64x3xf32>, vector<48x3xf32> -> vector<48x3xf32>
    %c0_206 = arith.constant 0 : index
    %c0_207 = arith.constant 0 : index
    %c0_208 = arith.constant 0 : index
    %202 = vector.load %arg20[%c0_206, %c0_207, %c0_208] : memref<3x1x3xf32, #tpu.memory_space<vmem>>, vector<1x1x3xf32>
    %203 = vector.shape_cast %202 : vector<1x1x3xf32> to vector<1x3xf32>
    %204 = vector.broadcast %203 : vector<1x3xf32> to vector<48x3xf32>
    %205 = arith.addf %201, %204 : vector<48x3xf32>
    %206 = arith.addf %205, %170 : vector<48x3xf32>
    %c1_209 = arith.constant 1 : index
    %c0_210 = arith.constant 0 : index
    %c0_211 = arith.constant 0 : index
    %207 = vector.load %arg5[%c1_209, %c0_210, %c0_211] : memref<3x3x64xf32, #tpu.memory_space<vmem>>, vector<1x3x64xf32>
    %208 = vector.shape_cast %207 : vector<1x3x64xf32> to vector<3x64xf32>
    %cst_212 = arith.constant dense<0.000000e+00> : vector<17x64xf32>
    %209 = tpu.matmul %167, %208, %cst_212 {dimension_numbers = #tpu.dot_dimension_numbers<[1], [0], [0], [1], [0, 0, 1, 1], [], []>} : vector<17x3xf32>, vector<3x64xf32>, vector<17x64xf32> -> vector<17x64xf32>
    %c1_213 = arith.constant 1 : index
    %c0_214 = arith.constant 0 : index
    %c0_215 = arith.constant 0 : index
    %210 = vector.load %arg6[%c1_213, %c0_214, %c0_215] : memref<3x1x64xf32, #tpu.memory_space<vmem>>, vector<1x1x64xf32>
    %211 = vector.shape_cast %210 : vector<1x1x64xf32> to vector<1x64xf32>
    %212 = vector.broadcast %211 : vector<1x64xf32> to vector<17x64xf32>
    %213 = arith.addf %209, %212 : vector<17x64xf32>
    %c1_216 = arith.constant 1 : index
    %c0_217 = arith.constant 0 : index
    %c0_218 = arith.constant 0 : index
    %214 = vector.load %arg7[%c1_216, %c0_217, %c0_218] : memref<3x3x64xf32, #tpu.memory_space<vmem>>, vector<1x3x64xf32>
    %215 = vector.shape_cast %214 : vector<1x3x64xf32> to vector<3x64xf32>
    %cst_219 = arith.constant dense<0.000000e+00> : vector<48x64xf32>
    %216 = tpu.matmul %206, %215, %cst_219 {dimension_numbers = #tpu.dot_dimension_numbers<[1], [0], [0], [1], [0, 0, 1, 1], [], []>} : vector<48x3xf32>, vector<3x64xf32>, vector<48x64xf32> -> vector<48x64xf32>
    %c1_220 = arith.constant 1 : index
    %c0_221 = arith.constant 0 : index
    %c0_222 = arith.constant 0 : index
    %217 = vector.load %arg8[%c1_220, %c0_221, %c0_222] : memref<3x1x64xf32, #tpu.memory_space<vmem>>, vector<1x1x64xf32>
    %218 = vector.shape_cast %217 : vector<1x1x64xf32> to vector<1x64xf32>
    %219 = vector.broadcast %218 : vector<1x64xf32> to vector<48x64xf32>
    %220 = arith.addf %216, %219 : vector<48x64xf32>
    %c1_223 = arith.constant 1 : index
    %c0_224 = arith.constant 0 : index
    %c0_225 = arith.constant 0 : index
    %221 = vector.load %arg13[%c1_223, %c0_224, %c0_225] : memref<3x48x17xf32, #tpu.memory_space<vmem>>, vector<1x48x17xf32>
    %222 = vector.shape_cast %221 : vector<1x48x17xf32> to vector<48x17xf32>
    %cst_226 = arith.constant dense<0.000000e+00> : vector<48x64xf32>
    %223 = tpu.matmul %222, %213, %cst_226 {dimension_numbers = #tpu.dot_dimension_numbers<[1], [0], [0], [1], [0, 0, 1, 1], [], []>} : vector<48x17xf32>, vector<17x64xf32>, vector<48x64xf32> -> vector<48x64xf32>
    %c1_227 = arith.constant 1 : index
    %c0_228 = arith.constant 0 : index
    %c0_229 = arith.constant 0 : index
    %224 = vector.load %arg14[%c1_227, %c0_228, %c0_229] : memref<3x48x48xf32, #tpu.memory_space<vmem>>, vector<1x48x48xf32>
    %225 = vector.shape_cast %224 : vector<1x48x48xf32> to vector<48x48xf32>
    %cst_230 = arith.constant dense<0.000000e+00> : vector<48x64xf32>
    %226 = tpu.matmul %225, %220, %cst_230 {dimension_numbers = #tpu.dot_dimension_numbers<[1], [0], [0], [1], [0, 0, 1, 1], [], []>} : vector<48x48xf32>, vector<48x64xf32>, vector<48x64xf32> -> vector<48x64xf32>
    %227 = arith.addf %223, %226 : vector<48x64xf32>
    %c1_231 = arith.constant 1 : index
    %c0_232 = arith.constant 0 : index
    %c0_233 = arith.constant 0 : index
    %228 = vector.load %arg15[%c1_231, %c0_232, %c0_233] : memref<3x48x32xf32, #tpu.memory_space<vmem>>, vector<1x48x32xf32>
    %229 = vector.shape_cast %228 : vector<1x48x32xf32> to vector<48x32xf32>
    %cst_234 = arith.constant dense<0.000000e+00> : vector<48x64xf32>
    %230 = tpu.matmul %229, %169, %cst_234 {dimension_numbers = #tpu.dot_dimension_numbers<[1], [0], [0], [1], [0, 0, 1, 1], [], []>} : vector<48x32xf32>, vector<32x64xf32>, vector<48x64xf32> -> vector<48x64xf32>
    %231 = arith.addf %227, %230 : vector<48x64xf32>
    %c1_235 = arith.constant 1 : index
    %c0_236 = arith.constant 0 : index
    %c0_237 = arith.constant 0 : index
    %232 = vector.load %arg16[%c1_235, %c0_236, %c0_237] : memref<3x48x64xf32, #tpu.memory_space<vmem>>, vector<1x48x64xf32>
    %233 = vector.shape_cast %232 : vector<1x48x64xf32> to vector<48x64xf32>
    %234 = arith.addf %231, %233 : vector<48x64xf32>
    %c1_238 = arith.constant 1 : index
    %c0_239 = arith.constant 0 : index
    %c0_240 = arith.constant 0 : index
    %235 = vector.load %arg19[%c1_238, %c0_239, %c0_240] : memref<3x64x3xf32, #tpu.memory_space<vmem>>, vector<1x64x3xf32>
    %236 = vector.shape_cast %235 : vector<1x64x3xf32> to vector<64x3xf32>
    %cst_241 = arith.constant dense<0.000000e+00> : vector<48x3xf32>
    %237 = tpu.matmul %234, %236, %cst_241 {dimension_numbers = #tpu.dot_dimension_numbers<[1], [0], [0], [1], [0, 0, 1, 1], [], []>} : vector<48x64xf32>, vector<64x3xf32>, vector<48x3xf32> -> vector<48x3xf32>
    %c1_242 = arith.constant 1 : index
    %c0_243 = arith.constant 0 : index
    %c0_244 = arith.constant 0 : index
    %238 = vector.load %arg20[%c1_242, %c0_243, %c0_244] : memref<3x1x3xf32, #tpu.memory_space<vmem>>, vector<1x1x3xf32>
    %239 = vector.shape_cast %238 : vector<1x1x3xf32> to vector<1x3xf32>
    %240 = vector.broadcast %239 : vector<1x3xf32> to vector<48x3xf32>
    %241 = arith.addf %237, %240 : vector<48x3xf32>
    %242 = arith.addf %241, %206 : vector<48x3xf32>
    %c2_245 = arith.constant 2 : index
    %c0_246 = arith.constant 0 : index
    %c0_247 = arith.constant 0 : index
    %243 = vector.load %arg5[%c2_245, %c0_246, %c0_247] : memref<3x3x64xf32, #tpu.memory_space<vmem>>, vector<1x3x64xf32>
    %244 = vector.shape_cast %243 : vector<1x3x64xf32> to vector<3x64xf32>
    %cst_248 = arith.constant dense<0.000000e+00> : vector<17x64xf32>
    %245 = tpu.matmul %167, %244, %cst_248 {dimension_numbers = #tpu.dot_dimension_numbers<[1], [0], [0], [1], [0, 0, 1, 1], [], []>} : vector<17x3xf32>, vector<3x64xf32>, vector<17x64xf32> -> vector<17x64xf32>
    %c2_249 = arith.constant 2 : index
    %c0_250 = arith.constant 0 : index
    %c0_251 = arith.constant 0 : index
    %246 = vector.load %arg6[%c2_249, %c0_250, %c0_251] : memref<3x1x64xf32, #tpu.memory_space<vmem>>, vector<1x1x64xf32>
    %247 = vector.shape_cast %246 : vector<1x1x64xf32> to vector<1x64xf32>
    %248 = vector.broadcast %247 : vector<1x64xf32> to vector<17x64xf32>
    %249 = arith.addf %245, %248 : vector<17x64xf32>
    %c2_252 = arith.constant 2 : index
    %c0_253 = arith.constant 0 : index
    %c0_254 = arith.constant 0 : index
    %250 = vector.load %arg7[%c2_252, %c0_253, %c0_254] : memref<3x3x64xf32, #tpu.memory_space<vmem>>, vector<1x3x64xf32>
    %251 = vector.shape_cast %250 : vector<1x3x64xf32> to vector<3x64xf32>
    %cst_255 = arith.constant dense<0.000000e+00> : vector<48x64xf32>
    %252 = tpu.matmul %242, %251, %cst_255 {dimension_numbers = #tpu.dot_dimension_numbers<[1], [0], [0], [1], [0, 0, 1, 1], [], []>} : vector<48x3xf32>, vector<3x64xf32>, vector<48x64xf32> -> vector<48x64xf32>
    %c2_256 = arith.constant 2 : index
    %c0_257 = arith.constant 0 : index
    %c0_258 = arith.constant 0 : index
    %253 = vector.load %arg8[%c2_256, %c0_257, %c0_258] : memref<3x1x64xf32, #tpu.memory_space<vmem>>, vector<1x1x64xf32>
    %254 = vector.shape_cast %253 : vector<1x1x64xf32> to vector<1x64xf32>
    %255 = vector.broadcast %254 : vector<1x64xf32> to vector<48x64xf32>
    %256 = arith.addf %252, %255 : vector<48x64xf32>
    %c2_259 = arith.constant 2 : index
    %c0_260 = arith.constant 0 : index
    %c0_261 = arith.constant 0 : index
    %257 = vector.load %arg13[%c2_259, %c0_260, %c0_261] : memref<3x48x17xf32, #tpu.memory_space<vmem>>, vector<1x48x17xf32>
    %258 = vector.shape_cast %257 : vector<1x48x17xf32> to vector<48x17xf32>
    %cst_262 = arith.constant dense<0.000000e+00> : vector<48x64xf32>
    %259 = tpu.matmul %258, %249, %cst_262 {dimension_numbers = #tpu.dot_dimension_numbers<[1], [0], [0], [1], [0, 0, 1, 1], [], []>} : vector<48x17xf32>, vector<17x64xf32>, vector<48x64xf32> -> vector<48x64xf32>
    %c2_263 = arith.constant 2 : index
    %c0_264 = arith.constant 0 : index
    %c0_265 = arith.constant 0 : index
    %260 = vector.load %arg14[%c2_263, %c0_264, %c0_265] : memref<3x48x48xf32, #tpu.memory_space<vmem>>, vector<1x48x48xf32>
    %261 = vector.shape_cast %260 : vector<1x48x48xf32> to vector<48x48xf32>
    %cst_266 = arith.constant dense<0.000000e+00> : vector<48x64xf32>
    %262 = tpu.matmul %261, %256, %cst_266 {dimension_numbers = #tpu.dot_dimension_numbers<[1], [0], [0], [1], [0, 0, 1, 1], [], []>} : vector<48x48xf32>, vector<48x64xf32>, vector<48x64xf32> -> vector<48x64xf32>
    %263 = arith.addf %259, %262 : vector<48x64xf32>
    %c2_267 = arith.constant 2 : index
    %c0_268 = arith.constant 0 : index
    %c0_269 = arith.constant 0 : index
    %264 = vector.load %arg15[%c2_267, %c0_268, %c0_269] : memref<3x48x32xf32, #tpu.memory_space<vmem>>, vector<1x48x32xf32>
    %265 = vector.shape_cast %264 : vector<1x48x32xf32> to vector<48x32xf32>
    %cst_270 = arith.constant dense<0.000000e+00> : vector<48x64xf32>
    %266 = tpu.matmul %265, %169, %cst_270 {dimension_numbers = #tpu.dot_dimension_numbers<[1], [0], [0], [1], [0, 0, 1, 1], [], []>} : vector<48x32xf32>, vector<32x64xf32>, vector<48x64xf32> -> vector<48x64xf32>
    %267 = arith.addf %263, %266 : vector<48x64xf32>
    %c2_271 = arith.constant 2 : index
    %c0_272 = arith.constant 0 : index
    %c0_273 = arith.constant 0 : index
    %268 = vector.load %arg16[%c2_271, %c0_272, %c0_273] : memref<3x48x64xf32, #tpu.memory_space<vmem>>, vector<1x48x64xf32>
    %269 = vector.shape_cast %268 : vector<1x48x64xf32> to vector<48x64xf32>
    %270 = arith.addf %267, %269 : vector<48x64xf32>
    %c2_274 = arith.constant 2 : index
    %c0_275 = arith.constant 0 : index
    %c0_276 = arith.constant 0 : index
    %271 = vector.load %arg9[%c2_274, %c0_275, %c0_276] : memref<3x17x17xf32, #tpu.memory_space<vmem>>, vector<1x17x17xf32>
    %272 = vector.shape_cast %271 : vector<1x17x17xf32> to vector<17x17xf32>
    %cst_277 = arith.constant dense<0.000000e+00> : vector<17x64xf32>
    %273 = tpu.matmul %272, %249, %cst_277 {dimension_numbers = #tpu.dot_dimension_numbers<[1], [0], [0], [1], [0, 0, 1, 1], [], []>} : vector<17x17xf32>, vector<17x64xf32>, vector<17x64xf32> -> vector<17x64xf32>
    %c2_278 = arith.constant 2 : index
    %c0_279 = arith.constant 0 : index
    %c0_280 = arith.constant 0 : index
    %274 = vector.load %arg10[%c2_278, %c0_279, %c0_280] : memref<3x17x48xf32, #tpu.memory_space<vmem>>, vector<1x17x48xf32>
    %275 = vector.shape_cast %274 : vector<1x17x48xf32> to vector<17x48xf32>
    %cst_281 = arith.constant dense<0.000000e+00> : vector<17x64xf32>
    %276 = tpu.matmul %275, %256, %cst_281 {dimension_numbers = #tpu.dot_dimension_numbers<[1], [0], [0], [1], [0, 0, 1, 1], [], []>} : vector<17x48xf32>, vector<48x64xf32>, vector<17x64xf32> -> vector<17x64xf32>
    %277 = arith.addf %273, %276 : vector<17x64xf32>
    %c2_282 = arith.constant 2 : index
    %c0_283 = arith.constant 0 : index
    %c0_284 = arith.constant 0 : index
    %278 = vector.load %arg11[%c2_282, %c0_283, %c0_284] : memref<3x17x32xf32, #tpu.memory_space<vmem>>, vector<1x17x32xf32>
    %279 = vector.shape_cast %278 : vector<1x17x32xf32> to vector<17x32xf32>
    %cst_285 = arith.constant dense<0.000000e+00> : vector<17x64xf32>
    %280 = tpu.matmul %279, %169, %cst_285 {dimension_numbers = #tpu.dot_dimension_numbers<[1], [0], [0], [1], [0, 0, 1, 1], [], []>} : vector<17x32xf32>, vector<32x64xf32>, vector<17x64xf32> -> vector<17x64xf32>
    %281 = arith.addf %277, %280 : vector<17x64xf32>
    %c2_286 = arith.constant 2 : index
    %c0_287 = arith.constant 0 : index
    %c0_288 = arith.constant 0 : index
    %282 = vector.load %arg12[%c2_286, %c0_287, %c0_288] : memref<3x17x64xf32, #tpu.memory_space<vmem>>, vector<1x17x64xf32>
    %283 = vector.shape_cast %282 : vector<1x17x64xf32> to vector<17x64xf32>
    %284 = arith.addf %281, %283 : vector<17x64xf32>
    %c2_289 = arith.constant 2 : index
    %c0_290 = arith.constant 0 : index
    %c0_291 = arith.constant 0 : index
    %285 = vector.load %arg17[%c2_289, %c0_290, %c0_291] : memref<3x64x3xf32, #tpu.memory_space<vmem>>, vector<1x64x3xf32>
    %286 = vector.shape_cast %285 : vector<1x64x3xf32> to vector<64x3xf32>
    %cst_292 = arith.constant dense<0.000000e+00> : vector<17x3xf32>
    %287 = tpu.matmul %284, %286, %cst_292 {dimension_numbers = #tpu.dot_dimension_numbers<[1], [0], [0], [1], [0, 0, 1, 1], [], []>} : vector<17x64xf32>, vector<64x3xf32>, vector<17x3xf32> -> vector<17x3xf32>
    %c2_293 = arith.constant 2 : index
    %c0_294 = arith.constant 0 : index
    %c0_295 = arith.constant 0 : index
    %288 = vector.load %arg18[%c2_293, %c0_294, %c0_295] : memref<3x1x3xf32, #tpu.memory_space<vmem>>, vector<1x1x3xf32>
    %289 = vector.shape_cast %288 : vector<1x1x3xf32> to vector<1x3xf32>
    %290 = vector.broadcast %289 : vector<1x3xf32> to vector<17x3xf32>
    %291 = arith.addf %287, %290 : vector<17x3xf32>
    %292 = arith.addf %291, %167 : vector<17x3xf32>
    %cst_296 = arith.constant dense<0.000000e+00> : vector<3x17xf32>
    %293 = tpu.matmul %3, %292, %cst_296 {dimension_numbers = #tpu.dot_dimension_numbers<[1], [1], [0], [0], [0, 0, 1, 0], [], []>} : vector<3x3xf32>, vector<17x3xf32>, vector<3x17xf32> -> vector<3x17xf32>
    %c1_297 = arith.constant 1 : index
    %c0_298 = arith.constant 0 : index
    %c0_299 = arith.constant 0 : index
    %294 = vector.load %arg25[%c1_297, %c0_298, %c0_299] : memref<2x3x17xf32, #tpu.memory_space<vmem>>, vector<1x3x17xf32>
    %295 = vector.shape_cast %294 : vector<1x3x17xf32> to vector<3x17xf32>
    %296 = vector.shape_cast %293 : vector<3x17xf32> to vector<1x3x17xf32>
    tpu.vector_store %arg25[%c1_297, %c0_298, %c0_299], %296 {strides = array<i32>} : memref<2x3x17xf32, #tpu.memory_space<vmem>>, vector<1x3x17xf32>,
    %c2_300 = arith.constant 2 : index
    %c0_301 = arith.constant 0 : index
    %c0_302 = arith.constant 0 : index
    %297 = vector.load %arg19[%c2_300, %c0_301, %c0_302] : memref<3x64x3xf32, #tpu.memory_space<vmem>>, vector<1x64x3xf32>
    %298 = vector.shape_cast %297 : vector<1x64x3xf32> to vector<64x3xf32>
    %cst_303 = arith.constant dense<0.000000e+00> : vector<48x3xf32>
    %299 = tpu.matmul %270, %298, %cst_303 {dimension_numbers = #tpu.dot_dimension_numbers<[1], [0], [0], [1], [0, 0, 1, 1], [], []>} : vector<48x64xf32>, vector<64x3xf32>, vector<48x3xf32> -> vector<48x3xf32>
    %c2_304 = arith.constant 2 : index
    %c0_305 = arith.constant 0 : index
    %c0_306 = arith.constant 0 : index
    %300 = vector.load %arg20[%c2_304, %c0_305, %c0_306] : memref<3x1x3xf32, #tpu.memory_space<vmem>>, vector<1x1x3xf32>
    %301 = vector.shape_cast %300 : vector<1x1x3xf32> to vector<1x3xf32>
    %302 = vector.broadcast %301 : vector<1x3xf32> to vector<48x3xf32>
    %303 = arith.addf %299, %302 : vector<48x3xf32>
    %304 = arith.addf %303, %242 : vector<48x3xf32>
    %cst_307 = arith.constant dense<0.000000e+00> : vector<3x48xf32>
    %305 = tpu.matmul %3, %304, %cst_307 {dimension_numbers = #tpu.dot_dimension_numbers<[1], [1], [0], [0], [0, 0, 1, 0], [], []>} : vector<3x3xf32>, vector<48x3xf32>, vector<3x48xf32> -> vector<3x48xf32>
    %cst_308 = arith.constant dense<0.000000e+00> : vector<3x48xf32>
    %306 = tpu.matmul %1, %305, %cst_308 {dimension_numbers = #tpu.dot_dimension_numbers<[1], [0], [0], [1], [0, 0, 1, 1], [], []>} : vector<3x3xf32>, vector<3x48xf32>, vector<3x48xf32> -> vector<3x48xf32>
    %cst_309 = arith.constant dense<0.000000e+00> : vector<3x48xf32>
    %307 = tpu.matmul %5, %305, %cst_309 {dimension_numbers = #tpu.dot_dimension_numbers<[1], [0], [0], [1], [0, 0, 1, 1], [], []>} : vector<3x3xf32>, vector<3x48xf32>, vector<3x48xf32> -> vector<3x48xf32>
    %308 = tpu.concatenate %306, %305, %307 in 1 : vector<3x48xf32>, vector<3x48xf32>, vector<3x48xf32> -> vector<3x144xf32>
    %c0_310 = arith.constant 0 : index
    %c0_311 = arith.constant 0 : index
    %309 = vector.load %arg21[%c0_310, %c0_311] : memref<144x96xf32, #tpu.memory_space<vmem>>, vector<144x96xf32>
    %cst_312 = arith.constant dense<0.000000e+00> : vector<3x96xf32>
    %310 = tpu.matmul %308, %309, %cst_312 {dimension_numbers = #tpu.dot_dimension_numbers<[1], [0], [0], [1], [0, 0, 1, 1], [], []>} : vector<3x144xf32>, vector<144x96xf32>, vector<3x96xf32> -> vector<3x96xf32>
    %c0_313 = arith.constant 0 : index
    %c0_314 = arith.constant 0 : index
    %311 = vector.load %arg22[%c0_313, %c0_314] : memref<1x96xf32, #tpu.memory_space<vmem>>, vector<1x96xf32>
    %312 = vector.broadcast %311 : vector<1x96xf32> to vector<3x96xf32>
    %313 = arith.addf %310, %312 : vector<3x96xf32>
    %cst_315 = arith.constant dense<0.000000e+00> : vector<3x96xf32>
    %314 = tpu.matmul %1, %313, %cst_315 {dimension_numbers = #tpu.dot_dimension_numbers<[1], [0], [0], [1], [0, 0, 1, 1], [], []>} : vector<3x3xf32>, vector<3x96xf32>, vector<3x96xf32> -> vector<3x96xf32>
    %cst_316 = arith.constant dense<0.000000e+00> : vector<3x96xf32>
    %315 = tpu.matmul %5, %313, %cst_316 {dimension_numbers = #tpu.dot_dimension_numbers<[1], [0], [0], [1], [0, 0, 1, 1], [], []>} : vector<3x3xf32>, vector<3x96xf32>, vector<3x96xf32> -> vector<3x96xf32>
    %316 = tpu.concatenate %314, %313, %315 in 1 : vector<3x96xf32>, vector<3x96xf32>, vector<3x96xf32> -> vector<3x288xf32>
    %c0_317 = arith.constant 0 : index
    %c0_318 = arith.constant 0 : index
    %317 = vector.load %arg23[%c0_317, %c0_318] : memref<288x160xf32, #tpu.memory_space<vmem>>, vector<288x160xf32>
    %cst_319 = arith.constant dense<0.000000e+00> : vector<3x160xf32>
    %318 = tpu.matmul %316, %317, %cst_319 {dimension_numbers = #tpu.dot_dimension_numbers<[1], [0], [0], [1], [0, 0, 1, 1], [], []>} : vector<3x288xf32>, vector<288x160xf32>, vector<3x160xf32> -> vector<3x160xf32>
    %c0_320 = arith.constant 0 : index
    %c0_321 = arith.constant 0 : index
    %319 = vector.load %arg24[%c0_320, %c0_321] : memref<1x160xf32, #tpu.memory_space<vmem>>, vector<1x160xf32>
    %320 = vector.broadcast %319 : vector<1x160xf32> to vector<3x160xf32>
    %321 = arith.addf %318, %320 : vector<3x160xf32>
    %c1_322 = arith.constant 1 : index
    %c0_323 = arith.constant 0 : index
    %c0_324 = arith.constant 0 : index
    %322 = vector.load %arg26[%c1_322, %c0_323, %c0_324] : memref<2x3x160xf32, #tpu.memory_space<vmem>>, vector<1x3x160xf32>
    %323 = vector.shape_cast %322 : vector<1x3x160xf32> to vector<3x160xf32>
    %324 = vector.shape_cast %321 : vector<3x160xf32> to vector<1x3x160xf32>
    tpu.vector_store %arg26[%c1_322, %c0_323, %c0_324], %324 {strides = array<i32>} : memref<2x3x160xf32, #tpu.memory_space<vmem>>, vector<1x3x160xf32>,
    return
  }
  func.func @transform_0(%arg0: i32) -> (i32, i32, i32) {
    %c0_i32 = arith.constant 0 : i32
    %c0_i32_0 = arith.constant 0 : i32
    %c0_i32_1 = arith.constant 0 : i32
    %c0_i32_2 = arith.constant 0 : i32
    return %c0_i32, %c0_i32_0, %c0_i32_1 : i32, i32, i32
  }
  func.func @transform_1(%arg0: i32) -> (i32, i32, i32) {
    %c0_i32 = arith.constant 0 : i32
    %c0_i32_0 = arith.constant 0 : i32
    %c0_i32_1 = arith.constant 0 : i32
    %c0_i32_2 = arith.constant 0 : i32
    return %c0_i32, %c0_i32_0, %c0_i32_1 : i32, i32, i32
  }
  func.func @transform_2(%arg0: i32) -> (i32, i32) {
    %c0_i32 = arith.constant 0 : i32
    %c0_i32_0 = arith.constant 0 : i32
    %c0_i32_1 = arith.constant 0 : i32
    return %c0_i32, %c0_i32_0 : i32, i32
  }
  func.func @transform_3(%arg0: i32) -> (i32, i32, i32) {
    %c0_i32 = arith.constant 0 : i32
    %c0_i32_0 = arith.constant 0 : i32
    %c0_i32_1 = arith.constant 0 : i32
    %c0_i32_2 = arith.constant 0 : i32
    return %c0_i32, %c0_i32_0, %c0_i32_1 : i32, i32, i32
  }
  func.func @transform_4(%arg0: i32) -> (i32, i32, i32) {
    %c0_i32 = arith.constant 0 : i32
    %c0_i32_0 = arith.constant 0 : i32
    %c0_i32_1 = arith.constant 0 : i32
    %c0_i32_2 = arith.constant 0 : i32
    return %c0_i32, %c0_i32_0, %c0_i32_1 : i32, i32, i32
  }
  func.func @transform_5(%arg0: i32) -> (i32, i32, i32) {
    %c0_i32 = arith.constant 0 : i32
    %c0_i32_0 = arith.constant 0 : i32
    %c0_i32_1 = arith.constant 0 : i32
    %c0_i32_2 = arith.constant 0 : i32
    return %c0_i32, %c0_i32_0, %c0_i32_1 : i32, i32, i32
  }
  func.func @transform_6(%arg0: i32) -> (i32, i32, i32) {
    %c0_i32 = arith.constant 0 : i32
    %c0_i32_0 = arith.constant 0 : i32
    %c0_i32_1 = arith.constant 0 : i32
    %c0_i32_2 = arith.constant 0 : i32
    return %c0_i32, %c0_i32_0, %c0_i32_1 : i32, i32, i32
  }
  func.func @transform_7(%arg0: i32) -> (i32, i32, i32) {
    %c0_i32 = arith.constant 0 : i32
    %c0_i32_0 = arith.constant 0 : i32
    %c0_i32_1 = arith.constant 0 : i32
    %c0_i32_2 = arith.constant 0 : i32
    return %c0_i32, %c0_i32_0, %c0_i32_1 : i32, i32, i32
  }
  func.func @transform_8(%arg0: i32) -> (i32, i32, i32) {
    %c0_i32 = arith.constant 0 : i32
    %c0_i32_0 = arith.constant 0 : i32
    %c0_i32_1 = arith.constant 0 : i32
    %c0_i32_2 = arith.constant 0 : i32
    return %c0_i32, %c0_i32_0, %c0_i32_1 : i32, i32, i32
  }
  func.func @transform_9(%arg0: i32) -> (i32, i32, i32) {
    %c0_i32 = arith.constant 0 : i32
    %c0_i32_0 = arith.constant 0 : i32
    %c0_i32_1 = arith.constant 0 : i32
    %c0_i32_2 = arith.constant 0 : i32
    return %c0_i32, %c0_i32_0, %c0_i32_1 : i32, i32, i32
  }
  func.func @transform_10(%arg0: i32) -> (i32, i32, i32) {
    %c0_i32 = arith.constant 0 : i32
    %c0_i32_0 = arith.constant 0 : i32
    %c0_i32_1 = arith.constant 0 : i32
    %c0_i32_2 = arith.constant 0 : i32
    return %c0_i32, %c0_i32_0, %c0_i32_1 : i32, i32, i32
  }
  func.func @transform_11(%arg0: i32) -> (i32, i32, i32) {
    %c0_i32 = arith.constant 0 : i32
    %c0_i32_0 = arith.constant 0 : i32
    %c0_i32_1 = arith.constant 0 : i32
    %c0_i32_2 = arith.constant 0 : i32
    return %c0_i32, %c0_i32_0, %c0_i32_1 : i32, i32, i32
  }
  func.func @transform_12(%arg0: i32) -> (i32, i32, i32) {
    %c0_i32 = arith.constant 0 : i32
    %c0_i32_0 = arith.constant 0 : i32
    %c0_i32_1 = arith.constant 0 : i32
    %c0_i32_2 = arith.constant 0 : i32
    return %c0_i32, %c0_i32_0, %c0_i32_1 : i32, i32, i32
  }
  func.func @transform_13(%arg0: i32) -> (i32, i32, i32) {
    %c0_i32 = arith.constant 0 : i32
    %c0_i32_0 = arith.constant 0 : i32
    %c0_i32_1 = arith.constant 0 : i32
    %c0_i32_2 = arith.constant 0 : i32
    return %c0_i32, %c0_i32_0, %c0_i32_1 : i32, i32, i32
  }
  func.func @transform_14(%arg0: i32) -> (i32, i32, i32) {
    %c0_i32 = arith.constant 0 : i32
    %c0_i32_0 = arith.constant 0 : i32
    %c0_i32_1 = arith.constant 0 : i32
    %c0_i32_2 = arith.constant 0 : i32
    return %c0_i32, %c0_i32_0, %c0_i32_1 : i32, i32, i32
  }
  func.func @transform_15(%arg0: i32) -> (i32, i32, i32) {
    %c0_i32 = arith.constant 0 : i32
    %c0_i32_0 = arith.constant 0 : i32
    %c0_i32_1 = arith.constant 0 : i32
    %c0_i32_2 = arith.constant 0 : i32
    return %c0_i32, %c0_i32_0, %c0_i32_1 : i32, i32, i32
  }
  func.func @transform_16(%arg0: i32) -> (i32, i32, i32) {
    %c0_i32 = arith.constant 0 : i32
    %c0_i32_0 = arith.constant 0 : i32
    %c0_i32_1 = arith.constant 0 : i32
    %c0_i32_2 = arith.constant 0 : i32
    return %c0_i32, %c0_i32_0, %c0_i32_1 : i32, i32, i32
  }
  func.func @transform_17(%arg0: i32) -> (i32, i32, i32) {
    %c0_i32 = arith.constant 0 : i32
    %c0_i32_0 = arith.constant 0 : i32
    %c0_i32_1 = arith.constant 0 : i32
    %c0_i32_2 = arith.constant 0 : i32
    return %c0_i32, %c0_i32_0, %c0_i32_1 : i32, i32, i32
  }
  func.func @transform_18(%arg0: i32) -> (i32, i32, i32) {
    %c0_i32 = arith.constant 0 : i32
    %c0_i32_0 = arith.constant 0 : i32
    %c0_i32_1 = arith.constant 0 : i32
    %c0_i32_2 = arith.constant 0 : i32
    return %c0_i32, %c0_i32_0, %c0_i32_1 : i32, i32, i32
  }
  func.func @transform_19(%arg0: i32) -> (i32, i32, i32) {
    %c0_i32 = arith.constant 0 : i32
    %c0_i32_0 = arith.constant 0 : i32
    %c0_i32_1 = arith.constant 0 : i32
    %c0_i32_2 = arith.constant 0 : i32
    return %c0_i32, %c0_i32_0, %c0_i32_1 : i32, i32, i32
  }
  func.func @transform_20(%arg0: i32) -> (i32, i32) {
    %c0_i32 = arith.constant 0 : i32
    %c0_i32_0 = arith.constant 0 : i32
    %c0_i32_1 = arith.constant 0 : i32
    return %c0_i32, %c0_i32_0 : i32, i32
  }
  func.func @transform_21(%arg0: i32) -> (i32, i32) {
    %c0_i32 = arith.constant 0 : i32
    %c0_i32_0 = arith.constant 0 : i32
    %c0_i32_1 = arith.constant 0 : i32
    return %c0_i32, %c0_i32_0 : i32, i32
  }
  func.func @transform_22(%arg0: i32) -> (i32, i32) {
    %c0_i32 = arith.constant 0 : i32
    %c0_i32_0 = arith.constant 0 : i32
    %c0_i32_1 = arith.constant 0 : i32
    return %c0_i32, %c0_i32_0 : i32, i32
  }
  func.func @transform_23(%arg0: i32) -> (i32, i32) {
    %c0_i32 = arith.constant 0 : i32
    %c0_i32_0 = arith.constant 0 : i32
    %c0_i32_1 = arith.constant 0 : i32
    return %c0_i32, %c0_i32_0 : i32, i32
  }
  func.func @transform_24(%arg0: i32) -> (i32, i32, i32) {
    %c0_i32 = arith.constant 0 : i32
    %c0_i32_0 = arith.constant 0 : i32
    %c0_i32_1 = arith.constant 0 : i32
    %c0_i32_2 = arith.constant 0 : i32
    return %c0_i32, %c0_i32_0, %c0_i32_1 : i32, i32, i32
  }
  func.func @transform_25(%arg0: i32) -> (i32, i32, i32) {
    %c0_i32 = arith.constant 0 : i32
    %c0_i32_0 = arith.constant 0 : i32
    %c0_i32_1 = arith.constant 0 : i32
    %c0_i32_2 = arith.constant 0 : i32
    return %c0_i32, %c0_i32_0, %c0_i32_1 : i32, i32, i32
  }
}

</mosaic_0001>

<bundles_post_ra>
// kernel: residual_forward.1
= control target key start
LH: loop header
LB: loop body
LE: loop exit
PB: predicated region body
PF: predicated region fallthrough
CT: control target
= control target key end

     0   :  { %vm116_vm0 = vcmask 1040384   ;;  %vm97_vm1 = vcmask 138240   ;;  %vm169_vm2 = vcmask 1042432   ;;  %vm160_vm3 = vcmask 23552   ;;  %s6407_s0 = inlined_call_operand.vmem [shape: f32[2,17,3], index: 0, kind: input, shape index: {}]   ;;  %s6408_s2 = inlined_call_operand.vmem [shape: f32[48,17], index: 2, kind: input, shape index: {}]   ;;  %s6409_s6 = inlined_call_operand.vmem [shape: f32[3,3,64], index: 6, kind: input, shape index: {}]   ;;  %s6410_s4 = inlined_call_operand.vmem [shape: f32[3,3,64], index: 4, kind: input, shape index: {}]   ;;  %s6411_s7 = inlined_call_operand.vmem [shape: f32[3,1,64], index: 7, kind: input, shape index: {}]   ;;  %s6412_s5 = inlined_call_operand.vmem [shape: f32[3,1,64], index: 5, kind: input, shape index: {}]   ;;  %s6413_s1 = inlined_call_operand.vmem [shape: f32[2,32,64], index: 1, kind: input, shape index: {}]   ;;  %s6414_s14 = inlined_call_operand.vmem [shape: f32[3,48,32], index: 14, kind: input, shape index: {}]   ;;  %s6415_s12 = inlined_call_operand.vmem [shape: f32[3,48,17], index: 12, kind: input, shape index: {}]   ;;  %s6416_s13 = inlined_call_operand.vmem [shape: f32[3,48,48], index: 13, kind: input, shape index: {}]   ;;  %s6417_s18 = inlined_call_operand.vmem [shape: f32[3,64,3], index: 18, kind: input, shape index: {}]   ;;  %s6418_s19 = inlined_call_operand.vmem [shape: f32[3,1,3], index: 19, kind: input, shape index: {}]   ;;  %s6419_s15 = inlined_call_operand.vmem [shape: f32[3,48,64], index: 15, kind: input, shape index: {}]   ;;  %s6420_s9 = inlined_call_operand.vmem [shape: f32[3,17,48], index: 9, kind: input, shape index: {}]   ;;  %s6421_s10 = inlined_call_operand.vmem [shape: f32[3,17,32], index: 10, kind: input, shape index: {}]   ;;  %s6422_s8 = inlined_call_operand.vmem [shape: f32[3,17,17], index: 8, kind: input, shape index: {}]   ;;  %s6423_s16 = inlined_call_operand.vmem [shape: f32[3,64,3], index: 16, kind: input, shape index: {}]   ;;  %s6424_s11 = inlined_call_operand.vmem [shape: f32[3,17,64], index: 11, kind: input, shape index: {}]   ;;  %s6425_s17 = inlined_call_operand.vmem [shape: f32[3,1,3], index: 17, kind: input, shape index: {}]   ;;  %s6426_s3 = inlined_call_operand.vmem [shape: f32[3,3,3], index: 3, kind: input, shape index: {}]   ;;  %s6427_s24 = inlined_call_operand.vmem [shape: f32[2,3,17], index: 24, kind: output, shape index: {0}]   ;;  %s6428_s20 = inlined_call_operand.vmem [shape: f32[144,96], index: 20, kind: input, shape index: {}]   ;;  %s6429_s21 = inlined_call_operand.vmem [shape: f32[1,96], index: 21, kind: input, shape index: {}]   ;;  %s6430_s22 = inlined_call_operand.vmem [shape: f32[288,160], index: 22, kind: input, shape index: {}]   ;;  %s6431_s23 = inlined_call_operand.vmem [shape: f32[1,160], index: 23, kind: input, shape index: {}]   ;;  %s6432_s25 = inlined_call_operand.vmem [shape: f32[2,3,160], index: 25, kind: output, shape index: {1}]  }
   0x1   :  { %6452 = sst [smem:[#allocation2_spill]] %s6407_s0  ;;  %vm388_vm4 = vcmask 261120   ;;  %vm272_vm5 = vcmask 392192   ;;  %v467_v55 = vld [vmem:[%s6417_s18 + $0x38] sm:$0xff]  ;;  %v466_v56 = vld [vmem:[%s6417_s18 + $0x30] sm:$0xff]  ;;  %v465_v57 = vld [vmem:[%s6417_s18 + $0x28] sm:$0xff] }
   0x2   :  { %6453 = sst [smem:[#allocation3_spill]] %s6408_s2  ;;  %v464_v58 = vld [vmem:[%s6417_s18 + $0x20] sm:$0xff]  ;;  %v463_v63 = vld [vmem:[%s6417_s18 + $0x18] sm:$0xff]  ;;  %vm472_vm6 = vcmask 523264   ;;  %vm1418_vm7 = vcmask 133120   ;;  %vm1612_vm8 = vcmask 130048  }
   0x3   :  { %6454 = sst [smem:[#allocation4_spill]] %s6409_s6  ;;  %vm1588_vm9 = vcmask 785408   ;;  %s6476_s0 = smov 96   ;;  %vm1913_vm10 = vcmask 260100   ;;  %vm1910_vm11 = vcmask 1043456  }
   0x4   :  { %6455 = sst [smem:[#allocation5_spill]] %s6410_s4  ;;  %s6448_s4 = smov 48   ;;  %vm5439_vm12 = vmor %vm1913_vm10, %vm169_vm2 }
   0x5   :  { %6456 = sst [smem:[#allocation6_spill]] %s6411_s7 }
   0x6   :  { %6457 = sst [smem:[#allocation7_spill]] %s6412_s5 }
   0x7   :  { %6458 = sst [smem:[#allocation8_spill]] %s6413_s1 }
   0x8   :  { %6459 = sst [smem:[#allocation9_spill]] %s6414_s14 }
   0x9   :  { %6460 = sst [smem:[#allocation10_spill]] %s6415_s12 }
   0xa   :  { %6461 = sst [smem:[#allocation11_spill]] %s6416_s13 }
   0xb   :  { %6462 = sst [smem:[#allocation12_spill]] %s6429_s21 }
   0xc   :  { %6463 = sst [smem:[#allocation13_spill]] %s6431_s23  ;;  %s6451_s23 = smov 64  }
   0xd   :  { %6464 = sst [smem:[#allocation14_spill]] %s6432_s25 }
   0xe   :  { %s6465_s6 = sld [smem:[#allocation2_spill]] }
   0xf   :  { %s6466_s27 = sld [smem:[#allocation3_spill]] }
  0x10   :  { %s6467_s12 = sld [smem:[#allocation4_spill]] }
  0x11   :  { %s6468_s13 = sld [smem:[#allocation5_spill]] }
  0x12   :  { %s6469_s1 = sld [smem:[#allocation7_spill]] }
  0x13   :  { %s6470_s14 = sld [smem:[#allocation8_spill]] }
  0x14   :  { %v4366_v0 = vld [vmem:[%s6465_s6 + $0x10] sm:$0x1]  ;;  %v4371_v1 = vld [vmem:[%s6465_s6 + $0x8] sm:$0xff]  ;;  %v4378_v2 = vld [vmem:[%s6465_s6] sm:$0xff]  ;;  %s6471_s30 = sld [smem:[#allocation9_spill]] }
  0x15   :  { %3690 = vmatpush.msk.msra.mxu0 %vm116_vm0, %v4366_v0  ;;  %v84_v3 = vld [vmem:[%s6466_s27] sm:$0xff]  ;;  %v85_v4 = vld [vmem:[%s6466_s27 + $0x8] sm:$0xff]  ;;  %v86_v5 = vld [vmem:[%s6466_s27 + $0x10] sm:$0xff]  ;;  %s6472_s25 = sld [smem:[#allocation10_spill]] }
  0x16   :  { %v87_v6 = vld [vmem:[%s6466_s27 + $0x18] sm:$0xff]  ;;  %v88_v7 = vld [vmem:[%s6466_s27 + $0x20] sm:$0xff]  ;;  %v89_v8 = vld [vmem:[%s6466_s27 + $0x28] sm:$0xff]  ;;  %s6473_s7 = sld [smem:[#allocation6_spill]] }
  0x17   :  { %134 = vmatpush.msra.mxu0 %v4371_v1  ;;  %v199_v9 = vld [vmem:[%s6467_s12] sm:$0x7]  ;;  %s6474_s26 = sld [smem:[#allocation11_spill]] }
  0x18   :  { %3701 = vmatpush.msk.msra.mxu2 %vm169_vm2, %v199_v9  ;;  %v155_v10 = vld [vmem:[%s6468_s13] sm:$0x7]  ;;  %s6475_s27 = sld [smem:[#allocation12_spill]] }
  0x19   :  { %135 = vmatpush.msra.mxu0 %v4378_v2  ;;  %3697 = vmatpush.msk.msra.mxu1 %vm169_vm2, %v155_v10  ;;  %v4193_v19 = vld [vmem:[%s6469_s1] ss:$0 sm:$0xff]  ;;  %v4451_v26 = vld [vmem:[%s6470_s14 + $0x18] sm:$0xff]  ;;  %v4457_v28 = vld [vmem:[%s6470_s14 + $0x10] sm:$0xff]  ;;  %s6477_s29 = sld [smem:[#allocation3_spill]] }
  0x1a   :  { %3691 = vmatmul.msk.f32.vlgmr.msra.gmra.mxu0 %vm97_vm1, %v84_v3  ;;  %3698 = vmatmul.msk.f32.vlgmr.msra.gmra.mxu1 %vm160_vm3, %v4378_v2  ;;  %v4463_v29 = vld [vmem:[%s6470_s14 + $0x8] sm:$0xff]  ;;  %v4469_v30 = vld [vmem:[%s6470_s14] sm:$0xff]  ;;  %v384_v37 = vld [vmem:[%s6471_s30 + $0x10] sm:$0xff]  ;;  %s6449_s14 = smov 96   ;;  %s6481_s5 = sld [smem:[#allocation14_spill]] }
  0x1b   :  { %419 = vmatpush.msrb.mxu2 %v4451_v26  ;;  %v382_v31 = vld [vmem:[%s6471_s30] sm:$0xff]  ;;  %v383_v34 = vld [vmem:[%s6471_s30 + $0x8] sm:$0xff]  ;;  %v262_v38 = vld [vmem:[%s6472_s25 + $0x10] sm:$0xff]  ;;  %499 = vmatpush.msrb.mxu0 %v467_v55 }
  0x1c   :  { %v260_v32 = vld [vmem:[%s6472_s25] sm:$0xff]  ;;  %v261_v35 = vld [vmem:[%s6472_s25 + $0x8] sm:$0xff]  ;;  %v385_v44 = vld [vmem:[%s6471_s30 + $0x18] sm:$0xff] }
  0x1d   :  { %420 = vmatpush.msrb.mxu2 %v4457_v28  ;;  %v4194_v39 = vld [vmem:[%s6473_s7] ss:$0 sm:$0xff]  ;;  %v263_v45 = vld [vmem:[%s6472_s25 + $0x18] sm:$0xff]  ;;  %v267_v52 = vld [vmem:[%s6474_s26 + $0x8] sm:$0xff]  ;;  %500 = vmatpush.msrb.mxu0 %v466_v56 }
  0x1e   :  { %v266_v49 = vld [vmem:[%s6474_s26] sm:$0xff]  ;;  %v387_v53 = vld [vmem:[%s6471_s30 + $0x28] sm:$0xff]  ;;  %v268_v59 = vld [vmem:[%s6474_s26 + $0x10] sm:$0xff] }
  0x1f   :  { %421 = vmatpush.msrb.mxu2 %v4463_v29  ;;  %v386_v50 = vld [vmem:[%s6471_s30 + $0x20] sm:$0xff]  ;;  %v265_v54 = vld [vmem:[%s6472_s25 + $0x28] sm:$0xff]  ;;  %501 = vmatpush.msrb.mxu0 %v465_v57  ;;  %v269_v60 = vld [vmem:[%s6474_s26 + $0x18] sm:$0xff] }
  0x20   :  { %v264_v51 = vld [vmem:[%s6472_s25 + $0x20] sm:$0xff]  ;;  %v271_v62 = vld [vmem:[%s6474_s26 + $0x28] sm:$0xff]  ;;  %v462_v3 = vld [vmem:[%s6417_s18 + $0x10] sm:$0xff] }
  0x21   :  { %422 = vmatpush.msrb.mxu2 %v4469_v30  ;;  %502 = vmatpush.msrb.mxu0 %v464_v58  ;;  %v270_v61 = vld [vmem:[%s6474_s26 + $0x20] sm:$0xff]  ;;  %v453_v56 = vld [vmem:[%s6419_s15 + $0x28] sm:$0xff] }
  0x22   :  { %3692 = vmatmul.msk.f32.gmra.mxu0 %vm97_vm1, %v85_v4  ;;  %3699 = vmatmul.msk.f32.gmra.mxu1 %vm160_vm3, %v4371_v1  ;;  %v461_v4 = vld [vmem:[%s6417_s18 + $0x8] sm:$0xff] }
  0x23   :  { %503 = vmatpush.msrb.mxu0 %v463_v63 }
  0x25   :  { %504 = vmatpush.msrb.mxu0 %v462_v3 }
  0x27   :  { %505 = vmatpush.msrb.mxu0 %v461_v4 }
  0x2a   :  { %3693 = vmatmul.msk.f32.gmra.mxu0 %vm97_vm1, %v86_v5  ;;  %3700 = vmatmul.msk.f32.gmra.mxu1 %vm160_vm3, %v4366_v0  ;;  %v460_v5 = vld [vmem:[%s6417_s18] sm:$0xff] }
  0x2b   :  { %506 = vmatpush.msrb.mxu0 %v460_v5 }
  0x32   :  { %3694 = vmatmul.msk.f32.gmra.mxu0 %vm97_vm1, %v87_v6 }
  0x3a   :  { %3695 = vmatmul.msk.f32.gmra.mxu0 %vm97_vm1, %v88_v7 }
  0x42   :  { %3696 = vmatmul.msk.f32.gmra.mxu0 %vm97_vm1, %v89_v8 }
  0x97   :  { %v4418_v11 = vpop.f32.mrf.mxu0  ;;  %v190_v17 = vpop.f32.mrf.mxu1 }
  0x98   :  { %3702 = vmatmul.msk.f32.vlgmr.msra.gmra.mxu2 %vm160_vm3, %v4418_v11  ;;  %v191_v24 = vadd.f32 %v4193_v19, %v190_v17 }
  0x9f   :  { %v4424_v12 = vpop.f32.mrf.mxu0  ;;  %v193_v18 = vpop.f32.mrf.mxu1 }
  0xa0   :  { %3703 = vmatmul.msk.f32.gmra.mxu2 %vm160_vm3, %v4424_v12  ;;  %v194_v23 = vadd.f32 %v4193_v19, %v193_v18  ;;  %v448_v18 = vld [vmem:[%s6419_s15] sm:$0xff] }
  0xa7   :  { %v4428_v13 = vpop.f32.mrf.mxu0  ;;  %v196_v20 = vpop.f32.mrf.mxu1 }
  0xa8   :  { %3704 = vmatmul.msk.f32.gmra.mxu2 %vm160_vm3, %v4428_v13  ;;  %v197_v21 = vadd.f32 %v4193_v19, %v196_v20 }
  0xaa   :  { %3714 = vmatpush.msk.msrb.mxu1 %vm116_vm0, %v197_v21 }
  0xac   :  { %361 = vmatpush.msrb.mxu1 %v194_v23 }
  0xae   :  { %362 = vmatpush.msrb.mxu1 %v191_v24  ;;  %v449_v24 = vld [vmem:[%s6419_s15 + $0x8] sm:$0xff] }
  0xaf   :  { %v4432_v14 = vpop.f32.mrf.mxu0  ;;  %3715 = vmatmul.msk.f32.vlgmr.msrb.gmra.mxu1 %vm97_vm1, %v260_v32  ;;  %v3739_v32 = vld [vmem:[%s6467_s12 + $0x4] sm:$0x7] }
  0xb0   :  { %3705 = vmatmul.msk.f32.gmra.mxu2 %vm160_vm3, %v4432_v14  ;;  %3741 = vmatpush.msk.msra.mxu1 %vm169_vm2, %v3739_v32  ;;  %v3748_v32 = vld [vmem:[%s6472_s25 + $0x30] sm:$0xff] }
  0xb7   :  { %v4436_v15 = vpop.f32.mrf.mxu0  ;;  %3716 = vmatmul.msk.f32.gmra.mxu1 %vm97_vm1, %v261_v35  ;;  %v450_v35 = vld [vmem:[%s6419_s15 + $0x10] sm:$0xff] }
  0xb8   :  { %3706 = vmatmul.msk.f32.gmra.mxu2 %vm160_vm3, %v4436_v15 }
  0xbf   :  { %v4440_v16 = vpop.f32.mrf.mxu0  ;;  %3717 = vmatmul.msk.f32.gmra.mxu1 %vm97_vm1, %v262_v38 }
  0xc0   :  { %3707 = vmatmul.msk.f32.gmra.mxu2 %vm160_vm3, %v4440_v16 }
  0xc7   :  { %3718 = vmatmul.msk.f32.gmra.mxu1 %vm97_vm1, %v263_v45 }
  0xc8   :  { %3721 = vmatmul.msk.f32.vlgmr.msrb.gmra.mxu2 %vm388_vm4, %v382_v31 }
  0xcf   :  { %3719 = vmatmul.msk.f32.gmra.mxu1 %vm97_vm1, %v264_v51 }
  0xd0   :  { %3722 = vmatmul.msk.f32.gmra.mxu2 %vm388_vm4, %v383_v34 }
  0xd7   :  { %3720 = vmatmul.msk.f32.gmra.mxu1 %vm97_vm1, %v265_v54 }
  0xd8   :  { %3723 = vmatmul.msk.f32.gmra.mxu2 %vm388_vm4, %v384_v37 }
  0xe0   :  { %3724 = vmatmul.msk.f32.gmra.mxu2 %vm388_vm4, %v385_v44 }
  0xe8   :  { %3725 = vmatmul.msk.f32.gmra.mxu2 %vm388_vm4, %v386_v50 }
  0xf0   :  { %3726 = vmatmul.msk.f32.gmra.mxu2 %vm388_vm4, %v387_v53 }
 0x11b   :  { %v242_v22 = vpop.f32.mrf.mxu2 }
 0x11c   :  { %v243_v48 = vadd.f32 %v4194_v39, %v242_v22 }
 0x123   :  { %v245_v25 = vpop.f32.mrf.mxu2 }
 0x124   :  { %v246_v47 = vadd.f32 %v4194_v39, %v245_v25 }
 0x12b   :  { %v248_v27 = vpop.f32.mrf.mxu2 }
 0x12c   :  { %v249_v46 = vadd.f32 %v4194_v39, %v248_v27  ;;  %v364_v6 = vpop.f32.mrf.mxu1 }
 0x133   :  { %v251_v33 = vpop.f32.mrf.mxu2 }
 0x134   :  { %v252_v43 = vadd.f32 %v4194_v39, %v251_v33  ;;  %v367_v8 = vpop.f32.mrf.mxu1 }
 0x13b   :  { %v254_v36 = vpop.f32.mrf.mxu2 }
 0x13c   :  { %v255_v42 = vadd.f32 %v4194_v39, %v254_v36  ;;  %v370_v22 = vpop.f32.mrf.mxu1 }
 0x143   :  { %v257_v40 = vpop.f32.mrf.mxu2 }
 0x144   :  { %v258_v41 = vadd.f32 %v4194_v39, %v257_v40  ;;  %v373_v36 = vpop.f32.mrf.mxu1 }
 0x146   :  { %301 = vmatpush.msra.mxu3 %v258_v41 }
 0x148   :  { %302 = vmatpush.msra.mxu3 %v255_v42  ;;  %v451_v42 = vld [vmem:[%s6419_s15 + $0x18] sm:$0xff] }
 0x14a   :  { %303 = vmatpush.msra.mxu3 %v252_v43 }
 0x14b   :  { %v424_v7 = vpop.f32.mrf.mxu2 }
 0x14c   :  { %304 = vmatpush.msra.mxu3 %v249_v46  ;;  %v376_v44 = vpop.f32.mrf.mxu1 }
 0x14e   :  { %305 = vmatpush.msra.mxu3 %v246_v47 }
 0x150   :  { %306 = vmatpush.msra.mxu3 %v243_v48 }
 0x151   :  { %3708 = vmatmul.msk.f32.vlgmr.msra.gmra.mxu3 %vm272_vm5, %v266_v49  ;;  %v452_v49 = vld [vmem:[%s6419_s15 + $0x20] sm:$0xff] }
 0x153   :  { %v427_v10 = vpop.f32.mrf.mxu2 }
 0x159   :  { %3709 = vmatmul.msk.f32.gmra.mxu3 %vm272_vm5, %v267_v52  ;;  %v379_v52 = vpop.f32.mrf.mxu1 }
 0x15b   :  { %v430_v25 = vpop.f32.mrf.mxu2 }
 0x161   :  { %3710 = vmatmul.msk.f32.gmra.mxu3 %vm272_vm5, %v268_v59  ;;  %v3733_v59 = vld [vmem:[%s6468_s13 + $0x4] sm:$0x7] }
 0x162   :  { %4189 = vmatpush.msk.msrb.mxu3 %vm169_vm2, %v3733_v59  ;;  %3735 = vmatpush.msk.msra.mxu0 %vm169_vm2, %v3733_v59  ;;  %v3756_v59 = vld [vmem:[%s6474_s26 + $0x40] sm:$0xff] }
 0x163   :  { %v433_v38 = vpop.f32.mrf.mxu2 }
 0x169   :  { %3711 = vmatmul.msk.f32.gmra.mxu3 %vm272_vm5, %v269_v60  ;;  %v4195_v60 = vld [vmem:[%s6418_s19] ss:$0 sm:$0xff] }
 0x16b   :  { %v436_v46 = vpop.f32.mrf.mxu2 }
 0x171   :  { %3712 = vmatmul.msk.f32.gmra.mxu3 %vm272_vm5, %v270_v61 }
 0x173   :  { %v439_v54 = vpop.f32.mrf.mxu2 }
 0x179   :  { %3713 = vmatmul.msk.f32.gmra.mxu3 %vm272_vm5, %v271_v62 }
 0x181   :  { %3737 = vmatmul.msk.f32.vlgmr.msrb.gmra.mxu3 %vm160_vm3, %v4371_v1 }
 0x189   :  { %3738 = vmatmul.msk.f32.gmra.mxu3 %vm160_vm3, %v4366_v0 }
 0x1d4   :  { %v308_v9 = vpop.f32.mrf.mxu3 }
 0x1d5   :  { %v365_v17 = vadd.f32 %v364_v6, %v308_v9 }
 0x1d7   :  { %v442_v19 = vadd.f32 %v424_v7, %v365_v17 }
 0x1d9   :  { %v454_v20 = vadd.f32 %v448_v18, %v442_v19 }
 0x1db   :  { %3727 = vmatmul.msk.f32.vlgmr.msrb.gmra.mxu0 %vm472_vm6, %v454_v20 }
 0x1dc   :  { %v311_v21 = vpop.f32.mrf.mxu3  ;;  %791 = vmatpush.msrb.mxu0 %v4451_v26 }
 0x1dd   :  { %v368_v23 = vadd.f32 %v367_v8, %v311_v21  ;;  %v4197_v21 = vld [vmem:[%s6469_s1 + $0x1] ss:$0 sm:$0xff] }
 0x1de   :  { %792 = vmatpush.msrb.mxu0 %v4457_v28 }
 0x1df   :  { %v443_v27 = vadd.f32 %v427_v10, %v368_v23 }
 0x1e0   :  { %793 = vmatpush.msrb.mxu0 %v4463_v29 }
 0x1e1   :  { %v455_v31 = vadd.f32 %v449_v24, %v443_v27 }
 0x1e2   :  { %794 = vmatpush.msrb.mxu0 %v4469_v30 }
 0x1e3   :  { %3728 = vmatmul.msk.f32.gmra.mxu0 %vm472_vm6, %v455_v31 }
 0x1e4   :  { %v314_v33 = vpop.f32.mrf.mxu3 }
 0x1e5   :  { %v371_v34 = vadd.f32 %v370_v22, %v314_v33 }
 0x1e7   :  { %v444_v37 = vadd.f32 %v430_v25, %v371_v34  ;;  %v3749_v34 = vld [vmem:[%s6472_s25 + $0x38] sm:$0xff] }
 0x1e9   :  { %v456_v39 = vadd.f32 %v450_v35, %v444_v37  ;;  %v3773_v35 = vld [vmem:[%s6471_s30 + $0x30] sm:$0xff]  ;;  %v3750_v37 = vld [vmem:[%s6472_s25 + $0x40] sm:$0xff] }
 0x1eb   :  { %3729 = vmatmul.msk.f32.gmra.mxu0 %vm472_vm6, %v456_v39  ;;  %v4196_v39 = vld [vmem:[%s6473_s7 + $0x1] ss:$0 sm:$0xff] }
 0x1ec   :  { %v317_v40 = vpop.f32.mrf.mxu3 }
 0x1ed   :  { %v374_v41 = vadd.f32 %v373_v36, %v317_v40 }
 0x1ef   :  { %v445_v43 = vadd.f32 %v433_v38, %v374_v41  ;;  %v3774_v38 = vld [vmem:[%s6471_s30 + $0x38] sm:$0xff] }
 0x1f1   :  { %v457_v45 = vadd.f32 %v451_v42, %v445_v43 }
 0x1f3   :  { %3730 = vmatmul.msk.f32.gmra.mxu0 %vm472_vm6, %v457_v45  ;;  %v3775_v45 = vld [vmem:[%s6471_s30 + $0x40] sm:$0xff] }
 0x1f4   :  { %v320_v47 = vpop.f32.mrf.mxu3 }
 0x1f5   :  { %v377_v48 = vadd.f32 %v376_v44, %v320_v47  ;;  %v3751_v44 = vld [vmem:[%s6472_s25 + $0x48] sm:$0xff] }
 0x1f7   :  { %v446_v50 = vadd.f32 %v436_v46, %v377_v48 }
 0x1f9   :  { %v458_v51 = vadd.f32 %v452_v49, %v446_v50  ;;  %v3754_v49 = vld [vmem:[%s6474_s26 + $0x30] sm:$0xff] }
 0x1fa   :  { %v3752_v50 = vld [vmem:[%s6472_s25 + $0x50] sm:$0xff] }
 0x1fb   :  { %3731 = vmatmul.msk.f32.gmra.mxu0 %vm472_vm6, %v458_v51  ;;  %v3776_v51 = vld [vmem:[%s6471_s30 + $0x48] sm:$0xff] }
 0x1fc   :  { %v323_v53 = vpop.f32.mrf.mxu3 }
 0x1fd   :  { %v380_v55 = vadd.f32 %v379_v52, %v323_v53  ;;  %v3755_v52 = vld [vmem:[%s6474_s26 + $0x38] sm:$0xff] }
 0x1fe   :  { %v3753_v53 = vld [vmem:[%s6472_s25 + $0x58] sm:$0xff] }
 0x1ff   :  { %v447_v57 = vadd.f32 %v439_v54, %v380_v55  ;;  %v3777_v54 = vld [vmem:[%s6471_s30 + $0x50] sm:$0xff]  ;;  %v3798_v55 = vld [vmem:[%s6417_s18 + $0x78] sm:$0xff] }
 0x200   :  { %873 = vmatpush.msrb.mxu1 %v3798_v55 }
 0x201   :  { %v459_v58 = vadd.f32 %v453_v56, %v447_v57  ;;  %v3797_v56 = vld [vmem:[%s6417_s18 + $0x70] sm:$0xff]  ;;  %v3796_v57 = vld [vmem:[%s6417_s18 + $0x68] sm:$0xff] }
 0x202   :  { %874 = vmatpush.msrb.mxu1 %v3797_v56 }
 0x203   :  { %3732 = vmatmul.msk.f32.gmra.mxu0 %vm472_vm6, %v459_v58  ;;  %v3795_v58 = vld [vmem:[%s6417_s18 + $0x60] sm:$0xff] }
 0x204   :  { %875 = vmatpush.msrb.mxu1 %v3796_v57  ;;  %v3790_v57 = vld [vmem:[%s6419_s15 + $0x58] sm:$0xff] }
 0x206   :  { %876 = vmatpush.msrb.mxu1 %v3795_v58 }
 0x20b   :  { %3736 = vmatmul.msk.f32.vlgmr.msra.gmra.mxu0 %vm160_vm3, %v4378_v2 }
 0x213   :  { %3779 = vmatmul.msk.f32.vlgmr.msrb.gmra.mxu0 %vm388_vm4, %v3773_v35 }
 0x21b   :  { %3780 = vmatmul.msk.f32.gmra.mxu0 %vm388_vm4, %v3774_v38 }
 0x223   :  { %3781 = vmatmul.msk.f32.gmra.mxu0 %vm388_vm4, %v3775_v45 }
 0x22b   :  { %3782 = vmatmul.msk.f32.gmra.mxu0 %vm388_vm4, %v3776_v51 }
 0x233   :  { %3783 = vmatmul.msk.f32.gmra.mxu0 %vm388_vm4, %v3777_v54 }
 0x258   :  { %v508_v61 = vpop.f32.mrf.mxu0 }
 0x259   :  { %v509_v62 = vadd.f32 %v4195_v60, %v508_v61  ;;  %v3757_v61 = vld [vmem:[%s6474_s26 + $0x48] sm:$0xff] }
 0x25b   :  { %v4618_v63 = vadd.f32 %v509_v62, %v4418_v11  ;;  %v3758_v62 = vld [vmem:[%s6474_s26 + $0x50] sm:$0xff] }
 0x25d   :  { %3742 = vmatmul.msk.f32.vlgmr.msra.gmra.mxu1 %vm160_vm3, %v4618_v63 }
 0x260   :  { %v511_v3 = vpop.f32.mrf.mxu0 }
 0x261   :  { %v512_v4 = vadd.f32 %v4195_v60, %v511_v3  ;;  %v3759_v3 = vld [vmem:[%s6474_s26 + $0x58] sm:$0xff] }
 0x263   :  { %v4623_v5 = vadd.f32 %v512_v4, %v4424_v12  ;;  %v3794_v4 = vld [vmem:[%s6417_s18 + $0x58] sm:$0xff] }
 0x264   :  { %877 = vmatpush.msrb.mxu1 %v3794_v4 }
 0x265   :  { %3743 = vmatmul.msk.f32.gmra.mxu1 %vm160_vm3, %v4623_v5 }
 0x268   :  { %v514_v6 = vpop.f32.mrf.mxu0 }
 0x269   :  { %v515_v7 = vadd.f32 %v4195_v60, %v514_v6  ;;  %v3793_v6 = vld [vmem:[%s6417_s18 + $0x50] sm:$0xff] }
 0x26a   :  { %878 = vmatpush.msrb.mxu1 %v3793_v6 }
 0x26b   :  { %v4628_v8 = vadd.f32 %v515_v7, %v4428_v13  ;;  %v3792_v7 = vld [vmem:[%s6417_s18 + $0x48] sm:$0xff] }
 0x26c   :  { %879 = vmatpush.msrb.mxu1 %v3792_v7 }
 0x26d   :  { %3744 = vmatmul.msk.f32.gmra.mxu1 %vm160_vm3, %v4628_v8 }
 0x270   :  { %v517_v11 = vpop.f32.mrf.mxu0 }
 0x271   :  { %v518_v9 = vadd.f32 %v4195_v60, %v517_v11  ;;  %v3791_v11 = vld [vmem:[%s6417_s18 + $0x40] sm:$0xff] }
 0x272   :  { %880 = vmatpush.msrb.mxu1 %v3791_v11 }
 0x273   :  { %v4633_v10 = vadd.f32 %v518_v9, %v4432_v14  ;;  %v562_v14 = vpop.f32.mrf.mxu3 }
 0x274   :  { %v563_v23 = vadd.f32 %v4197_v21, %v562_v14  ;;  %1165 = vmatpush.msra.mxu1 %v4451_v26 }
 0x275   :  { %3745 = vmatmul.msk.f32.gmra.mxu1 %vm160_vm3, %v4633_v10 }
 0x276   :  { %1166 = vmatpush.msra.mxu1 %v4457_v28 }
 0x278   :  { %v520_v12 = vpop.f32.mrf.mxu0  ;;  %1167 = vmatpush.msra.mxu1 %v4463_v29 }
 0x279   :  { %v521_v17 = vadd.f32 %v4195_v60, %v520_v12 }
 0x27a   :  { %1168 = vmatpush.msra.mxu1 %v4469_v30 }
 0x27b   :  { %v4638_v18 = vadd.f32 %v521_v17, %v4436_v15  ;;  %v565_v22 = vpop.f32.mrf.mxu3 }
 0x27c   :  { %v566_v15 = vadd.f32 %v4197_v21, %v565_v22 }
 0x27d   :  { %3746 = vmatmul.msk.f32.gmra.mxu1 %vm160_vm3, %v4638_v18 }
 0x27e   :  { %3766 = vmatpush.msk.msra.mxu2 %vm116_vm0, %v566_v15 }
 0x280   :  { %v523_v13 = vpop.f32.mrf.mxu0  ;;  %733 = vmatpush.msra.mxu2 %v563_v23 }
 0x281   :  { %v524_v19 = vadd.f32 %v4195_v60, %v523_v13  ;;  %v3778_v60 = vld [vmem:[%s6471_s30 + $0x58] sm:$0xff] }
 0x282   :  { %3784 = vmatmul.msk.f32.gmra.mxu0 %vm388_vm4, %v3778_v60  ;;  %v3806_v60 = vld [vmem:[%s6468_s13 + $0x8] sm:$0x7] }
 0x283   :  { %v4643_v20 = vadd.f32 %v524_v19, %v4440_v16 }
 0x285   :  { %3747 = vmatmul.msk.f32.gmra.mxu1 %vm160_vm3, %v4643_v20 }
 0x288   :  { %v559_v31 = vpop.f32.mrf.mxu0 }
 0x289   :  { %v560_v16 = vadd.f32 %v4197_v21, %v559_v31  ;;  %v3785_v21 = vld [vmem:[%s6419_s15 + $0x30] sm:$0xff] }
 0x28b   :  { %734 = vmatpush.msra.mxu2 %v560_v16 }
 0x28c   :  { %3767 = vmatmul.msk.f32.vlgmr.msra.gmra.mxu2 %vm97_vm1, %v3748_v32 }
 0x290   :  { %v796_v12 = vpop.f32.mrf.mxu0 }
 0x294   :  { %3768 = vmatmul.msk.f32.gmra.mxu2 %vm97_vm1, %v3749_v34 }
 0x298   :  { %v799_v19 = vpop.f32.mrf.mxu0 }
 0x29c   :  { %3769 = vmatmul.msk.f32.gmra.mxu2 %vm97_vm1, %v3750_v37 }
 0x2a0   :  { %v802_v31 = vpop.f32.mrf.mxu0 }
 0x2a4   :  { %3770 = vmatmul.msk.f32.gmra.mxu2 %vm97_vm1, %v3751_v44 }
 0x2ac   :  { %3771 = vmatmul.msk.f32.gmra.mxu2 %vm97_vm1, %v3752_v50  ;;  %v3789_v50 = vld [vmem:[%s6419_s15 + $0x50] sm:$0xff] }
 0x2b4   :  { %3772 = vmatmul.msk.f32.gmra.mxu2 %vm97_vm1, %v3753_v53 }
 0x2da   :  { %v613_v24 = vpop.f32.mrf.mxu1 }
 0x2db   :  { %v614_v48 = vadd.f32 %v4196_v39, %v613_v24 }
 0x2e2   :  { %v616_v25 = vpop.f32.mrf.mxu1 }
 0x2e3   :  { %v617_v47 = vadd.f32 %v4196_v39, %v616_v25 }
 0x2ea   :  { %v619_v27 = vpop.f32.mrf.mxu1 }
 0x2eb   :  { %v620_v46 = vadd.f32 %v4196_v39, %v619_v27  ;;  %v3786_v27 = vld [vmem:[%s6419_s15 + $0x38] sm:$0xff] }
 0x2f2   :  { %v622_v33 = vpop.f32.mrf.mxu1 }
 0x2f3   :  { %v623_v43 = vadd.f32 %v4196_v39, %v622_v33  ;;  %v3812_v33 = vld [vmem:[%s6467_s12 + $0x8] sm:$0x7] }
 0x2f4   :  { %3814 = vmatpush.msk.msrb.mxu2 %vm169_vm2, %v3812_v33  ;;  %v3824_v33 = vld [vmem:[%s6472_s25 + $0x78] sm:$0xff] }
 0x2fa   :  { %v625_v36 = vpop.f32.mrf.mxu1 }
 0x2fb   :  { %v626_v42 = vadd.f32 %v4196_v39, %v625_v36  ;;  %v3787_v36 = vld [vmem:[%s6419_s15 + $0x40] sm:$0xff] }
 0x302   :  { %v628_v40 = vpop.f32.mrf.mxu1 }
 0x303   :  { %v629_v41 = vadd.f32 %v4196_v39, %v628_v40  ;;  %v805_v39 = vpop.f32.mrf.mxu0 }
 0x305   :  { %673 = vmatpush.msra.mxu3 %v629_v41 }
 0x307   :  { %674 = vmatpush.msra.mxu3 %v626_v42 }
 0x309   :  { %675 = vmatpush.msra.mxu3 %v623_v43  ;;  %v3788_v43 = vld [vmem:[%s6419_s15 + $0x48] sm:$0xff] }
 0x30b   :  { %676 = vmatpush.msra.mxu3 %v620_v46 }
 0x30d   :  { %677 = vmatpush.msra.mxu3 %v617_v47  ;;  %v808_v47 = vpop.f32.mrf.mxu0 }
 0x30f   :  { %678 = vmatpush.msra.mxu3 %v614_v48  ;;  %v736_v9 = vpop.f32.mrf.mxu2 }
 0x310   :  { %3760 = vmatmul.msk.f32.vlgmr.msra.gmra.mxu3 %vm272_vm5, %v3754_v49 }
 0x311   :  { %3808 = vmatpush.msk.msrb.mxu3 %vm169_vm2, %v3806_v60  ;;  %v3908_v60 = vld [vmem:[%s6417_s18 + $0xb0] sm:$0xff] }
 0x315   :  { %v811_v55 = vpop.f32.mrf.mxu0 }
 0x317   :  { %v739_v17 = vpop.f32.mrf.mxu2 }
 0x318   :  { %3761 = vmatmul.msk.f32.gmra.mxu3 %vm272_vm5, %v3755_v52 }
 0x31f   :  { %v742_v24 = vpop.f32.mrf.mxu2 }
 0x320   :  { %3762 = vmatmul.msk.f32.gmra.mxu3 %vm272_vm5, %v3756_v59 }
 0x327   :  { %v745_v37 = vpop.f32.mrf.mxu2 }
 0x328   :  { %3763 = vmatmul.msk.f32.gmra.mxu3 %vm272_vm5, %v3757_v61  ;;  %v4198_v61 = vld [vmem:[%s6418_s19 + $0x1] ss:$0 sm:$0xff] }
 0x32f   :  { %v748_v45 = vpop.f32.mrf.mxu2 }
 0x330   :  { %3764 = vmatmul.msk.f32.gmra.mxu3 %vm272_vm5, %v3758_v62 }
 0x337   :  { %v751_v53 = vpop.f32.mrf.mxu2 }
 0x338   :  { %3765 = vmatmul.msk.f32.gmra.mxu3 %vm272_vm5, %v3759_v3 }
 0x340   :  { %3809 = vmatmul.msk.f32.vlgmr.msrb.gmra.mxu3 %vm160_vm3, %v4378_v2 }
 0x348   :  { %3810 = vmatmul.msk.f32.gmra.mxu3 %vm160_vm3, %v4371_v1 }
 0x350   :  { %3811 = vmatmul.msk.f32.gmra.mxu3 %vm160_vm3, %v4366_v0 }
 0x393   :  { %v680_v13 = vpop.f32.mrf.mxu3 }
 0x394   :  { %v737_v14 = vadd.f32 %v736_v9, %v680_v13 }
 0x396   :  { %v814_v22 = vadd.f32 %v796_v12, %v737_v14 }
 0x398   :  { %v827_v23 = vadd.f32 %v3785_v21, %v814_v22  ;;  %v4200_v22 = vld [vmem:[%s6469_s1 + $0x2] ss:$0 sm:$0xff] }
 0x39a   :  { %3800 = vmatmul.msk.f32.vlgmr.msrb.gmra.mxu1 %vm472_vm6, %v827_v23 }
 0x39b   :  { %v683_v15 = vpop.f32.mrf.mxu3 }
 0x39c   :  { %v740_v25 = vadd.f32 %v739_v17, %v683_v15 }
 0x39e   :  { %v815_v16 = vadd.f32 %v799_v19, %v740_v25 }
 0x3a0   :  { %v828_v32 = vadd.f32 %v3786_v27, %v815_v16  ;;  %v3821_v27 = vld [vmem:[%s6472_s25 + $0x60] sm:$0xff]  ;;  %v3822_v16 = vld [vmem:[%s6472_s25 + $0x68] sm:$0xff] }
 0x3a2   :  { %3801 = vmatmul.msk.f32.gmra.mxu1 %vm472_vm6, %v828_v32 }
 0x3a3   :  { %v686_v34 = vpop.f32.mrf.mxu3 }
 0x3a4   :  { %v743_v35 = vadd.f32 %v742_v24, %v686_v34  ;;  %v3848_v34 = vld [vmem:[%s6471_s30 + $0x70] sm:$0xff] }
 0x3a6   :  { %v816_v38 = vadd.f32 %v802_v31, %v743_v35  ;;  %v4199_v35 = vld [vmem:[%s6473_s7 + $0x2] ss:$0 sm:$0xff] }
 0x3a8   :  { %v829_v40 = vadd.f32 %v3787_v36, %v816_v38 }
 0x3aa   :  { %3802 = vmatmul.msk.f32.gmra.mxu1 %vm472_vm6, %v829_v40  ;;  %v3825_v40 = vld [vmem:[%s6472_s25 + $0x80] sm:$0xff] }
 0x3ab   :  { %v689_v41 = vpop.f32.mrf.mxu3 }
 0x3ac   :  { %v746_v42 = vadd.f32 %v745_v37, %v689_v41  ;;  %v3849_v41 = vld [vmem:[%s6471_s30 + $0x78] sm:$0xff] }
 0x3ae   :  { %v817_v44 = vadd.f32 %v805_v39, %v746_v42 }
 0x3b0   :  { %v830_v46 = vadd.f32 %v3788_v43, %v817_v44 }
 0x3b2   :  { %3803 = vmatmul.msk.f32.gmra.mxu1 %vm472_vm6, %v830_v46  ;;  %v3826_v46 = vld [vmem:[%s6472_s25 + $0x88] sm:$0xff] }
 0x3b3   :  { %v692_v48 = vpop.f32.mrf.mxu3 }
 0x3b4   :  { %v749_v49 = vadd.f32 %v748_v45, %v692_v48  ;;  %v3827_v45 = vld [vmem:[%s6474_s26 + $0x60] sm:$0xff]  ;;  %v3828_v48 = vld [vmem:[%s6474_s26 + $0x68] sm:$0xff] }
 0x3b6   :  { %v818_v51 = vadd.f32 %v808_v47, %v749_v49  ;;  %v3850_v47 = vld [vmem:[%s6471_s30 + $0x80] sm:$0xff]  ;;  %v3851_v49 = vld [vmem:[%s6471_s30 + $0x88] sm:$0xff] }
 0x3b8   :  { %v831_v52 = vadd.f32 %v3789_v50, %v818_v51  ;;  %v3867_v50 = vld [vmem:[%s6420_s9 + $0x30] sm:$0xff] }
 0x3b9   :  { %v3877_v51 = vld [vmem:[%s6421_s10 + $0x30] sm:$0xff] }
 0x3ba   :  { %3804 = vmatmul.msk.f32.gmra.mxu1 %vm472_vm6, %v831_v52  ;;  %v3829_v52 = vld [vmem:[%s6474_s26 + $0x70] sm:$0xff] }
 0x3bb   :  { %v695_v54 = vpop.f32.mrf.mxu3 }
 0x3bc   :  { %v752_v56 = vadd.f32 %v751_v53, %v695_v54  ;;  %v3868_v53 = vld [vmem:[%s6420_s9 + $0x38] sm:$0xff] }
 0x3bd   :  { %v3878_v54 = vld [vmem:[%s6421_s10 + $0x38] sm:$0xff] }
 0x3be   :  { %v819_v58 = vadd.f32 %v811_v55, %v752_v56  ;;  %v3830_v55 = vld [vmem:[%s6474_s26 + $0x78] sm:$0xff]  ;;  %v3869_v56 = vld [vmem:[%s6420_s9 + $0x40] sm:$0x1] }
 0x3c0   :  { %v832_v59 = vadd.f32 %v3790_v57, %v819_v58  ;;  %v3879_v57 = vld [vmem:[%s6421_s10 + $0x40] sm:$0x1] }
 0x3c1   :  { %v3831_v58 = vld [vmem:[%s6474_s26 + $0x80] sm:$0xff] }
 0x3c2   :  { %3805 = vmatmul.msk.f32.gmra.mxu1 %vm472_vm6, %v832_v59  ;;  %v3909_v59 = vld [vmem:[%s6417_s18 + $0xb8] sm:$0xff] }
 0x417   :  { %v882_v62 = vpop.f32.mrf.mxu1 }
 0x418   :  { %v883_v3 = vadd.f32 %v4198_v61, %v882_v62  ;;  %v3906_v62 = vld [vmem:[%s6417_s18 + $0xa0] sm:$0xff] }
 0x41a   :  { %v4796_v4 = vadd.f32 %v883_v3, %v4618_v63  ;;  %v3832_v3 = vld [vmem:[%s6474_s26 + $0x88] sm:$0xff] }
 0x41c   :  { %3815 = vmatmul.msk.f32.vlgmr.msrb.gmra.mxu2 %vm160_vm3, %v4796_v4 }
 0x41f   :  { %v885_v6 = vpop.f32.mrf.mxu1 }
 0x420   :  { %v886_v2 = vadd.f32 %v4198_v61, %v885_v6  ;;  %v3864_v6 = vld [vmem:[%s6422_s8 + $0x30] sm:$0xff] }
 0x422   :  { %v4801_v7 = vadd.f32 %v886_v2, %v4623_v5  ;;  %v3865_v2 = vld [vmem:[%s6422_s8 + $0x38] sm:$0xff] }
 0x424   :  { %3816 = vmatmul.msk.f32.gmra.mxu2 %vm160_vm3, %v4801_v7 }
 0x427   :  { %v888_v0 = vpop.f32.mrf.mxu1 }
 0x428   :  { %v889_v1 = vadd.f32 %v4198_v61, %v888_v0  ;;  %v3866_v0 = vld [vmem:[%s6422_s8 + $0x40] sm:$0x1] }
 0x42a   :  { %v4806_v11 = vadd.f32 %v889_v1, %v4628_v8  ;;  %v3905_v1 = vld [vmem:[%s6417_s18 + $0x98] sm:$0xff] }
 0x42c   :  { %3817 = vmatmul.msk.f32.gmra.mxu2 %vm160_vm3, %v4806_v11 }
 0x42f   :  { %v891_v63 = vpop.f32.mrf.mxu1 }
 0x430   :  { %v892_v9 = vadd.f32 %v4198_v61, %v891_v63  ;;  %v3904_v63 = vld [vmem:[%s6417_s18 + $0x90] sm:$0xff] }
 0x432   :  { %v4811_v12 = vadd.f32 %v892_v9, %v4633_v10  ;;  %v933_v10 = vpop.f32.mrf.mxu3  ;;  %v3903_v9 = vld [vmem:[%s6417_s18 + $0x88] sm:$0xff] }
 0x433   :  { %v934_v24 = vadd.f32 %v4200_v22, %v933_v10 }
 0x434   :  { %3818 = vmatmul.msk.f32.gmra.mxu2 %vm160_vm3, %v4811_v12 }
 0x437   :  { %v894_v5 = vpop.f32.mrf.mxu1 }
 0x438   :  { %v895_v17 = vadd.f32 %v4198_v61, %v894_v5  ;;  %v3902_v5 = vld [vmem:[%s6417_s18 + $0x80] sm:$0xff] }
 0x43a   :  { %v4816_v13 = vadd.f32 %v895_v17, %v4638_v18  ;;  %v936_v21 = vpop.f32.mrf.mxu3 }
 0x43b   :  { %v937_v18 = vadd.f32 %v4200_v22, %v936_v21 }
 0x43c   :  { %3819 = vmatmul.msk.f32.gmra.mxu2 %vm160_vm3, %v4816_v13 }
 0x43f   :  { %v897_v8 = vpop.f32.mrf.mxu1 }
 0x440   :  { %v898_v19 = vadd.f32 %v4198_v61, %v897_v8  ;;  %v3907_v61 = vld [vmem:[%s6417_s18 + $0xa8] sm:$0xff] }
 0x442   :  { %v4821_v14 = vadd.f32 %v898_v19, %v4643_v20  ;;  %v939_v23 = vpop.f32.mrf.mxu3 }
 0x443   :  { %v940_v15 = vadd.f32 %v4200_v22, %v939_v23  ;;  %v3858_v23 = vld [vmem:[%s6419_s15 + $0x60] sm:$0xff] }
 0x444   :  { %3820 = vmatmul.msk.f32.gmra.mxu2 %vm160_vm3, %v4821_v14 }
 0x445   :  { %3839 = vmatpush.msk.msra.mxu3 %vm116_vm0, %v940_v15 }
 0x447   :  { %1107 = vmatpush.msra.mxu3 %v937_v18 }
 0x449   :  { %1108 = vmatpush.msra.mxu3 %v934_v24 }
 0x44a   :  { %3840 = vmatmul.msk.f32.vlgmr.msra.gmra.mxu3 %vm97_vm1, %v3821_v27  ;;  %v3859_v27 = vld [vmem:[%s6419_s15 + $0x68] sm:$0xff] }
 0x44b   :  { %1310 = vmatpush.msrb.mxu3 %v4451_v26  ;;  %v3846_v26 = vld [vmem:[%s6471_s30 + $0x60] sm:$0xff] }
 0x44c   :  { %3852 = vmatmul.msk.f32.vlgmr.msra.gmra.mxu1 %vm388_vm4, %v3846_v26 }
 0x44d   :  { %1311 = vmatpush.msrb.mxu3 %v4457_v28 }
 0x44f   :  { %1312 = vmatpush.msrb.mxu3 %v4463_v29  ;;  %v3823_v29 = vld [vmem:[%s6472_s25 + $0x70] sm:$0xff] }
 0x451   :  { %1313 = vmatpush.msrb.mxu3 %v4469_v30  ;;  %v3847_v30 = vld [vmem:[%s6471_s30 + $0x68] sm:$0xff] }
 0x452   :  { %3841 = vmatmul.msk.f32.gmra.mxu3 %vm97_vm1, %v3822_v16 }
 0x454   :  { %3853 = vmatmul.msk.f32.gmra.mxu1 %vm388_vm4, %v3847_v30 }
 0x45a   :  { %3842 = vmatmul.msk.f32.gmra.mxu3 %vm97_vm1, %v3823_v29  ;;  %v3892_v29 = vld [vmem:[%s6423_s16 + $0xb0] sm:$0xff] }
 0x45c   :  { %3854 = vmatmul.msk.f32.gmra.mxu1 %vm388_vm4, %v3848_v34  ;;  %v3891_v34 = vld [vmem:[%s6423_s16 + $0xa8] sm:$0xff] }
 0x462   :  { %3843 = vmatmul.msk.f32.gmra.mxu3 %vm97_vm1, %v3824_v33 }
 0x464   :  { %3855 = vmatmul.msk.f32.gmra.mxu1 %vm388_vm4, %v3849_v41  ;;  %v3888_v41 = vld [vmem:[%s6423_s16 + $0x90] sm:$0xff] }
 0x46a   :  { %3844 = vmatmul.msk.f32.gmra.mxu3 %vm97_vm1, %v3825_v40  ;;  %v3889_v40 = vld [vmem:[%s6423_s16 + $0x98] sm:$0xff] }
 0x46c   :  { %3856 = vmatmul.msk.f32.gmra.mxu1 %vm388_vm4, %v3850_v47 }
 0x472   :  { %3845 = vmatmul.msk.f32.gmra.mxu3 %vm97_vm1, %v3826_v46 }
 0x474   :  { %3857 = vmatmul.msk.f32.gmra.mxu1 %vm388_vm4, %v3851_v49 }
 0x47a   :  { %3880 = vmatmul.msk.f32.vlgmr.msrb.gmra.mxu3 %vm388_vm4, %v3877_v51 }
 0x482   :  { %3881 = vmatmul.msk.f32.gmra.mxu3 %vm388_vm4, %v3878_v54 }
 0x48a   :  { %3882 = vmatmul.msk.f32.gmra.mxu3 %vm388_vm4, %v3879_v57 }
 0x49f   :  { %v987_v20 = vpop.f32.mrf.mxu2 }
 0x4a0   :  { %v988_v44 = vadd.f32 %v4199_v35, %v987_v20 }
 0x4a7   :  { %v990_v25 = vpop.f32.mrf.mxu2 }
 0x4a8   :  { %v991_v43 = vadd.f32 %v4199_v35, %v990_v25 }
 0x4af   :  { %v993_v31 = vpop.f32.mrf.mxu2 }
 0x4b0   :  { %v994_v42 = vadd.f32 %v4199_v35, %v993_v31 }
 0x4b7   :  { %v996_v28 = vpop.f32.mrf.mxu2 }
 0x4b8   :  { %v997_v39 = vadd.f32 %v4199_v35, %v996_v28  ;;  %v3893_v28 = vld [vmem:[%s6423_s16 + $0xb8] sm:$0xff] }
 0x4b9   :  { %1365 = vmatpush.msrb.mxu1 %v3893_v28 }
 0x4bb   :  { %1366 = vmatpush.msrb.mxu1 %v3892_v29 }
 0x4bd   :  { %1367 = vmatpush.msrb.mxu1 %v3891_v34 }
 0x4bf   :  { %v999_v32 = vpop.f32.mrf.mxu2 }
 0x4c0   :  { %v1000_v38 = vadd.f32 %v4199_v35, %v999_v32 }
 0x4c7   :  { %v1002_v36 = vpop.f32.mrf.mxu2 }
 0x4c8   :  { %v1003_v37 = vadd.f32 %v4199_v35, %v1002_v36  ;;  %v3860_v35 = vld [vmem:[%s6419_s15 + $0x70] sm:$0xff] }
 0x4c9   :  { %v1170_v8 = vpop.f32.mrf.mxu1 }
 0x4ca   :  { %1047 = vmatpush.msra.mxu0 %v1003_v37  ;;  %1234 = vmatpush.msra.mxu2 %v1003_v37  ;;  %v3890_v37 = vld [vmem:[%s6423_s16 + $0xa0] sm:$0xff] }
 0x4cb   :  { %1368 = vmatpush.msrb.mxu1 %v3890_v37 }
 0x4cc   :  { %1048 = vmatpush.msra.mxu0 %v1000_v38  ;;  %1235 = vmatpush.msra.mxu2 %v1000_v38 }
 0x4cd   :  { %v1110_v17 = vpop.f32.mrf.mxu3  ;;  %1369 = vmatpush.msrb.mxu1 %v3889_v40 }
 0x4ce   :  { %1049 = vmatpush.msra.mxu0 %v997_v39  ;;  %1236 = vmatpush.msra.mxu2 %v997_v39 }
 0x4cf   :  { %1370 = vmatpush.msrb.mxu1 %v3888_v41 }
 0x4d0   :  { %1050 = vmatpush.msra.mxu0 %v994_v42  ;;  %1237 = vmatpush.msra.mxu2 %v994_v42 }
 0x4d1   :  { %v1173_v21 = vpop.f32.mrf.mxu1 }
 0x4d2   :  { %1051 = vmatpush.msra.mxu0 %v991_v43  ;;  %1238 = vmatpush.msra.mxu2 %v991_v43 }
 0x4d4   :  { %1052 = vmatpush.msra.mxu0 %v988_v44  ;;  %1239 = vmatpush.msra.mxu2 %v988_v44  ;;  %v3887_v44 = vld [vmem:[%s6423_s16 + $0x88] sm:$0xff] }
 0x4d5   :  { %3833 = vmatmul.msk.f32.vlgmr.msra.gmra.mxu0 %vm272_vm5, %v3827_v45  ;;  %3870 = vmatmul.msk.f32.vlgmr.msra.gmra.mxu2 %vm272_vm5, %v3867_v50  ;;  %v1113_v19 = vpop.f32.mrf.mxu3  ;;  %v3861_v45 = vld [vmem:[%s6419_s15 + $0x78] sm:$0xff] }
 0x4d6   :  { %3873 = vmatpush.msk.msrb.mxu0 %vm116_vm0, %v940_v15  ;;  %1371 = vmatpush.msrb.mxu1 %v3887_v44 }
 0x4d8   :  { %1273 = vmatpush.msrb.mxu0 %v937_v18 }
 0x4d9   :  { %v1176_v31 = vpop.f32.mrf.mxu1 }
 0x4da   :  { %1274 = vmatpush.msrb.mxu0 %v934_v24 }
 0x4dc   :  { %1460 = vmatpush.msra.mxu0 %v3909_v59 }
 0x4dd   :  { %3834 = vmatmul.msk.f32.gmra.mxu0 %vm272_vm5, %v3828_v48  ;;  %3871 = vmatmul.msk.f32.gmra.mxu2 %vm272_vm5, %v3868_v53  ;;  %v1116_v24 = vpop.f32.mrf.mxu3  ;;  %v3886_v48 = vld [vmem:[%s6423_s16 + $0x80] sm:$0xff] }
 0x4de   :  { %1461 = vmatpush.msra.mxu0 %v3908_v60  ;;  %1372 = vmatpush.msrb.mxu1 %v3886_v48  ;;  %v3862_v53 = vld [vmem:[%s6419_s15 + $0x80] sm:$0xff]  ;;  %v3863_v60 = vld [vmem:[%s6419_s15 + $0x88] sm:$0xff] }
 0x4e0   :  { %1462 = vmatpush.msra.mxu0 %v3907_v61 }
 0x4e1   :  { %v1179_v38 = vpop.f32.mrf.mxu1 }
 0x4e2   :  { %1463 = vmatpush.msra.mxu0 %v3906_v62 }
 0x4e4   :  { %1464 = vmatpush.msra.mxu0 %v3905_v1  ;;  %v3883_v1 = vld [vmem:[%s6424_s11 + $0x30] sm:$0xff] }
 0x4e5   :  { %3835 = vmatmul.msk.f32.gmra.mxu0 %vm272_vm5, %v3829_v52  ;;  %3872 = vmatmul.msk.f32.gmra.mxu2 %vm272_vm5, %v3869_v56  ;;  %v1119_v32 = vpop.f32.mrf.mxu3 }
 0x4e6   :  { %1465 = vmatpush.msra.mxu0 %v3904_v63 }
 0x4e8   :  { %1466 = vmatpush.msra.mxu0 %v3903_v9 }
 0x4e9   :  { %v1182_v50 = vpop.f32.mrf.mxu1 }
 0x4ea   :  { %1467 = vmatpush.msra.mxu0 %v3902_v5 }
 0x4ed   :  { %3836 = vmatmul.msk.f32.gmra.mxu0 %vm272_vm5, %v3830_v55  ;;  %v1122_v46 = vpop.f32.mrf.mxu3 }
 0x4f5   :  { %3837 = vmatmul.msk.f32.gmra.mxu0 %vm272_vm5, %v3831_v58  ;;  %v1125_v55 = vpop.f32.mrf.mxu3  ;;  %v1185_v58 = vpop.f32.mrf.mxu1 }
 0x4fd   :  { %3838 = vmatmul.msk.f32.gmra.mxu0 %vm272_vm5, %v3832_v3  ;;  %v1315_v3 = vpop.f32.mrf.mxu3 }
 0x505   :  { %3874 = vmatmul.msk.f32.vlgmr.msrb.gmra.mxu0 %vm97_vm1, %v3864_v6 }
 0x50d   :  { %3875 = vmatmul.msk.f32.gmra.mxu0 %vm97_vm1, %v3865_v2 }
 0x515   :  { %3876 = vmatmul.msk.f32.gmra.mxu0 %vm97_vm1, %v3866_v0 }
 0x552   :  { %v1054_v10 = vpop.f32.mrf.mxu0 }
 0x553   :  { %v1111_v22 = vadd.f32 %v1110_v17, %v1054_v10  ;;  %v1318_v17 = vpop.f32.mrf.mxu3  ;;  %v3884_v10 = vld [vmem:[%s6424_s11 + $0x38] sm:$0xff] }
 0x555   :  { %v1188_v18 = vadd.f32 %v1170_v8, %v1111_v22 }
 0x557   :  { %v1201_v15 = vadd.f32 %v3858_v23, %v1188_v18 }
 0x558   :  { %v1241_v61 = vpop.f32.mrf.mxu2 }
 0x559   :  { %3911 = vmatmul.msk.f32.vlgmr.msra.gmra.mxu0 %vm472_vm6, %v1201_v15 }
 0x55a   :  { %v1057_v20 = vpop.f32.mrf.mxu0 }
 0x55b   :  { %v1114_v25 = vadd.f32 %v1113_v19, %v1057_v20  ;;  %v1321_v15 = vpop.f32.mrf.mxu3  ;;  %v3885_v20 = vld [vmem:[%s6424_s11 + $0x40] sm:$0x1] }
 0x55d   :  { %v1189_v16 = vadd.f32 %v1173_v21, %v1114_v25 }
 0x55f   :  { %v1202_v26 = vadd.f32 %v3859_v27, %v1189_v16 }
 0x560   :  { %v1244_v9 = vpop.f32.mrf.mxu2 }
 0x561   :  { %3912 = vmatmul.msk.f32.gmra.mxu0 %vm472_vm6, %v1202_v26 }
 0x562   :  { %v1060_v30 = vpop.f32.mrf.mxu0 }
 0x563   :  { %v1117_v33 = vadd.f32 %v1116_v24, %v1060_v30  ;;  %v4201_v30 = vld [vmem:[%s6418_s19 + $0x2] ss:$0 sm:$0xff] }
 0x565   :  { %v1190_v36 = vadd.f32 %v1176_v31, %v1117_v33 }
 0x567   :  { %v1203_v39 = vadd.f32 %v3860_v35, %v1190_v36 }
 0x568   :  { %v1247_v23 = vpop.f32.mrf.mxu2 }
 0x569   :  { %3913 = vmatmul.msk.f32.gmra.mxu0 %vm472_vm6, %v1203_v39 }
 0x56a   :  { %v1063_v42 = vpop.f32.mrf.mxu0 }
 0x56b   :  { %v1120_v43 = vadd.f32 %v1119_v32, %v1063_v42 }
 0x56d   :  { %v1191_v47 = vadd.f32 %v1179_v38, %v1120_v43 }
 0x56f   :  { %v1204_v49 = vadd.f32 %v3861_v45, %v1191_v47 }
 0x571   :  { %3914 = vmatmul.msk.f32.gmra.mxu0 %vm472_vm6, %v1204_v49 }
 0x572   :  { %v1066_v51 = vpop.f32.mrf.mxu0 }
 0x573   :  { %v1123_v52 = vadd.f32 %v1122_v46, %v1066_v51  ;;  %v4217_v51 = vld [vmem:[%s6465_s6] sm:$0xff] }
 0x575   :  { %v1192_v54 = vadd.f32 %v1182_v50, %v1123_v52 }
 0x577   :  { %v1205_v56 = vadd.f32 %v3862_v53, %v1192_v54  ;;  %v5067_v53 = vld [vmem:[%s6426_s3] sm:$0x7] }
 0x579   :  { %3915 = vmatmul.msk.f32.gmra.mxu0 %vm472_vm6, %v1205_v56 }
 0x57a   :  { %v1069_v57 = vpop.f32.mrf.mxu0 }
 0x57b   :  { %v1126_v59 = vadd.f32 %v1125_v55, %v1069_v57  ;;  %v5076_v55 = vld [vmem:[%s6426_s3 + $0x8] sm:$0x7]  ;;  %v1605_v57 = vld [vmem:[%s6428_s20 + $0x78] sm:$0xff] }
 0x57c   :  { %1615 = vmatpush.msra.mxu1 %v1605_v57  ;;  %v1775_v57 = vld [vmem:[%s6430_s22 + $0x220] sm:$0xff] }
 0x57d   :  { %v1193_v62 = vadd.f32 %v1185_v58, %v1126_v59  ;;  %v1604_v58 = vld [vmem:[%s6428_s20 + $0x70] sm:$0xff]  ;;  %v1603_v59 = vld [vmem:[%s6428_s20 + $0x68] sm:$0xff] }
 0x57e   :  { %1616 = vmatpush.msra.mxu1 %v1604_v58  ;;  %v1765_v58 = vld [vmem:[%s6430_s22 + $0x1d0] sm:$0xff] }
 0x57f   :  { %v1206_v6 = vadd.f32 %v3863_v60, %v1193_v62  ;;  %v1607_v60 = vld [vmem:[%s6428_s20 + $0x88] sm:$0xff]  ;;  %v1606_v62 = vld [vmem:[%s6428_s20 + $0x80] sm:$0xff] }
 0x580   :  { %1617 = vmatpush.msra.mxu1 %v1603_v59  ;;  %v1773_v59 = vld [vmem:[%s6430_s22 + $0x210] sm:$0xff] }
 0x581   :  { %3916 = vmatmul.msk.f32.gmra.mxu0 %vm472_vm6, %v1206_v6  ;;  %v1600_v6 = vld [vmem:[%s6428_s20 + $0x50] sm:$0xff] }
 0x582   :  { %v1276_v2 = vpop.f32.mrf.mxu0 }
 0x583   :  { %v1277_v0 = vadd.f32 %v1276_v2, %v1241_v61  ;;  %v1602_v61 = vld [vmem:[%s6428_s20 + $0x60] sm:$0xff]  ;;  %v1599_v2 = vld [vmem:[%s6428_s20 + $0x48] sm:$0xff] }
 0x584   :  { %1618 = vmatpush.msra.mxu1 %v1602_v61  ;;  %v1771_v61 = vld [vmem:[%s6430_s22 + $0x200] sm:$0xff] }
 0x585   :  { %v1324_v63 = vadd.f32 %v1315_v3, %v1277_v0  ;;  %v1601_v3 = vld [vmem:[%s6428_s20 + $0x58] sm:$0xff]  ;;  %v1598_v0 = vld [vmem:[%s6428_s20 + $0x40] sm:$0xff] }
 0x586   :  { %1619 = vmatpush.msra.mxu1 %v1601_v3  ;;  %v1761_v3 = vld [vmem:[%s6430_s22 + $0x1b0] sm:$0xff] }
 0x587   :  { %v1331_v5 = vadd.f32 %v3883_v1, %v1324_v63  ;;  %v1597_v1 = vld [vmem:[%s6428_s20 + $0x38] sm:$0xff] }
 0x588   :  { %1620 = vmatpush.msra.mxu1 %v1600_v6  ;;  %v1768_v6 = vld [vmem:[%s6430_s22 + $0x1e8] sm:$0xff] }
 0x589   :  { %3895 = vmatmul.msk.f32.vlgmr.msrb.gmra.mxu1 %vm472_vm6, %v1331_v5  ;;  %v1595_v5 = vld [vmem:[%s6428_s20 + $0x28] sm:$0xff] }
 0x58a   :  { %v1279_v8 = vpop.f32.mrf.mxu0  ;;  %1621 = vmatpush.msra.mxu1 %v1599_v2  ;;  %v1759_v2 = vld [vmem:[%s6430_s22 + $0x1a0] sm:$0xff] }
 0x58b   :  { %v1280_v19 = vadd.f32 %v1279_v8, %v1244_v9  ;;  %v1596_v9 = vld [vmem:[%s6428_s20 + $0x30] sm:$0xff]  ;;  %v1594_v8 = vld [vmem:[%s6428_s20 + $0x20] sm:$0xff] }
 0x58c   :  { %1622 = vmatpush.msra.mxu1 %v1598_v0  ;;  %v1778_v0 = vld [vmem:[%s6430_s22 + $0x238] sm:$0xff] }
 0x58d   :  { %v1325_v21 = vadd.f32 %v1318_v17, %v1280_v19  ;;  %v1593_v19 = vld [vmem:[%s6428_s20 + $0x18] sm:$0xff] }
 0x58e   :  { %1623 = vmatpush.msra.mxu1 %v1597_v1  ;;  %v1766_v1 = vld [vmem:[%s6430_s22 + $0x1d8] sm:$0xff] }
 0x58f   :  { %v1332_v22 = vadd.f32 %v3884_v10, %v1325_v21  ;;  %v1592_v10 = vld [vmem:[%s6428_s20 + $0x10] sm:$0xff]  ;;  %v1591_v21 = vld [vmem:[%s6428_s20 + $0x8] sm:$0xff] }
 0x590   :  { %1624 = vmatpush.msra.mxu1 %v1596_v9  ;;  %v1757_v9 = vld [vmem:[%s6430_s22 + $0x190] sm:$0xff] }
 0x591   :  { %3896 = vmatmul.msk.f32.gmra.mxu1 %vm472_vm6, %v1332_v22  ;;  %v1590_v22 = vld [vmem:[%s6428_s20] sm:$0xff] }
 0x592   :  { %v1282_v18 = vpop.f32.mrf.mxu0  ;;  %1625 = vmatpush.msra.mxu1 %v1595_v5  ;;  %v1774_v5 = vld [vmem:[%s6430_s22 + $0x218] sm:$0xff] }
 0x593   :  { %v1283_v24 = vadd.f32 %v1282_v18, %v1247_v23 }
 0x594   :  { %1626 = vmatpush.msra.mxu1 %v1594_v8  ;;  %v1755_v8 = vld [vmem:[%s6430_s22 + $0x180] sm:$0xff] }
 0x595   :  { %v1326_v25 = vadd.f32 %v1321_v15, %v1283_v24 }
 0x596   :  { %1627 = vmatpush.msra.mxu1 %v1593_v19  ;;  %v1772_v19 = vld [vmem:[%s6430_s22 + $0x208] sm:$0xff] }
 0x597   :  { %v1333_v27 = vadd.f32 %v3885_v20, %v1326_v25  ;;  %v1737_v20 = vld [vmem:[%s6430_s22 + $0xf0] sm:$0xff]  ;;  %v1738_v25 = vld [vmem:[%s6430_s22 + $0xf8] sm:$0xff] }
 0x598   :  { %1628 = vmatpush.msra.mxu1 %v1592_v10  ;;  %1787 = vmatpush.msrb.mxu0 %v1737_v20  ;;  %v1762_v10 = vld [vmem:[%s6430_s22 + $0x1b8] sm:$0xff]  ;;  %v1747_v20 = vld [vmem:[%s6430_s22 + $0x140] sm:$0xff] }
 0x599   :  { %3897 = vmatmul.msk.f32.gmra.mxu1 %vm472_vm6, %v1333_v27  ;;  %v1735_v27 = vld [vmem:[%s6430_s22 + $0xe0] sm:$0xff] }
 0x59a   :  { %1629 = vmatpush.msra.mxu1 %v1591_v21  ;;  %1788 = vmatpush.msrb.mxu0 %v1735_v27  ;;  %v1753_v21 = vld [vmem:[%s6430_s22 + $0x170] sm:$0xff] }
 0x59b   :  { %v1745_v27 = vld [vmem:[%s6430_s22 + $0x130] sm:$0xff] }
 0x59c   :  { %1630 = vmatpush.msra.mxu1 %v1590_v22  ;;  %v1760_v22 = vld [vmem:[%s6430_s22 + $0x1a8] sm:$0xff] }
 0x59e   :  { %1847 = vmatpush.msrb.mxu1 %v1738_v25  ;;  %v1754_v25 = vld [vmem:[%s6430_s22 + $0x178] sm:$0xff] }
 0x5d6   :  { %v1469_v31 = vpop.f32.mrf.mxu0 }
 0x5de   :  { %v1472_v16 = vpop.f32.mrf.mxu0 }
 0x5df   :  { %v1473_v41 = vadd.f32 %v4201_v30, %v1472_v16  ;;  %v1733_v16 = vld [vmem:[%s6430_s22 + $0xd0] sm:$0xff] }
 0x5e0   :  { %1789 = vmatpush.msrb.mxu0 %v1733_v16  ;;  %v1743_v16 = vld [vmem:[%s6430_s22 + $0x120] sm:$0xff] }
 0x5e1   :  { %v1488_v44 = vadd.f32 %v1473_v41, %v4801_v7  ;;  %v4215_v7 = vld [vmem:[%s6465_s6 + $0x10] sm:$0x1]  ;;  %v1726_v41 = vld [vmem:[%s6430_s22 + $0x98] sm:$0xff] }
 0x5e6   :  { %v1475_v26 = vpop.f32.mrf.mxu0 }
 0x5e7   :  { %v1476_v39 = vadd.f32 %v4201_v30, %v1475_v26  ;;  %v1734_v26 = vld [vmem:[%s6430_s22 + $0xd8] sm:$0xff] }
 0x5e9   :  { %v1489_v42 = vadd.f32 %v1476_v39, %v4806_v11  ;;  %v3688_v11 = vld [vmem:[%s6426_s3 + $0x4] sm:$0x7] }
 0x5ee   :  { %v1478_v28 = vpop.f32.mrf.mxu0 }
 0x5ef   :  { %v1479_v36 = vadd.f32 %v4201_v30, %v1478_v28  ;;  %v1731_v28 = vld [vmem:[%s6430_s22 + $0xc0] sm:$0xff] }
 0x5f0   :  { %1790 = vmatpush.msrb.mxu0 %v1731_v28  ;;  %v1741_v28 = vld [vmem:[%s6430_s22 + $0x110] sm:$0xff] }
 0x5f1   :  { %v1490_v40 = vadd.f32 %v1479_v36, %v4811_v12 }
 0x5f6   :  { %v1481_v29 = vpop.f32.mrf.mxu0 }
 0x5f7   :  { %v1482_v34 = vadd.f32 %v4201_v30, %v1481_v29  ;;  %v1732_v29 = vld [vmem:[%s6430_s22 + $0xc8] sm:$0xff] }
 0x5f9   :  { %v1491_v37 = vadd.f32 %v1482_v34, %v4816_v13  ;;  %v4202_v13 = vld [vmem:[%s6425_s17 + $0x2] ss:$0 sm:$0xff]  ;;  %v1728_v34 = vld [vmem:[%s6430_s22 + $0xa8] sm:$0xff] }
 0x5fe   :  { %v1484_v32 = vpop.f32.mrf.mxu0 }
 0x5ff   :  { %v1485_v33 = vadd.f32 %v4201_v30, %v1484_v32  ;;  %v1730_v32 = vld [vmem:[%s6430_s22 + $0xb8] sm:$0xff] }
 0x601   :  { %v1492_v35 = vadd.f32 %v1485_v33, %v4821_v14  ;;  %v1470_v14 = vadd.f32 %v4201_v30, %v1469_v31  ;;  %v1736_v31 = vld [vmem:[%s6430_s22 + $0xe8] sm:$0xff]  ;;  %v1729_v30 = vld [vmem:[%s6430_s22 + $0xb0] sm:$0xff]  ;;  %v1727_v33 = vld [vmem:[%s6430_s22 + $0xa0] sm:$0xff] }
 0x602   :  { %1848 = vmatpush.msrb.mxu1 %v1736_v31  ;;  %1791 = vmatpush.msrb.mxu0 %v1729_v30  ;;  %v1752_v31 = vld [vmem:[%s6430_s22 + $0x168] sm:$0xff] }
 0x603   :  { %3917 = vmatpush.xpose.msk.msra.mxu3 %vm160_vm3, %v1492_v35  ;;  %v1487_v45 = vadd.f32 %v1470_v14, %v4796_v4  ;;  %v4216_v4 = vld [vmem:[%s6465_s6 + $0x8] sm:$0xff]  ;;  %v4203_v35 = vld [vmem:[%s6475_s27] ss:$0 sm:$0xff]  ;;  %v1721_v14 = vld [vmem:[%s6430_s22 + $0x70] sm:$0xff] }
 0x604   :  { %1849 = vmatpush.msrb.mxu1 %v1734_v26  ;;  %1792 = vmatpush.msrb.mxu0 %v1727_v33  ;;  %v1750_v26 = vld [vmem:[%s6430_s22 + $0x158] sm:$0xff] }
 0x606   :  { %v1374_v38 = vpop.f32.mrf.mxu1  ;;  %1850 = vmatpush.msrb.mxu1 %v1732_v29  ;;  %v1748_v29 = vld [vmem:[%s6430_s22 + $0x148] sm:$0xff] }
 0x607   :  { %3918 = vmatpush.xpose.msk.msra.mxu3 %vm160_vm3, %v1491_v37  ;;  %v1375_v49 = vadd.f32 %v4202_v13, %v1374_v38 }
 0x608   :  { %1851 = vmatpush.msrb.mxu1 %v1730_v32 }
 0x609   :  { %v1383_v52 = vadd.f32 %v4217_v51, %v1375_v49  ;;  %v1711_v49 = vld [vmem:[%s6430_s22 + $0x20] sm:$0xff]  ;;  %v1710_v51 = vld [vmem:[%s6430_s22 + $0x18] sm:$0xff] }
 0x60a   :  { %1852 = vmatpush.msrb.mxu1 %v1728_v34 }
 0x60b   :  { %3919 = vmatpush.xpose.msk.msra.mxu3 %vm160_vm3, %v1490_v40  ;;  %v1725_v40 = vld [vmem:[%s6430_s22 + $0x90] sm:$0xff] }
 0x60c   :  { %1793 = vmatpush.msrb.mxu0 %v1725_v40  ;;  %1853 = vmatpush.msrb.mxu1 %v1726_v41  ;;  %v5378_v40 = vld [vmem:[%s6465_s6 + $0x20] sm:$0xff]  ;;  %v1740_v41 = vld [vmem:[%s6430_s22 + $0x108] sm:$0xff] }
 0x60e   :  { %v1377_v43 = vpop.f32.mrf.mxu1 }
 0x60f   :  { %3920 = vmatpush.xpose.msk.msra.mxu3 %vm160_vm3, %v1489_v42  ;;  %v1378_v46 = vadd.f32 %v4202_v13, %v1377_v43  ;;  %v1723_v42 = vld [vmem:[%s6430_s22 + $0x80] sm:$0xff]  ;;  %v1724_v43 = vld [vmem:[%s6430_s22 + $0x88] sm:$0xff] }
 0x610   :  { %1794 = vmatpush.msrb.mxu0 %v1723_v42  ;;  %1854 = vmatpush.msrb.mxu1 %v1724_v43  ;;  %v5387_v42 = vld [vmem:[%s6465_s6 + $0x18] sm:$0xff] }
 0x611   :  { %v1384_v50 = vadd.f32 %v4216_v4, %v1378_v46  ;;  %v1715_v46 = vld [vmem:[%s6430_s22 + $0x40] sm:$0xff]  ;;  %v1712_v4 = vld [vmem:[%s6430_s22 + $0x28] sm:$0xff] }
 0x612   :  { %1795 = vmatpush.msrb.mxu0 %v1721_v14 }
 0x613   :  { %3921 = vmatpush.xpose.msk.msra.mxu3 %vm160_vm3, %v1488_v44  ;;  %v1722_v44 = vld [vmem:[%s6430_s22 + $0x78] sm:$0xff] }
 0x614   :  { %1855 = vmatpush.msrb.mxu1 %v1722_v44  ;;  %v4218_v44 = vld [vmem:[%s6477_s29] sm:$0xff] }
 0x616   :  { %v1380_v12 = vpop.f32.mrf.mxu1 }
 0x617   :  { %3922 = vmatpush.xpose.msk.msra.mxu3 %vm160_vm3, %v1487_v45  ;;  %v1381_v47 = vadd.f32 %v4202_v13, %v1380_v12  ;;  %v1719_v13 = vld [vmem:[%s6430_s22 + $0x60] sm:$0xff]  ;;  %v1720_v45 = vld [vmem:[%s6430_s22 + $0x68] sm:$0xff]  ;;  %v1717_v12 = vld [vmem:[%s6430_s22 + $0x50] sm:$0xff] }
 0x618   :  { %1796 = vmatpush.msrb.mxu0 %v1719_v13  ;;  %1856 = vmatpush.msrb.mxu1 %v1720_v45  ;;  %v4219_v13 = vld [vmem:[%s6477_s29 + $0x8] sm:$0xff]  ;;  %v4220_v45 = vld [vmem:[%s6477_s29 + $0x10] sm:$0xff] }
 0x619   :  { %v1385_v48 = vadd.f32 %v4215_v7, %v1381_v47  ;;  %v1716_v47 = vld [vmem:[%s6430_s22 + $0x48] sm:$0xff]  ;;  %v1713_v7 = vld [vmem:[%s6430_s22 + $0x30] sm:$0xff] }
 0x61a   :  { %3923 = vmatmul.msk.f32.vlgmr.msra.gmra.mxu3 %vm160_vm3, %v3688_v11  ;;  %1797 = vmatpush.msrb.mxu0 %v1717_v12  ;;  %v4221_v12 = vld [vmem:[%s6477_s29 + $0x18] sm:$0xff] }
 0x61b   :  { %3898 = vmatpush.xpose.msk.msrb.mxu2 %vm160_vm3, %v1385_v48  ;;  %1649 = vmatpush.msrb.mxu3 %v1607_v60  ;;  %v1714_v48 = vld [vmem:[%s6430_s22 + $0x38] sm:$0xff]  ;;  %v1763_v60 = vld [vmem:[%s6430_s22 + $0x1c0] sm:$0xff] }
 0x61c   :  { %1798 = vmatpush.msrb.mxu0 %v1715_v46  ;;  %v4223_v46 = vld [vmem:[%s6477_s29 + $0x28] sm:$0xff] }
 0x61d   :  { %1650 = vmatpush.msrb.mxu3 %v1606_v62  ;;  %v1770_v62 = vld [vmem:[%s6430_s22 + $0x1f8] sm:$0xff] }
 0x61e   :  { %1799 = vmatpush.msrb.mxu0 %v1713_v7  ;;  %v1963_v7 = vld [vmem:[%s6468_s13] sm:$0x7] }
 0x61f   :  { %3899 = vmatpush.xpose.msk.msrb.mxu2 %vm160_vm3, %v1384_v50  ;;  %v1709_v50 = vld [vmem:[%s6430_s22 + $0x10] sm:$0xff] }
 0x620   :  { %1800 = vmatpush.msrb.mxu0 %v1711_v49 }
 0x622   :  { %1801 = vmatpush.msrb.mxu0 %v1709_v50 }
 0x623   :  { %3900 = vmatpush.xpose.msk.msrb.mxu2 %vm160_vm3, %v1383_v52  ;;  %v1707_v52 = vld [vmem:[%s6430_s22] sm:$0xff] }
 0x624   :  { %1802 = vmatpush.msrb.mxu0 %v1707_v52 }
 0x626   :  { %3901 = vmatmul.msk.f32.vlgmr.msrb.gmra.mxu2 %vm160_vm3, %v3688_v11  ;;  %v1718_v11 = vld [vmem:[%s6430_s22 + $0x58] sm:$0xff]  ;;  %1899 = vmatpush.msra.mxu0 %v1778_v0 }
 0x627   :  { %1857 = vmatpush.msrb.mxu1 %v1718_v11  ;;  %v4222_v11 = vld [vmem:[%s6477_s29 + $0x20] sm:$0xff]  ;;  %s6478_s29 = sld [smem:[#allocation13_spill]] }
 0x629   :  { %1858 = vmatpush.msrb.mxu1 %v1716_v47  ;;  %v2005_v47 = vld [vmem:[%s6467_s12] sm:$0x7] }
 0x62b   :  { %1859 = vmatpush.msrb.mxu1 %v1714_v48 }
 0x62d   :  { %1860 = vmatpush.msrb.mxu1 %v1712_v4  ;;  %v1779_v48 = vld [vmem:[%s6478_s29] sm:$0x3]  ;;  %s6484_s29 = smov 96  }
 0x62e   :  { %v1782_v52 = vperm.slane %v1779_v48, 1 }
 0x62f   :  { %1861 = vmatpush.msrb.mxu1 %v1710_v51  ;;  %v1781_v51 = vperm.slane %v1779_v48, 0  ;;  %v2071_v48 = vld [vmem:[%s6472_s25 + $0x28] sm:$0xff] }
 0x69d   :  { %v1528_v54 = vpop.f32.mrf.mxu3 }
 0x69e   :  { %3924 = vmatpush.msk.msra.mxu2 %vm169_vm2, %v1528_v54 }
 0x69f   :  { %3925 = vmatmul.msk.f32.vlgmr.msra.gmra.mxu2 %vm160_vm3, %v5067_v53 }
 0x6a0   :  { %3926 = vmatpush.msk.msrb.mxu2 %vm169_vm2, %v1528_v54 }
 0x6a7   :  { %3927 = vmatmul.msk.f32.vlgmr.msrb.gmra.mxu2 %vm160_vm3, %v5076_v55 }
 0x6a9   :  { %v1415_v56 = vpop.f32.mrf.mxu2 }
 0x6aa   :  { %1419 = vst.msk [vmem:[%s6427_s24] sm:$0x7] %vm1418_vm7, %v1415_v56  ;;  %v1767_v56 = vld [vmem:[%s6430_s22 + $0x1e0] sm:$0xff] }
 0x722   :  { %v1554_v63 = vpop.f32.mrf.mxu2 }
 0x72a   :  { %v1577_v17 = vpop.f32.mrf.mxu2 }
 0x72b   :  { %1584 = vrot.lane.b32.xlu0 %v1577_v17, %s6449_s14  ;;  %v1764_v17 = vld [vmem:[%s6430_s22 + $0x1c8] sm:$0xff] }
 0x733   :  { %1580 = vrot.lane.b32.xlu0 %v1528_v54, %s6448_s4  ;;  %v1769_v54 = vld [vmem:[%s6430_s22 + $0x1f0] sm:$0xff] }
 0x79d   :  { %v1585_v23 = vpop.permute.xlu0 %1584 }
 0x79e   :  { %3928 = vmatmul.msk.f32.vlgmr.msrb.gmra.mxu3 %vm1612_vm8, %v1585_v23 }
 0x7a5   :  { %v1581_v18 = vpop.permute.xlu0 %1580 }
 0x7a6   :  { %v1587_v15 = vsel %vm272_vm5, %v1554_v63, %v1581_v18  ;;  %v1776_v63 = vld [vmem:[%s6430_s22 + $0x228] sm:$0xff]  ;;  %v1758_v18 = vld [vmem:[%s6430_s22 + $0x198] sm:$0xff] }
 0x7a7   :  { %v1589_v24 = vsel %vm1588_vm9, %v1587_v15, %v1585_v23  ;;  %1900 = vmatpush.msra.mxu0 %v1776_v63  ;;  %v1751_v23 = vld [vmem:[%s6430_s22 + $0x160] sm:$0xff]  ;;  %v1749_v15 = vld [vmem:[%s6430_s22 + $0x150] sm:$0xff] }
 0x7a8   :  { %1631 = vmatmul.f32.vlgmr.msra.gmra.mxu1 %v1589_v24  ;;  %v1756_v24 = vld [vmem:[%s6430_s22 + $0x188] sm:$0xff] }
 0x7a9   :  { %1901 = vmatpush.msra.mxu0 %v1774_v5 }
 0x7ab   :  { %1902 = vmatpush.msra.mxu0 %v1772_v19  ;;  %v4205_v19 = vld [vmem:[%s6469_s1] ss:$0 sm:$0xff] }
 0x821   :  { %v1652_v38 = vpop.f32.mrf.mxu3 }
 0x825   :  { %v1632_v36 = vpop.f32.mrf.mxu1 }
 0x826   :  { %v1633_v37 = vadd.f32 %v4203_v35, %v1632_v36  ;;  %v1739_v35 = vld [vmem:[%s6430_s22 + $0x100] sm:$0xff]  ;;  %v1746_v36 = vld [vmem:[%s6430_s22 + $0x138] sm:$0xff] }
 0x828   :  { %v1653_v39 = vadd.f32 %v1652_v38, %v1633_v37  ;;  %v1744_v37 = vld [vmem:[%s6430_s22 + $0x128] sm:$0xff] }
 0x829   :  { %v5368_v38 = vld [vmem:[%s6465_s6 + $0x28] sm:$0x1] }
 0x82a   :  { %1698 = vrot.lane.b32.xlu1 %v1653_v39, %s6476_s0  ;;  %3929 = vmatpush.msk.msra.mxu2 %vm169_vm2, %v1653_v39  ;;  %s6482_s0 = sld [smem:[#allocation8_spill]] }
 0x82b   :  { %3931 = vmatpush.msk.msra.mxu3 %vm169_vm2, %v1653_v39  ;;  %3930 = vmatmul.msk.f32.vlgmr.msra.gmra.mxu2 %vm160_vm3, %v5067_v53  ;;  %v1708_v53 = vld [vmem:[%s6430_s22 + $0x8] sm:$0xff]  ;;  %v1742_v39 = vld [vmem:[%s6430_s22 + $0x118] sm:$0xff] }
 0x82c   :  { %3932 = vmatmul.msk.f32.vlgmr.msra.gmra.mxu3 %vm160_vm3, %v5076_v55  ;;  %1862 = vmatpush.msrb.mxu1 %v1708_v53  ;;  %v1777_v55 = vld [vmem:[%s6430_s22 + $0x230] sm:$0xff] }
 0x82d   :  { %1807 = vmatpush.msrb.mxu2 %v1769_v54  ;;  %1839 = vmatpush.msrb.mxu3 %v1777_v55 }
 0x82e   :  { %3953 = vmatpush.msk.msra.mxu1 %vm169_vm2, %v2005_v47  ;;  %v2073_v47 = vld [vmem:[%s6474_s26 + $0x8] sm:$0xff] }
 0x82f   :  { %1808 = vmatpush.msrb.mxu2 %v1767_v56  ;;  %1840 = vmatpush.msrb.mxu3 %v1775_v57 }
 0x831   :  { %1809 = vmatpush.msrb.mxu2 %v1765_v58  ;;  %1841 = vmatpush.msrb.mxu3 %v1773_v59 }
 0x833   :  { %1810 = vmatpush.msrb.mxu2 %v1763_v60  ;;  %1842 = vmatpush.msrb.mxu3 %v1771_v61 }
 0x835   :  { %1867 = vmatpush.msra.mxu3 %v1770_v62  ;;  %1811 = vmatpush.msrb.mxu2 %v1761_v3 }
 0x837   :  { %1868 = vmatpush.msra.mxu3 %v1768_v6  ;;  %1812 = vmatpush.msrb.mxu2 %v1759_v2 }
 0x839   :  { %1869 = vmatpush.msra.mxu3 %v1766_v1  ;;  %1813 = vmatpush.msrb.mxu2 %v1757_v9 }
 0x83b   :  { %1870 = vmatpush.msra.mxu3 %v1764_v17  ;;  %1814 = vmatpush.msrb.mxu2 %v1755_v8 }
 0x83d   :  { %1871 = vmatpush.msra.mxu3 %v1762_v10  ;;  %1815 = vmatpush.msrb.mxu2 %v1753_v21 }
 0x83f   :  { %1872 = vmatpush.msra.mxu3 %v1760_v22  ;;  %1816 = vmatpush.msrb.mxu2 %v1751_v23 }
 0x841   :  { %1873 = vmatpush.msra.mxu3 %v1758_v18  ;;  %1817 = vmatpush.msrb.mxu2 %v1749_v15 }
 0x843   :  { %1874 = vmatpush.msra.mxu3 %v1756_v24  ;;  %1818 = vmatpush.msrb.mxu2 %v1747_v20  ;;  %v5476_v24 = vld [vmem:[%s6482_s0 + $0x38] sm:$0xff] }
 0x845   :  { %1875 = vmatpush.msra.mxu3 %v1754_v25  ;;  %1819 = vmatpush.msrb.mxu2 %v1745_v27  ;;  %v5482_v25 = vld [vmem:[%s6482_s0 + $0x30] sm:$0xff]  ;;  %v5488_v27 = vld [vmem:[%s6482_s0 + $0x28] sm:$0xff] }
 0x847   :  { %1876 = vmatpush.msra.mxu3 %v1752_v31  ;;  %1820 = vmatpush.msrb.mxu2 %v1743_v16  ;;  %v5494_v31 = vld [vmem:[%s6482_s0 + $0x20] sm:$0xff] }
 0x848   :  { %v2187_v16 = vld [vmem:[%s6471_s30] sm:$0xff] }
 0x849   :  { %1877 = vmatpush.msra.mxu3 %v1750_v26  ;;  %1821 = vmatpush.msrb.mxu2 %v1741_v28  ;;  %v2066_v26 = vld [vmem:[%s6472_s25] sm:$0xff] }
 0x84b   :  { %1878 = vmatpush.msra.mxu3 %v1748_v29  ;;  %1822 = vmatpush.msrb.mxu2 %v1739_v35  ;;  %v2188_v29 = vld [vmem:[%s6471_s30 + $0x8] sm:$0xff]  ;;  %v4204_v35 = vld [vmem:[%s6473_s7] ss:$0 sm:$0xff] }
 0x84d   :  { %1879 = vmatpush.msra.mxu3 %v1746_v36  ;;  %3942 = vmatpush.msk.msra.mxu2 %vm116_vm0, %v5368_v38 }
 0x84f   :  { %1880 = vmatpush.msra.mxu3 %v1744_v37  ;;  %1942 = vmatpush.msra.mxu2 %v5378_v40 }
 0x851   :  { %1881 = vmatpush.msra.mxu3 %v1742_v39  ;;  %1943 = vmatpush.msra.mxu2 %v5387_v42 }
 0x853   :  { %1882 = vmatpush.msra.mxu3 %v1740_v41 }
 0x89c   :  { %v1699_v30 = vpop.permute.xlu1 %1698 }
 0x8ae   :  { %v1675_v32 = vpop.f32.mrf.mxu2 }
 0x8af   :  { %v1705_v33 = vsel %vm1588_vm9, %v1675_v32, %v1699_v30  ;;  %v1695_v34 = vpop.f32.mrf.mxu3 }
 0x8b0   :  { %1702 = vrot.lane.b32.xlu1 %v1695_v34, %s6451_s23  ;;  %1803 = vmatmul.f32.vlgmr.msrb.gmra.mxu0 %v1705_v33  ;;  %v2068_v34 = vld [vmem:[%s6472_s25 + $0x10] sm:$0xff]  ;;  %s6485_s23 = sld [smem:[#allocation12_spill]] }
 0x8b1   :  { %1863 = vmatmul.f32.vlgmr.msrb.gmra.mxu1 %v1705_v33  ;;  %3949 = vmatpush.msk.msrb.mxu0 %vm169_vm2, %v1963_v7  ;;  %v2189_v33 = vld [vmem:[%s6471_s30 + $0x10] sm:$0xff]  ;;  %v2192_v7 = vld [vmem:[%s6471_s30 + $0x28] sm:$0xff] }
 0x922   :  { %v1703_v43 = vpop.permute.xlu1 %1702 }
 0x923   :  { %v1706_v14 = vsel %vm472_vm6, %v1699_v30, %v1703_v43  ;;  %3933 = vmatmul.msk.f32.vlgmr.msrb.gmra.mxu3 %vm388_vm4, %v1703_v43  ;;  %3934 = vmatmul.msk.f32.vlgmr.msra.gmra.mxu0 %vm388_vm4, %v1703_v43  ;;  %v2067_v30 = vld [vmem:[%s6472_s25 + $0x8] sm:$0xff]  ;;  %v2190_v43 = vld [vmem:[%s6471_s30 + $0x18] sm:$0xff] }
 0x924   :  { %1823 = vmatmul.f32.vlgmr.msrb.gmra.mxu2 %v1706_v14 }
 0x925   :  { %2223 = vmatpush.msrb.mxu2 %v5476_v24 }
 0x927   :  { %2224 = vmatpush.msrb.mxu2 %v5482_v25 }
 0x929   :  { %2225 = vmatpush.msrb.mxu2 %v5488_v27 }
 0x92b   :  { %1883 = vmatmul.f32.vlgmr.msra.gmra.mxu3 %v1706_v14  ;;  %3950 = vmatmul.msk.f32.vlgmr.msrb.gmra.mxu0 %vm160_vm3, %v5387_v42  ;;  %v2069_v14 = vld [vmem:[%s6472_s25 + $0x18] sm:$0xff] }
 0x92c   :  { %3943 = vmatmul.msk.f32.vlgmr.msra.gmra.mxu2 %vm97_vm1, %v4218_v44 }
 0x92d   :  { %v1804_v50 = vpop.f32.mrf.mxu0  ;;  %2226 = vmatpush.msrb.mxu2 %v5494_v31 }
 0x92e   :  { %v1864_v53 = vpop.f32.mrf.mxu1  ;;  %v1805_v54 = vadd.f32 %v1804_v50, %v1781_v51  ;;  %v2269_v50 = vld [vmem:[%s6417_s18 + $0x28] sm:$0xff]  ;;  %v2268_v51 = vld [vmem:[%s6417_s18 + $0x20] sm:$0xff] }
 0x92f   :  { %v1865_v55 = vadd.f32 %v1864_v53, %v1782_v52  ;;  %v2074_v52 = vld [vmem:[%s6474_s26 + $0x10] sm:$0xff]  ;;  %v2075_v53 = vld [vmem:[%s6474_s26 + $0x18] sm:$0xff] }
 0x933   :  { %3951 = vmatmul.msk.f32.gmra.mxu0 %vm160_vm3, %v5378_v40 }
 0x934   :  { %3944 = vmatmul.msk.f32.gmra.mxu2 %vm97_vm1, %v4219_v13 }
 0x93b   :  { %3952 = vmatmul.msk.f32.gmra.mxu0 %vm160_vm3, %v5368_v38 }
 0x93c   :  { %3945 = vmatmul.msk.f32.gmra.mxu2 %vm97_vm1, %v4220_v45 }
 0x944   :  { %3946 = vmatmul.msk.f32.gmra.mxu2 %vm97_vm1, %v4221_v12  ;;  %v2072_v12 = vld [vmem:[%s6474_s26] sm:$0xff] }
 0x94c   :  { %3947 = vmatmul.msk.f32.gmra.mxu2 %vm97_vm1, %v4222_v11  ;;  %v2191_v11 = vld [vmem:[%s6471_s30 + $0x20] sm:$0xff] }
 0x954   :  { %3948 = vmatmul.msk.f32.gmra.mxu2 %vm97_vm1, %v4223_v46  ;;  %v2070_v46 = vld [vmem:[%s6472_s25 + $0x20] sm:$0xff] }
 0x95c   :  { %3973 = vmatmul.msk.f32.vlgmr.msrb.gmra.mxu2 %vm388_vm4, %v2187_v16 }
 0x964   :  { %3974 = vmatmul.msk.f32.gmra.mxu2 %vm388_vm4, %v2188_v29 }
 0x96c   :  { %3975 = vmatmul.msk.f32.gmra.mxu2 %vm388_vm4, %v2189_v33 }
 0x974   :  { %3976 = vmatmul.msk.f32.gmra.mxu2 %vm388_vm4, %v2190_v43 }
 0x97c   :  { %3977 = vmatmul.msk.f32.gmra.mxu2 %vm388_vm4, %v2191_v11  ;;  %v2256_v11 = vld [vmem:[%s6419_s15 + $0x20] sm:$0xff] }
 0x984   :  { %3978 = vmatmul.msk.f32.gmra.mxu2 %vm388_vm4, %v2192_v7 }
 0x9a0   :  { %v1904_v60 = vpop.f32.mrf.mxu0 }
 0x9a6   :  { %v1844_v49 = vpop.f32.mrf.mxu3 }
 0x9a7   :  { %v1824_v4 = vpop.f32.mrf.mxu2 }
 0x9a8   :  { %v1825_v57 = vadd.f32 %v1824_v4, %v1805_v54  ;;  %v1996_v17 = vpop.f32.mrf.mxu0  ;;  %v2270_v4 = vld [vmem:[%s6417_s18 + $0x30] sm:$0xff]  ;;  %v2076_v54 = vld [vmem:[%s6474_s26 + $0x20] sm:$0xff] }
 0x9a9   :  { %v1997_v18 = vadd.f32 %v4205_v19, %v1996_v17 }
 0x9aa   :  { %v1845_v62 = vadd.f32 %v1844_v49, %v1825_v57  ;;  %v2271_v49 = vld [vmem:[%s6417_s18 + $0x38] sm:$0xff]  ;;  %v2266_v57 = vld [vmem:[%s6417_s18 + $0x10] sm:$0xff] }
 0x9ab   :  { %2302 = vmatpush.msrb.mxu1 %v2271_v49 }
 0x9ad   :  { %2303 = vmatpush.msrb.mxu1 %v2270_v4 }
 0x9ae   :  { %v1884_v56 = vpop.f32.mrf.mxu3 }
 0x9af   :  { %v1885_v58 = vadd.f32 %v1884_v56, %v1865_v55  ;;  %v5432_v59 = vpop.f32.mrf.mxu2  ;;  %2304 = vmatpush.msrb.mxu1 %v2269_v50  ;;  %v2077_v55 = vld [vmem:[%s6474_s26 + $0x28] sm:$0xff]  ;;  %v2267_v56 = vld [vmem:[%s6417_s18 + $0x18] sm:$0xff] }
 0x9b0   :  { %3954 = vmatmul.msk.f32.vlgmr.msra.gmra.mxu1 %vm160_vm3, %v5432_v59  ;;  %v1999_v8 = vpop.f32.mrf.mxu0  ;;  %v2257_v50 = vld [vmem:[%s6419_s15 + $0x28] sm:$0xff] }
 0x9b1   :  { %v1905_v61 = vadd.f32 %v1904_v60, %v1885_v58  ;;  %v2000_v22 = vadd.f32 %v4205_v19, %v1999_v8  ;;  %2305 = vmatpush.msrb.mxu1 %v2268_v51  ;;  %v2265_v58 = vld [vmem:[%s6417_s18 + $0x8] sm:$0xff]  ;;  %v2264_v60 = vld [vmem:[%s6417_s18] sm:$0xff] }
 0x9b3   :  { %v1909_v3 = vrot.slane %v1905_v61, 4  ;;  %2306 = vmatpush.msrb.mxu1 %v2267_v56 }
 0x9b5   :  { %v1911_v2 = vsel %vm1910_vm11, %v1845_v62, %v1909_v3  ;;  %2307 = vmatpush.msrb.mxu1 %v2266_v57 }
 0x9b6   :  { %1915 = vst.msk [vmem:[%s6481_s5] sm:$0x77] %vm5439_vm12, %v1911_v2  ;;  %s6486_s5 = smov 64  }
 0x9b7   :  { %v5449_v0 = vpop.f32.mrf.mxu2  ;;  %2308 = vmatpush.msrb.mxu1 %v2265_v58 }
 0x9b8   :  { %3955 = vmatmul.msk.f32.gmra.mxu1 %vm160_vm3, %v5449_v0  ;;  %v2002_v21 = vpop.f32.mrf.mxu0 }
 0x9b9   :  { %v2003_v23 = vadd.f32 %v4205_v19, %v2002_v21  ;;  %2309 = vmatpush.msrb.mxu1 %v2264_v60  ;;  %v2252_v19 = vld [vmem:[%s6419_s15] sm:$0xff] }
 0x9bb   :  { %3966 = vmatpush.msk.msra.mxu0 %vm116_vm0, %v2003_v23  ;;  %2587 = vmatpush.msra.mxu1 %v5476_v24 }
 0x9bd   :  { %2166 = vmatpush.msra.mxu0 %v2000_v22  ;;  %2588 = vmatpush.msra.mxu1 %v5482_v25 }
 0x9bf   :  { %v5453_v1 = vpop.f32.mrf.mxu2  ;;  %2167 = vmatpush.msra.mxu0 %v1997_v18  ;;  %2589 = vmatpush.msra.mxu1 %v5488_v27 }
 0x9c0   :  { %3956 = vmatmul.msk.f32.gmra.mxu1 %vm160_vm3, %v5453_v1  ;;  %3967 = vmatmul.msk.f32.vlgmr.msra.gmra.mxu0 %vm97_vm1, %v2066_v26 }
 0x9c1   :  { %2590 = vmatpush.msra.mxu1 %v5494_v31 }
 0x9c7   :  { %v5457_v63 = vpop.f32.mrf.mxu2 }
 0x9c8   :  { %3957 = vmatmul.msk.f32.gmra.mxu1 %vm160_vm3, %v5457_v63  ;;  %3968 = vmatmul.msk.f32.gmra.mxu0 %vm97_vm1, %v2067_v30 }
 0x9cf   :  { %v5461_v9 = vpop.f32.mrf.mxu2 }
 0x9d0   :  { %3958 = vmatmul.msk.f32.gmra.mxu1 %vm160_vm3, %v5461_v9  ;;  %3969 = vmatmul.msk.f32.gmra.mxu0 %vm97_vm1, %v2068_v34 }
 0x9d7   :  { %v5465_v5 = vpop.f32.mrf.mxu2 }
 0x9d8   :  { %3959 = vmatmul.msk.f32.gmra.mxu1 %vm160_vm3, %v5465_v5  ;;  %3970 = vmatmul.msk.f32.gmra.mxu0 %vm97_vm1, %v2069_v14 }
 0x9df   :  { %v2228_v62 = vpop.f32.mrf.mxu2 }
 0x9e0   :  { %3971 = vmatmul.msk.f32.gmra.mxu0 %vm97_vm1, %v2070_v46 }
 0x9e7   :  { %v2231_v17 = vpop.f32.mrf.mxu2 }
 0x9e8   :  { %3972 = vmatmul.msk.f32.gmra.mxu0 %vm97_vm1, %v2071_v48 }
 0xa2d   :  { %v2048_v10 = vpop.f32.mrf.mxu1 }
 0xa2e   :  { %v2049_v45 = vadd.f32 %v4204_v35, %v2048_v10 }
 0xa35   :  { %v2051_v15 = vpop.f32.mrf.mxu1 }
 0xa36   :  { %v2052_v13 = vadd.f32 %v4204_v35, %v2051_v15  ;;  %v2253_v15 = vld [vmem:[%s6419_s15 + $0x8] sm:$0xff] }
 0xa3d   :  { %v2054_v20 = vpop.f32.mrf.mxu1  ;;  %v2169_v61 = vpop.f32.mrf.mxu0 }
 0xa3e   :  { %v2055_v44 = vadd.f32 %v4204_v35, %v2054_v20  ;;  %v2234_v20 = vpop.f32.mrf.mxu2 }
 0xa45   :  { %v2057_v28 = vpop.f32.mrf.mxu1  ;;  %v2172_v3 = vpop.f32.mrf.mxu0 }
 0xa46   :  { %v2058_v41 = vadd.f32 %v4204_v35, %v2057_v28  ;;  %v3991_v28 = vld [vmem:[%s6467_s12 + $0x4] sm:$0x7] }
 0xa47   :  { %3993 = vmatpush.msk.msrb.mxu0 %vm169_vm2, %v3991_v28 }
 0xa4d   :  { %v2060_v32 = vpop.f32.mrf.mxu1  ;;  %v2175_v23 = vpop.f32.mrf.mxu0 }
 0xa4e   :  { %v2061_v39 = vadd.f32 %v4204_v35, %v2060_v32  ;;  %v2254_v32 = vld [vmem:[%s6419_s15 + $0x10] sm:$0xff] }
 0xa55   :  { %v2063_v36 = vpop.f32.mrf.mxu1  ;;  %v2178_v33 = vpop.f32.mrf.mxu0 }
 0xa56   :  { %v2064_v37 = vadd.f32 %v4204_v35, %v2063_v36  ;;  %v2237_v35 = vpop.f32.mrf.mxu2 }
 0xa58   :  { %2106 = vmatpush.msrb.mxu3 %v2064_v37 }
 0xa5a   :  { %2107 = vmatpush.msrb.mxu3 %v2061_v39 }
 0xa5c   :  { %2108 = vmatpush.msrb.mxu3 %v2058_v41  ;;  %v2255_v41 = vld [vmem:[%s6419_s15 + $0x18] sm:$0xff] }
 0xa5d   :  { %v2181_v14 = vpop.f32.mrf.mxu0 }
 0xa5e   :  { %2109 = vmatpush.msrb.mxu3 %v2055_v44 }
 0xa60   :  { %2110 = vmatpush.msrb.mxu3 %v2052_v13  ;;  %v2240_v13 = vpop.f32.mrf.mxu2 }
 0xa62   :  { %2111 = vmatpush.msrb.mxu3 %v2049_v45 }
 0xa63   :  { %3960 = vmatmul.msk.f32.vlgmr.msrb.gmra.mxu3 %vm272_vm5, %v2072_v12 }
 0xa65   :  { %v2184_v7 = vpop.f32.mrf.mxu0 }
 0xa68   :  { %v2243_v49 = vpop.f32.mrf.mxu2 }
 0xa6b   :  { %3961 = vmatmul.msk.f32.gmra.mxu3 %vm272_vm5, %v2073_v47 }
 0xa73   :  { %3962 = vmatmul.msk.f32.gmra.mxu3 %vm272_vm5, %v2074_v52 }
 0xa7b   :  { %3963 = vmatmul.msk.f32.gmra.mxu3 %vm272_vm5, %v2075_v53  ;;  %v3985_v53 = vld [vmem:[%s6468_s13 + $0x4] sm:$0x7] }
 0xa7c   :  { %3987 = vmatpush.msk.msra.mxu3 %vm169_vm2, %v3985_v53  ;;  %v4047_v53 = vld [vmem:[%s6417_s18 + $0x60] sm:$0xff] }
 0xa83   :  { %3964 = vmatmul.msk.f32.gmra.mxu3 %vm272_vm5, %v2076_v54  ;;  %v4206_v54 = vld [vmem:[%s6418_s19] ss:$0 sm:$0xff] }
 0xa8b   :  { %3965 = vmatmul.msk.f32.gmra.mxu3 %vm272_vm5, %v2077_v55 }
 0xa93   :  { %3988 = vmatmul.msk.f32.vlgmr.msra.gmra.mxu3 %vm160_vm3, %v5387_v42 }
 0xa9b   :  { %3989 = vmatmul.msk.f32.gmra.mxu3 %vm160_vm3, %v5378_v40 }
 0xaa3   :  { %3990 = vmatmul.msk.f32.gmra.mxu3 %vm160_vm3, %v5368_v38 }
 0xae6   :  { %v2113_v2 = vpop.f32.mrf.mxu3 }
 0xae7   :  { %v2170_v8 = vadd.f32 %v2169_v61, %v2113_v2 }
 0xae9   :  { %v2246_v10 = vadd.f32 %v2228_v62, %v2170_v8 }
 0xaeb   :  { %v2258_v21 = vadd.f32 %v2252_v19, %v2246_v10 }
 0xaed   :  { %3979 = vmatmul.msk.f32.vlgmr.msrb.gmra.mxu1 %vm472_vm6, %v2258_v21 }
 0xaee   :  { %v2116_v22 = vpop.f32.mrf.mxu3 }
 0xaef   :  { %v2173_v18 = vadd.f32 %v2172_v3, %v2116_v22 }
 0xaf1   :  { %v2247_v16 = vadd.f32 %v2231_v17, %v2173_v18  ;;  %v4208_v18 = vld [vmem:[%s6469_s1 + $0x1] ss:$0 sm:$0xff] }
 0xaf3   :  { %v2259_v26 = vadd.f32 %v2253_v15, %v2247_v16 }
 0xaf5   :  { %3980 = vmatmul.msk.f32.gmra.mxu1 %vm472_vm6, %v2259_v26 }
 0xaf6   :  { %v2119_v29 = vpop.f32.mrf.mxu3 }
 0xaf7   :  { %v2176_v30 = vadd.f32 %v2175_v23, %v2119_v29  ;;  %v4000_v29 = vld [vmem:[%s6472_s25 + $0x30] sm:$0xff] }
 0xaf9   :  { %v2248_v34 = vadd.f32 %v2234_v20, %v2176_v30 }
 0xafb   :  { %v2260_v36 = vadd.f32 %v2254_v32, %v2248_v34  ;;  %v4001_v32 = vld [vmem:[%s6472_s25 + $0x38] sm:$0xff] }
 0xafd   :  { %3981 = vmatmul.msk.f32.gmra.mxu1 %vm472_vm6, %v2260_v36  ;;  %v4026_v36 = vld [vmem:[%s6471_s30 + $0x38] sm:$0xff] }
 0xafe   :  { %v2122_v37 = vpop.f32.mrf.mxu3 }
 0xaff   :  { %v2179_v39 = vadd.f32 %v2178_v33, %v2122_v37  ;;  %v4025_v33 = vld [vmem:[%s6471_s30 + $0x30] sm:$0xff]  ;;  %v4207_v37 = vld [vmem:[%s6473_s7 + $0x1] ss:$0 sm:$0xff] }
 0xb01   :  { %v2249_v43 = vadd.f32 %v2237_v35, %v2179_v39  ;;  %v4002_v35 = vld [vmem:[%s6472_s25 + $0x40] sm:$0xff] }
 0xb03   :  { %v2261_v44 = vadd.f32 %v2255_v41, %v2249_v43 }
 0xb05   :  { %3982 = vmatmul.msk.f32.gmra.mxu1 %vm472_vm6, %v2261_v44  ;;  %v4003_v44 = vld [vmem:[%s6472_s25 + $0x48] sm:$0xff] }
 0xb06   :  { %v2125_v45 = vpop.f32.mrf.mxu3 }
 0xb07   :  { %v2182_v12 = vadd.f32 %v2181_v14, %v2125_v45 }
 0xb09   :  { %v2250_v46 = vadd.f32 %v2240_v13, %v2182_v12  ;;  %v4027_v13 = vld [vmem:[%s6471_s30 + $0x40] sm:$0xff] }
 0xb0b   :  { %v2262_v47 = vadd.f32 %v2256_v11, %v2250_v46  ;;  %v4006_v46 = vld [vmem:[%s6474_s26 + $0x30] sm:$0xff] }
 0xb0d   :  { %3983 = vmatmul.msk.f32.gmra.mxu1 %vm472_vm6, %v2262_v47  ;;  %v4004_v47 = vld [vmem:[%s6472_s25 + $0x50] sm:$0xff] }
 0xb0e   :  { %v2128_v48 = vpop.f32.mrf.mxu3 }
 0xb0f   :  { %v2185_v4 = vadd.f32 %v2184_v7, %v2128_v48  ;;  %v4028_v7 = vld [vmem:[%s6471_s30 + $0x48] sm:$0xff]  ;;  %v4007_v48 = vld [vmem:[%s6474_s26 + $0x38] sm:$0xff] }
 0xb11   :  { %v2251_v51 = vadd.f32 %v2243_v49, %v2185_v4  ;;  %v4005_v49 = vld [vmem:[%s6472_s25 + $0x58] sm:$0xff]  ;;  %v4029_v4 = vld [vmem:[%s6471_s30 + $0x50] sm:$0xff] }
 0xb13   :  { %v2263_v52 = vadd.f32 %v2257_v50, %v2251_v51  ;;  %v4050_v50 = vld [vmem:[%s6417_s18 + $0x78] sm:$0xff]  ;;  %v4049_v51 = vld [vmem:[%s6417_s18 + $0x70] sm:$0xff] }
 0xb14   :  { %2666 = vmatpush.msra.mxu0 %v4050_v50 }
 0xb15   :  { %3984 = vmatmul.msk.f32.gmra.mxu1 %vm472_vm6, %v2263_v52  ;;  %v4048_v52 = vld [vmem:[%s6417_s18 + $0x68] sm:$0xff] }
 0xb16   :  { %2667 = vmatpush.msra.mxu0 %v4049_v51 }
 0xb18   :  { %2668 = vmatpush.msra.mxu0 %v4048_v52 }
 0xb1a   :  { %2669 = vmatpush.msra.mxu0 %v4047_v53  ;;  %v4042_v53 = vld [vmem:[%s6419_s15 + $0x58] sm:$0xff] }
 0xb1d   :  { %4031 = vmatmul.msk.f32.vlgmr.msra.gmra.mxu1 %vm388_vm4, %v4025_v33 }
 0xb25   :  { %4032 = vmatmul.msk.f32.gmra.mxu1 %vm388_vm4, %v4026_v36 }
 0xb2d   :  { %4033 = vmatmul.msk.f32.gmra.mxu1 %vm388_vm4, %v4027_v13 }
 0xb35   :  { %4034 = vmatmul.msk.f32.gmra.mxu1 %vm388_vm4, %v4028_v7  ;;  %v4041_v7 = vld [vmem:[%s6419_s15 + $0x50] sm:$0xff] }
 0xb3d   :  { %4035 = vmatmul.msk.f32.gmra.mxu1 %vm388_vm4, %v4029_v4 }
 0xb6a   :  { %v2311_v55 = vpop.f32.mrf.mxu1 }
 0xb6b   :  { %v2312_v56 = vadd.f32 %v4206_v54, %v2311_v55  ;;  %v4030_v55 = vld [vmem:[%s6471_s30 + $0x58] sm:$0xff] }
 0xb6c   :  { %4036 = vmatmul.msk.f32.gmra.mxu1 %vm388_vm4, %v4030_v55 }
 0xb6d   :  { %v5642_v57 = vadd.f32 %v2312_v56, %v5432_v59  ;;  %v4009_v56 = vld [vmem:[%s6474_s26 + $0x48] sm:$0xff] }
 0xb6f   :  { %3994 = vmatmul.msk.f32.vlgmr.msrb.gmra.mxu0 %vm160_vm3, %v5642_v57 }
 0xb72   :  { %v2314_v58 = vpop.f32.mrf.mxu1 }
 0xb73   :  { %v2315_v60 = vadd.f32 %v4206_v54, %v2314_v58  ;;  %v4010_v58 = vld [vmem:[%s6474_s26 + $0x50] sm:$0xff] }
 0xb75   :  { %v5647_v61 = vadd.f32 %v2315_v60, %v5449_v0  ;;  %v4011_v60 = vld [vmem:[%s6474_s26 + $0x58] sm:$0xff] }
 0xb77   :  { %3995 = vmatmul.msk.f32.gmra.mxu0 %vm160_vm3, %v5647_v61 }
 0xb7a   :  { %v2317_v62 = vpop.f32.mrf.mxu1 }
 0xb7b   :  { %v2318_v3 = vadd.f32 %v4206_v54, %v2317_v62  ;;  %v4046_v62 = vld [vmem:[%s6417_s18 + $0x58] sm:$0xff] }
 0xb7c   :  { %2670 = vmatpush.msra.mxu0 %v4046_v62 }
 0xb7d   :  { %v5652_v2 = vadd.f32 %v2318_v3, %v5453_v1  ;;  %v4045_v3 = vld [vmem:[%s6417_s18 + $0x50] sm:$0xff] }
 0xb7e   :  { %2671 = vmatpush.msra.mxu0 %v4045_v3 }
 0xb7f   :  { %3996 = vmatmul.msk.f32.gmra.mxu0 %vm160_vm3, %v5652_v2 }
 0xb82   :  { %v2320_v59 = vpop.f32.mrf.mxu1 }
 0xb83   :  { %v2321_v17 = vadd.f32 %v4206_v54, %v2320_v59  ;;  %v4044_v59 = vld [vmem:[%s6417_s18 + $0x48] sm:$0xff] }
 0xb84   :  { %2672 = vmatpush.msra.mxu0 %v4044_v59 }
 0xb85   :  { %v5657_v8 = vadd.f32 %v2321_v17, %v5457_v63  ;;  %v2360_v63 = vpop.f32.mrf.mxu3  ;;  %v4043_v17 = vld [vmem:[%s6417_s18 + $0x40] sm:$0xff] }
 0xb86   :  { %v2361_v16 = vadd.f32 %v4208_v18, %v2360_v63  ;;  %2673 = vmatpush.msra.mxu0 %v4043_v17 }
 0xb87   :  { %3997 = vmatmul.msk.f32.gmra.mxu0 %vm160_vm3, %v5657_v8 }
 0xb88   :  { %2951 = vmatpush.msrb.mxu0 %v5476_v24 }
 0xb8a   :  { %v2323_v0 = vpop.f32.mrf.mxu1  ;;  %2952 = vmatpush.msrb.mxu0 %v5482_v25 }
 0xb8b   :  { %v2324_v19 = vadd.f32 %v4206_v54, %v2323_v0 }
 0xb8c   :  { %2953 = vmatpush.msrb.mxu0 %v5488_v27 }
 0xb8d   :  { %v5662_v10 = vadd.f32 %v2324_v19, %v5461_v9  ;;  %v2363_v23 = vpop.f32.mrf.mxu3 }
 0xb8e   :  { %v2364_v9 = vadd.f32 %v4208_v18, %v2363_v23  ;;  %2954 = vmatpush.msrb.mxu0 %v5494_v31 }
 0xb8f   :  { %3998 = vmatmul.msk.f32.gmra.mxu0 %vm160_vm3, %v5662_v10 }
 0xb92   :  { %v2326_v1 = vpop.f32.mrf.mxu1 }
 0xb93   :  { %v2327_v21 = vadd.f32 %v4206_v54, %v2326_v1  ;;  %v4008_v54 = vld [vmem:[%s6474_s26 + $0x40] sm:$0xff] }
 0xb95   :  { %v5667_v22 = vadd.f32 %v2327_v21, %v5465_v5  ;;  %v2366_v15 = vpop.f32.mrf.mxu3 }
 0xb96   :  { %v2367_v20 = vadd.f32 %v4208_v18, %v2366_v15  ;;  %v4037_v18 = vld [vmem:[%s6419_s15 + $0x30] sm:$0xff] }
 0xb97   :  { %3999 = vmatmul.msk.f32.gmra.mxu0 %vm160_vm3, %v5667_v22 }
 0xb98   :  { %4018 = vmatpush.msk.msra.mxu2 %vm116_vm0, %v2367_v20 }
 0xb9a   :  { %2530 = vmatpush.msra.mxu2 %v2364_v9  ;;  %v2592_v19 = vpop.f32.mrf.mxu1 }
 0xb9c   :  { %2531 = vmatpush.msra.mxu2 %v2361_v16 }
 0xb9d   :  { %4019 = vmatmul.msk.f32.vlgmr.msra.gmra.mxu2 %vm97_vm1, %v4000_v29 }
 0xba2   :  { %v2595_v63 = vpop.f32.mrf.mxu1 }
 0xba5   :  { %4020 = vmatmul.msk.f32.gmra.mxu2 %vm97_vm1, %v4001_v32  ;;  %v4064_v32 = vld [vmem:[%s6467_s12 + $0x8] sm:$0x7] }
 0xba6   :  { %4066 = vmatpush.msk.msrb.mxu2 %vm169_vm2, %v4064_v32 }
 0xbad   :  { %4021 = vmatmul.msk.f32.gmra.mxu2 %vm97_vm1, %v4002_v35  ;;  %v4039_v35 = vld [vmem:[%s6419_s15 + $0x40] sm:$0xff] }
 0xbb5   :  { %4022 = vmatmul.msk.f32.gmra.mxu2 %vm97_vm1, %v4003_v44  ;;  %v4040_v44 = vld [vmem:[%s6419_s15 + $0x48] sm:$0xff] }
 0xbbd   :  { %4023 = vmatmul.msk.f32.gmra.mxu2 %vm97_vm1, %v4004_v47 }
 0xbc5   :  { %4024 = vmatmul.msk.f32.gmra.mxu2 %vm97_vm1, %v4005_v49 }
 0xbec   :  { %v2412_v26 = vpop.f32.mrf.mxu0 }
 0xbed   :  { %v2413_v11 = vadd.f32 %v4207_v37, %v2412_v26 }
 0xbf4   :  { %v2415_v5 = vpop.f32.mrf.mxu0 }
 0xbf5   :  { %v2416_v12 = vadd.f32 %v4207_v37, %v2415_v5  ;;  %v4038_v5 = vld [vmem:[%s6419_s15 + $0x38] sm:$0xff] }
 0xbfc   :  { %v2418_v28 = vpop.f32.mrf.mxu0 }
 0xbfd   :  { %v2419_v45 = vadd.f32 %v4207_v37, %v2418_v28  ;;  %v2598_v28 = vpop.f32.mrf.mxu1 }
 0xc04   :  { %v2421_v30 = vpop.f32.mrf.mxu0 }
 0xc05   :  { %v2422_v14 = vadd.f32 %v4207_v37, %v2421_v30 }
 0xc0c   :  { %v2424_v34 = vpop.f32.mrf.mxu0 }
 0xc0d   :  { %v2425_v43 = vadd.f32 %v4207_v37, %v2424_v34 }
 0xc14   :  { %v2427_v39 = vpop.f32.mrf.mxu0 }
 0xc15   :  { %v2428_v41 = vadd.f32 %v4207_v37, %v2427_v39  ;;  %v2601_v39 = vpop.f32.mrf.mxu1 }
 0xc17   :  { %2470 = vmatpush.msrb.mxu3 %v2428_v41 }
 0xc19   :  { %2471 = vmatpush.msrb.mxu3 %v2425_v43 }
 0xc1b   :  { %2472 = vmatpush.msrb.mxu3 %v2422_v14 }
 0xc1d   :  { %2473 = vmatpush.msrb.mxu3 %v2419_v45 }
 0xc1f   :  { %2474 = vmatpush.msrb.mxu3 %v2416_v12 }
 0xc20   :  { %v2533_v0 = vpop.f32.mrf.mxu2 }
 0xc21   :  { %2475 = vmatpush.msrb.mxu3 %v2413_v11  ;;  %v2604_v11 = vpop.f32.mrf.mxu1 }
 0xc22   :  { %4012 = vmatmul.msk.f32.vlgmr.msrb.gmra.mxu3 %vm272_vm5, %v4006_v46 }
 0xc28   :  { %v2536_v1 = vpop.f32.mrf.mxu2 }
 0xc29   :  { %v2607_v51 = vpop.f32.mrf.mxu1 }
 0xc2a   :  { %4013 = vmatmul.msk.f32.gmra.mxu3 %vm272_vm5, %v4007_v48 }
 0xc30   :  { %v2539_v16 = vpop.f32.mrf.mxu2 }
 0xc32   :  { %4014 = vmatmul.msk.f32.gmra.mxu3 %vm272_vm5, %v4008_v54 }
 0xc38   :  { %v2542_v36 = vpop.f32.mrf.mxu2 }
 0xc3a   :  { %4015 = vmatmul.msk.f32.gmra.mxu3 %vm272_vm5, %v4009_v56  ;;  %v4058_v56 = vld [vmem:[%s6468_s13 + $0x8] sm:$0x7] }
 0xc3b   :  { %4060 = vmatpush.msk.msra.mxu3 %vm169_vm2, %v4058_v56  ;;  %v4160_v56 = vld [vmem:[%s6417_s18 + $0xa8] sm:$0xff] }
 0xc40   :  { %v2545_v45 = vpop.f32.mrf.mxu2 }
 0xc42   :  { %4016 = vmatmul.msk.f32.gmra.mxu3 %vm272_vm5, %v4010_v58  ;;  %v4209_v58 = vld [vmem:[%s6418_s19 + $0x1] ss:$0 sm:$0xff] }
 0xc48   :  { %v2548_v4 = vpop.f32.mrf.mxu2 }
 0xc4a   :  { %4017 = vmatmul.msk.f32.gmra.mxu3 %vm272_vm5, %v4011_v60 }
 0xc52   :  { %4061 = vmatmul.msk.f32.vlgmr.msra.gmra.mxu3 %vm160_vm3, %v5387_v42 }
 0xc5a   :  { %4062 = vmatmul.msk.f32.gmra.mxu3 %vm160_vm3, %v5378_v40 }
 0xc62   :  { %4063 = vmatmul.msk.f32.gmra.mxu3 %vm160_vm3, %v5368_v38 }
 0xca5   :  { %v2477_v21 = vpop.f32.mrf.mxu3 }
 0xca6   :  { %v2534_v23 = vadd.f32 %v2533_v0, %v2477_v21 }
 0xca8   :  { %v2610_v15 = vadd.f32 %v2592_v19, %v2534_v23 }
 0xcaa   :  { %v2622_v9 = vadd.f32 %v4037_v18, %v2610_v15 }
 0xcac   :  { %4052 = vmatmul.msk.f32.vlgmr.msra.gmra.mxu0 %vm472_vm6, %v2622_v9  ;;  %v4211_v9 = vld [vmem:[%s6469_s1 + $0x2] ss:$0 sm:$0xff]  ;;  %s6487_s1 = sld [smem:[#allocation13_spill]] }
 0xcad   :  { %v2480_v20 = vpop.f32.mrf.mxu3 }
 0xcae   :  { %v2537_v26 = vadd.f32 %v2536_v1, %v2480_v20 }
 0xcb0   :  { %v2611_v29 = vadd.f32 %v2595_v63, %v2537_v26 }
 0xcb2   :  { %v2623_v30 = vadd.f32 %v4038_v5, %v2611_v29 }
 0xcb4   :  { %4053 = vmatmul.msk.f32.gmra.mxu0 %vm472_vm6, %v2623_v30  ;;  %v4074_v30 = vld [vmem:[%s6472_s25 + $0x68] sm:$0xff] }
 0xcb5   :  { %v2483_v33 = vpop.f32.mrf.mxu3 }
 0xcb6   :  { %v2540_v34 = vadd.f32 %v2539_v16, %v2483_v33  ;;  %v4076_v33 = vld [vmem:[%s6472_s25 + $0x78] sm:$0xff] }
 0xcb8   :  { %v2612_v37 = vadd.f32 %v2598_v28, %v2540_v34  ;;  %v4073_v28 = vld [vmem:[%s6472_s25 + $0x60] sm:$0xff]  ;;  %v4100_v34 = vld [vmem:[%s6471_s30 + $0x70] sm:$0xff] }
 0xcba   :  { %v2624_v41 = vadd.f32 %v4039_v35, %v2612_v37  ;;  %v4210_v35 = vld [vmem:[%s6473_s7 + $0x2] ss:$0 sm:$0xff] }
 0xcbc   :  { %4054 = vmatmul.msk.f32.gmra.mxu0 %vm472_vm6, %v2624_v41 }
 0xcbd   :  { %v2486_v43 = vpop.f32.mrf.mxu3 }
 0xcbe   :  { %v2543_v14 = vadd.f32 %v2542_v36, %v2486_v43  ;;  %v4077_v43 = vld [vmem:[%s6472_s25 + $0x80] sm:$0xff] }
 0xcc0   :  { %v2613_v13 = vadd.f32 %v2601_v39, %v2543_v14  ;;  %v4101_v14 = vld [vmem:[%s6471_s30 + $0x78] sm:$0xff] }
 0xcc2   :  { %v2625_v12 = vadd.f32 %v4040_v44, %v2613_v13 }
 0xcc4   :  { %4055 = vmatmul.msk.f32.gmra.mxu0 %vm472_vm6, %v2625_v12  ;;  %v4079_v12 = vld [vmem:[%s6474_s26 + $0x60] sm:$0xff] }
 0xcc5   :  { %v2489_v46 = vpop.f32.mrf.mxu3 }
 0xcc6   :  { %v2546_v47 = vadd.f32 %v2545_v45, %v2489_v46  ;;  %v4102_v46 = vld [vmem:[%s6471_s30 + $0x80] sm:$0xff] }
 0xcc8   :  { %v2614_v48 = vadd.f32 %v2604_v11, %v2546_v47  ;;  %v4078_v11 = vld [vmem:[%s6472_s25 + $0x88] sm:$0xff] }
 0xcc9   :  { %v4080_v47 = vld [vmem:[%s6474_s26 + $0x68] sm:$0xff] }
 0xcca   :  { %v2626_v49 = vadd.f32 %v4041_v7, %v2614_v48  ;;  %v4103_v7 = vld [vmem:[%s6471_s30 + $0x88] sm:$0xff]  ;;  %v4119_v48 = vld [vmem:[%s6420_s9 + $0x30] sm:$0xff] }
 0xccc   :  { %4056 = vmatmul.msk.f32.gmra.mxu0 %vm472_vm6, %v2626_v49  ;;  %v4081_v49 = vld [vmem:[%s6474_s26 + $0x70] sm:$0xff] }
 0xccd   :  { %v2492_v50 = vpop.f32.mrf.mxu3 }
 0xcce   :  { %v2549_v52 = vadd.f32 %v2548_v4, %v2492_v50  ;;  %v4129_v4 = vld [vmem:[%s6421_s10 + $0x30] sm:$0xff]  ;;  %v4120_v50 = vld [vmem:[%s6420_s9 + $0x38] sm:$0xff] }
 0xcd0   :  { %v2615_v54 = vadd.f32 %v2607_v51, %v2549_v52  ;;  %v4082_v51 = vld [vmem:[%s6474_s26 + $0x78] sm:$0xff] }
 0xcd1   :  { %v4162_v52 = vld [vmem:[%s6417_s18 + $0xb8] sm:$0xff] }
 0xcd2   :  { %v2627_v55 = vadd.f32 %v4042_v53, %v2615_v54  ;;  %v4130_v53 = vld [vmem:[%s6421_s10 + $0x38] sm:$0xff]  ;;  %v4161_v54 = vld [vmem:[%s6417_s18 + $0xb0] sm:$0xff] }
 0xcd4   :  { %4057 = vmatmul.msk.f32.gmra.mxu0 %vm472_vm6, %v2627_v55  ;;  %v4121_v55 = vld [vmem:[%s6420_s9 + $0x40] sm:$0x1] }
 0xd29   :  { %v2675_v60 = vpop.f32.mrf.mxu0 }
 0xd2a   :  { %v2676_v62 = vadd.f32 %v4209_v58, %v2675_v60  ;;  %v4083_v60 = vld [vmem:[%s6474_s26 + $0x80] sm:$0xff] }
 0xd2c   :  { %v5820_v3 = vadd.f32 %v2676_v62, %v5642_v57  ;;  %v4084_v62 = vld [vmem:[%s6474_s26 + $0x88] sm:$0xff] }
 0xd2e   :  { %4067 = vmatmul.msk.f32.vlgmr.msrb.gmra.mxu2 %vm160_vm3, %v5820_v3 }
 0xd31   :  { %v2678_v59 = vpop.f32.mrf.mxu0 }
 0xd32   :  { %v2679_v42 = vadd.f32 %v4209_v58, %v2678_v59  ;;  %v4116_v59 = vld [vmem:[%s6422_s8 + $0x30] sm:$0xff] }
 0xd34   :  { %v5825_v17 = vadd.f32 %v2679_v42, %v5647_v61  ;;  %v4117_v42 = vld [vmem:[%s6422_s8 + $0x38] sm:$0xff] }
 0xd36   :  { %4068 = vmatmul.msk.f32.gmra.mxu2 %vm160_vm3, %v5825_v17 }
 0xd39   :  { %v2681_v38 = vpop.f32.mrf.mxu0 }
 0xd3a   :  { %v2682_v40 = vadd.f32 %v4209_v58, %v2681_v38  ;;  %v4118_v38 = vld [vmem:[%s6422_s8 + $0x40] sm:$0x1] }
 0xd3c   :  { %v5830_v0 = vadd.f32 %v2682_v40, %v5652_v2  ;;  %v4131_v40 = vld [vmem:[%s6421_s10 + $0x40] sm:$0x1] }
 0xd3e   :  { %4069 = vmatmul.msk.f32.gmra.mxu2 %vm160_vm3, %v5830_v0 }
 0xd41   :  { %v2684_v57 = vpop.f32.mrf.mxu0 }
 0xd42   :  { %v2685_v19 = vadd.f32 %v4209_v58, %v2684_v57  ;;  %v4158_v57 = vld [vmem:[%s6417_s18 + $0x98] sm:$0xff] }
 0xd44   :  { %v5835_v1 = vadd.f32 %v2685_v19, %v5657_v8  ;;  %v2724_v8 = vpop.f32.mrf.mxu3  ;;  %v4157_v19 = vld [vmem:[%s6417_s18 + $0x90] sm:$0xff] }
 0xd45   :  { %v2725_v16 = vadd.f32 %v4211_v9, %v2724_v8 }
 0xd46   :  { %4070 = vmatmul.msk.f32.gmra.mxu2 %vm160_vm3, %v5835_v1 }
 0xd49   :  { %v2687_v61 = vpop.f32.mrf.mxu0 }
 0xd4a   :  { %v2688_v21 = vadd.f32 %v4209_v58, %v2687_v61  ;;  %v4156_v61 = vld [vmem:[%s6417_s18 + $0x88] sm:$0xff] }
 0xd4c   :  { %v5840_v63 = vadd.f32 %v2688_v21, %v5662_v10  ;;  %v2727_v15 = vpop.f32.mrf.mxu3  ;;  %v4155_v21 = vld [vmem:[%s6417_s18 + $0x80] sm:$0xff] }
 0xd4d   :  { %v2728_v26 = vadd.f32 %v4211_v9, %v2727_v15 }
 0xd4e   :  { %4071 = vmatmul.msk.f32.gmra.mxu2 %vm160_vm3, %v5840_v63 }
 0xd51   :  { %v2690_v2 = vpop.f32.mrf.mxu0 }
 0xd52   :  { %v2691_v23 = vadd.f32 %v4209_v58, %v2690_v2  ;;  %v4159_v58 = vld [vmem:[%s6417_s18 + $0xa0] sm:$0xff] }
 0xd54   :  { %v5845_v18 = vadd.f32 %v2691_v23, %v5667_v22  ;;  %v2730_v20 = vpop.f32.mrf.mxu3 }
 0xd55   :  { %v2731_v10 = vadd.f32 %v4211_v9, %v2730_v20 }
 0xd56   :  { %4072 = vmatmul.msk.f32.gmra.mxu2 %vm160_vm3, %v5845_v18 }
 0xd57   :  { %4091 = vmatpush.msk.msrb.mxu3 %vm116_vm0, %v2731_v10 }
 0xd59   :  { %2894 = vmatpush.msrb.mxu3 %v2728_v26 }
 0xd5b   :  { %2895 = vmatpush.msrb.mxu3 %v2725_v16 }
 0xd5c   :  { %4092 = vmatmul.msk.f32.vlgmr.msrb.gmra.mxu3 %vm97_vm1, %v4073_v28 }
 0xd5d   :  { %3092 = vmatpush.msra.mxu3 %v5476_v24  ;;  %v4098_v24 = vld [vmem:[%s6471_s30 + $0x60] sm:$0xff] }
 0xd5e   :  { %4104 = vmatmul.msk.f32.vlgmr.msrb.gmra.mxu0 %vm388_vm4, %v4098_v24 }
 0xd5f   :  { %3093 = vmatpush.msra.mxu3 %v5482_v25 }
 0xd61   :  { %3094 = vmatpush.msra.mxu3 %v5488_v27  ;;  %v4075_v27 = vld [vmem:[%s6472_s25 + $0x70] sm:$0xff]  ;;  %s6488_s25 = sld [smem:[#allocation14_spill]] }
 0xd63   :  { %3095 = vmatpush.msra.mxu3 %v5494_v31  ;;  %v4099_v31 = vld [vmem:[%s6471_s30 + $0x68] sm:$0xff] }
 0xd64   :  { %4093 = vmatmul.msk.f32.gmra.mxu3 %vm97_vm1, %v4074_v30 }
 0xd66   :  { %4105 = vmatmul.msk.f32.gmra.mxu0 %vm388_vm4, %v4099_v31 }
 0xd6c   :  { %4094 = vmatmul.msk.f32.gmra.mxu3 %vm97_vm1, %v4075_v27  ;;  %v4145_v27 = vld [vmem:[%s6423_s16 + $0xb8] sm:$0xff] }
 0xd6e   :  { %4106 = vmatmul.msk.f32.gmra.mxu0 %vm388_vm4, %v4100_v34  ;;  %v4143_v34 = vld [vmem:[%s6423_s16 + $0xa8] sm:$0xff] }
 0xd74   :  { %4095 = vmatmul.msk.f32.gmra.mxu3 %vm97_vm1, %v4076_v33 }
 0xd76   :  { %4107 = vmatmul.msk.f32.gmra.mxu0 %vm388_vm4, %v4101_v14  ;;  %v4141_v14 = vld [vmem:[%s6423_s16 + $0x98] sm:$0xff] }
 0xd7c   :  { %4096 = vmatmul.msk.f32.gmra.mxu3 %vm97_vm1, %v4077_v43 }
 0xd7e   :  { %4108 = vmatmul.msk.f32.gmra.mxu0 %vm388_vm4, %v4102_v46 }
 0xd84   :  { %4097 = vmatmul.msk.f32.gmra.mxu3 %vm97_vm1, %v4078_v11  ;;  %v4113_v11 = vld [vmem:[%s6419_s15 + $0x78] sm:$0xff] }
 0xd86   :  { %4109 = vmatmul.msk.f32.gmra.mxu0 %vm388_vm4, %v4103_v7 }
 0xd8c   :  { %4132 = vmatmul.msk.f32.vlgmr.msra.gmra.mxu3 %vm388_vm4, %v4129_v4 }
 0xd94   :  { %4133 = vmatmul.msk.f32.gmra.mxu3 %vm388_vm4, %v4130_v53 }
 0xd9c   :  { %4134 = vmatmul.msk.f32.gmra.mxu3 %vm388_vm4, %v4131_v40 }
 0xdb1   :  { %v2776_v22 = vpop.f32.mrf.mxu2 }
 0xdb2   :  { %v2777_v45 = vadd.f32 %v4210_v35, %v2776_v22 }
 0xdb9   :  { %v2779_v5 = vpop.f32.mrf.mxu2 }
 0xdba   :  { %v2780_v13 = vadd.f32 %v4210_v35, %v2779_v5 }
 0xdc1   :  { %v2782_v29 = vpop.f32.mrf.mxu2 }
 0xdc2   :  { %v2783_v44 = vadd.f32 %v4210_v35, %v2782_v29  ;;  %v4111_v29 = vld [vmem:[%s6419_s15 + $0x68] sm:$0xff] }
 0xdc9   :  { %v2785_v25 = vpop.f32.mrf.mxu2 }
 0xdca   :  { %v2786_v41 = vadd.f32 %v4210_v35, %v2785_v25 }
 0xdd1   :  { %v2788_v32 = vpop.f32.mrf.mxu2 }
 0xdd2   :  { %v2789_v39 = vadd.f32 %v4210_v35, %v2788_v32  ;;  %v4144_v32 = vld [vmem:[%s6423_s16 + $0xb0] sm:$0xff] }
 0xdd9   :  { %v2791_v36 = vpop.f32.mrf.mxu2 }
 0xdda   :  { %v2792_v37 = vadd.f32 %v4210_v35, %v2791_v36  ;;  %v4112_v35 = vld [vmem:[%s6419_s15 + $0x70] sm:$0xff] }
 0xddb   :  { %v2956_v23 = vpop.f32.mrf.mxu0 }
 0xddc   :  { %2834 = vmatpush.msrb.mxu1 %v2792_v37  ;;  %3017 = vmatpush.msra.mxu2 %v2792_v37 }
 0xdde   :  { %2835 = vmatpush.msrb.mxu1 %v2789_v39  ;;  %3018 = vmatpush.msra.mxu2 %v2789_v39  ;;  %v4142_v39 = vld [vmem:[%s6423_s16 + $0xa0] sm:$0xff] }
 0xddf   :  { %v2897_v2 = vpop.f32.mrf.mxu3 }
 0xde0   :  { %2836 = vmatpush.msrb.mxu1 %v2786_v41  ;;  %3019 = vmatpush.msra.mxu2 %v2786_v41 }
 0xde2   :  { %2837 = vmatpush.msrb.mxu1 %v2783_v44  ;;  %3020 = vmatpush.msra.mxu2 %v2783_v44 }
 0xde3   :  { %v2959_v9 = vpop.f32.mrf.mxu0 }
 0xde4   :  { %2838 = vmatpush.msrb.mxu1 %v2780_v13  ;;  %3021 = vmatpush.msra.mxu2 %v2780_v13  ;;  %v4140_v13 = vld [vmem:[%s6423_s16 + $0x90] sm:$0xff] }
 0xde6   :  { %2839 = vmatpush.msrb.mxu1 %v2777_v45  ;;  %3022 = vmatpush.msra.mxu2 %v2777_v45 }
 0xde7   :  { %4085 = vmatmul.msk.f32.vlgmr.msrb.gmra.mxu1 %vm272_vm5, %v4079_v12  ;;  %4122 = vmatmul.msk.f32.vlgmr.msra.gmra.mxu2 %vm272_vm5, %v4119_v48  ;;  %v2900_v8 = vpop.f32.mrf.mxu3  ;;  %v4139_v12 = vld [vmem:[%s6423_s16 + $0x88] sm:$0xff] }
 0xde8   :  { %4125 = vmatpush.msk.msra.mxu1 %vm116_vm0, %v2731_v10  ;;  %v4110_v10 = vld [vmem:[%s6419_s15 + $0x60] sm:$0xff]  ;;  %3144 = vmatpush.msrb.mxu2 %v4145_v27 }
 0xdea   :  { %3056 = vmatpush.msra.mxu1 %v2728_v26  ;;  %3145 = vmatpush.msrb.mxu2 %v4144_v32 }
 0xdeb   :  { %v2962_v30 = vpop.f32.mrf.mxu0 }
 0xdec   :  { %3057 = vmatpush.msra.mxu1 %v2725_v16  ;;  %3146 = vmatpush.msrb.mxu2 %v4143_v34 }
 0xdee   :  { %3234 = vmatpush.msrb.mxu1 %v4162_v52  ;;  %3147 = vmatpush.msrb.mxu2 %v4142_v39 }
 0xdef   :  { %4086 = vmatmul.msk.f32.gmra.mxu1 %vm272_vm5, %v4080_v47  ;;  %4123 = vmatmul.msk.f32.gmra.mxu2 %vm272_vm5, %v4120_v50  ;;  %v2903_v5 = vpop.f32.mrf.mxu3  ;;  %v4138_v47 = vld [vmem:[%s6423_s16 + $0x80] sm:$0xff] }
 0xdf0   :  { %3235 = vmatpush.msrb.mxu1 %v4161_v54  ;;  %3148 = vmatpush.msrb.mxu2 %v4141_v14 }
 0xdf2   :  { %3236 = vmatpush.msrb.mxu1 %v4160_v56  ;;  %3149 = vmatpush.msrb.mxu2 %v4140_v13 }
 0xdf3   :  { %v2965_v41 = vpop.f32.mrf.mxu0 }
 0xdf4   :  { %3237 = vmatpush.msrb.mxu1 %v4159_v58  ;;  %3150 = vmatpush.msrb.mxu2 %v4139_v12 }
 0xdf6   :  { %3238 = vmatpush.msrb.mxu1 %v4158_v57  ;;  %3151 = vmatpush.msrb.mxu2 %v4138_v47 }
 0xdf7   :  { %4087 = vmatmul.msk.f32.gmra.mxu1 %vm272_vm5, %v4081_v49  ;;  %4124 = vmatmul.msk.f32.gmra.mxu2 %vm272_vm5, %v4121_v55  ;;  %v2906_v36 = vpop.f32.mrf.mxu3 }
 0xdf8   :  { %3239 = vmatpush.msrb.mxu1 %v4157_v19  ;;  %v4135_v19 = vld [vmem:[%s6424_s11 + $0x30] sm:$0xff] }
 0xdfa   :  { %3240 = vmatpush.msrb.mxu1 %v4156_v61 }
 0xdfb   :  { %v2968_v49 = vpop.f32.mrf.mxu0 }
 0xdfc   :  { %3241 = vmatpush.msrb.mxu1 %v4155_v21 }
 0xdff   :  { %4088 = vmatmul.msk.f32.gmra.mxu1 %vm272_vm5, %v4082_v51  ;;  %v2909_v7 = vpop.f32.mrf.mxu3  ;;  %v4114_v51 = vld [vmem:[%s6419_s15 + $0x80] sm:$0xff] }
 0xe03   :  { %v2971_v56 = vpop.f32.mrf.mxu0 }
 0xe07   :  { %4089 = vmatmul.msk.f32.gmra.mxu1 %vm272_vm5, %v4083_v60  ;;  %v2912_v54 = vpop.f32.mrf.mxu3  ;;  %v4115_v60 = vld [vmem:[%s6419_s15 + $0x88] sm:$0xff] }
 0xe0f   :  { %4090 = vmatmul.msk.f32.gmra.mxu1 %vm272_vm5, %v4084_v62 }
 0xe17   :  { %4126 = vmatmul.msk.f32.vlgmr.msra.gmra.mxu1 %vm97_vm1, %v4116_v59 }
 0xe1f   :  { %4127 = vmatmul.msk.f32.gmra.mxu1 %vm97_vm1, %v4117_v42 }
 0xe27   :  { %4128 = vmatmul.msk.f32.gmra.mxu1 %vm97_vm1, %v4118_v38  ;;  %v3097_v38 = vpop.f32.mrf.mxu3 }
 0xe64   :  { %v2841_v15 = vpop.f32.mrf.mxu1 }
 0xe65   :  { %v2898_v20 = vadd.f32 %v2897_v2, %v2841_v15 }
 0xe67   :  { %v2974_v16 = vadd.f32 %v2956_v23, %v2898_v20 }
 0xe69   :  { %v2986_v26 = vadd.f32 %v4110_v10, %v2974_v16 }
 0xe6a   :  { %v3024_v59 = vpop.f32.mrf.mxu2 }
 0xe6b   :  { %4164 = vmatmul.msk.f32.vlgmr.msrb.gmra.mxu1 %vm472_vm6, %v2986_v26 }
 0xe6c   :  { %v2844_v22 = vpop.f32.mrf.mxu1 }
 0xe6d   :  { %v2901_v28 = vadd.f32 %v2900_v8, %v2844_v22  ;;  %v3100_v8 = vpop.f32.mrf.mxu3 }
 0xe6f   :  { %v2975_v24 = vadd.f32 %v2959_v9, %v2901_v28  ;;  %v4136_v9 = vld [vmem:[%s6424_s11 + $0x38] sm:$0xff]  ;;  %v4137_v28 = vld [vmem:[%s6424_s11 + $0x40] sm:$0x1] }
 0xe71   :  { %v2987_v25 = vadd.f32 %v4111_v29, %v2975_v24 }
 0xe72   :  { %v3027_v2 = vpop.f32.mrf.mxu2 }
 0xe73   :  { %4165 = vmatmul.msk.f32.gmra.mxu1 %vm472_vm6, %v2987_v25 }
 0xe74   :  { %v2847_v31 = vpop.f32.mrf.mxu1 }
 0xe75   :  { %v2904_v33 = vadd.f32 %v2903_v5, %v2847_v31  ;;  %v3103_v5 = vpop.f32.mrf.mxu3 }
 0xe77   :  { %v2976_v37 = vadd.f32 %v2962_v30, %v2904_v33  ;;  %v4212_v33 = vld [vmem:[%s6418_s19 + $0x2] ss:$0 sm:$0xff] }
 0xe79   :  { %v2988_v43 = vadd.f32 %v4112_v35, %v2976_v37 }
 0xe7a   :  { %v3030_v26 = vpop.f32.mrf.mxu2 }
 0xe7b   :  { %4166 = vmatmul.msk.f32.gmra.mxu1 %vm472_vm6, %v2988_v43 }
 0xe7c   :  { %v2850_v44 = vpop.f32.mrf.mxu1 }
 0xe7d   :  { %v2907_v45 = vadd.f32 %v2906_v36, %v2850_v44 }
 0xe7f   :  { %v2977_v46 = vadd.f32 %v2965_v41, %v2907_v45 }
 0xe81   :  { %v2989_v48 = vadd.f32 %v4113_v11, %v2977_v46 }
 0xe83   :  { %4167 = vmatmul.msk.f32.gmra.mxu1 %vm472_vm6, %v2989_v48 }
 0xe84   :  { %v2853_v4 = vpop.f32.mrf.mxu1 }
 0xe85   :  { %v2910_v50 = vadd.f32 %v2909_v7, %v2853_v4 }
 0xe87   :  { %v2978_v52 = vadd.f32 %v2968_v49, %v2910_v50  ;;  %v4226_v49 = vld [vmem:[%s6465_s6 + $0x20] sm:$0xff]  ;;  %v4227_v50 = vld [vmem:[%s6465_s6 + $0x18] sm:$0xff] }
 0xe89   :  { %v2990_v53 = vadd.f32 %v4114_v51, %v2978_v52 }
 0xe8b   :  { %4168 = vmatmul.msk.f32.gmra.mxu1 %vm472_vm6, %v2990_v53  ;;  %v6093_v53 = vld [vmem:[%s6426_s3] sm:$0x7] }
 0xe8c   :  { %v2856_v55 = vpop.f32.mrf.mxu1 }
 0xe8d   :  { %v2913_v58 = vadd.f32 %v2912_v54, %v2856_v55  ;;  %v6101_v54 = vld [vmem:[%s6426_s3 + $0x8] sm:$0x7] }
 0xe8f   :  { %v2979_v62 = vadd.f32 %v2971_v56, %v2913_v58  ;;  %v3372_v56 = vld [vmem:[%s6428_s20 + $0x78] sm:$0xff]  ;;  %v3371_v58 = vld [vmem:[%s6428_s20 + $0x70] sm:$0xff] }
 0xe90   :  { %3381 = vmatpush.msra.mxu2 %v3372_v56  ;;  %v3533_v56 = vld [vmem:[%s6430_s22 + $0x1e0] sm:$0xff] }
 0xe91   :  { %v2991_v42 = vadd.f32 %v4115_v60, %v2979_v62  ;;  %v3370_v60 = vld [vmem:[%s6428_s20 + $0x68] sm:$0xff]  ;;  %v3369_v62 = vld [vmem:[%s6428_s20 + $0x60] sm:$0xff] }
 0xe92   :  { %3382 = vmatpush.msra.mxu2 %v3371_v58  ;;  %v3541_v58 = vld [vmem:[%s6430_s22 + $0x220] sm:$0xff] }
 0xe93   :  { %4169 = vmatmul.msk.f32.gmra.mxu1 %vm472_vm6, %v2991_v42  ;;  %v3367_v42 = vld [vmem:[%s6428_s20 + $0x50] sm:$0xff] }
 0xe94   :  { %v3059_v40 = vpop.f32.mrf.mxu1  ;;  %3383 = vmatpush.msra.mxu2 %v3370_v60  ;;  %v3531_v60 = vld [vmem:[%s6430_s22 + $0x1d0] sm:$0xff] }
 0xe95   :  { %v3060_v57 = vadd.f32 %v3059_v40, %v3024_v59  ;;  %v3368_v59 = vld [vmem:[%s6428_s20 + $0x58] sm:$0xff]  ;;  %v3365_v40 = vld [vmem:[%s6428_s20 + $0x40] sm:$0xff] }
 0xe96   :  { %3384 = vmatpush.msra.mxu2 %v3369_v62  ;;  %v3539_v62 = vld [vmem:[%s6430_s22 + $0x210] sm:$0xff] }
 0xe97   :  { %v3106_v61 = vadd.f32 %v3097_v38, %v3060_v57  ;;  %v3366_v38 = vld [vmem:[%s6428_s20 + $0x48] sm:$0xff]  ;;  %v3364_v57 = vld [vmem:[%s6428_s20 + $0x38] sm:$0xff] }
 0xe98   :  { %3385 = vmatpush.msra.mxu2 %v3368_v59  ;;  %v3529_v59 = vld [vmem:[%s6430_s22 + $0x1c0] sm:$0xff] }
 0xe99   :  { %v3112_v21 = vadd.f32 %v4135_v19, %v3106_v61  ;;  %v3363_v19 = vld [vmem:[%s6428_s20 + $0x30] sm:$0xff]  ;;  %v3362_v61 = vld [vmem:[%s6428_s20 + $0x28] sm:$0xff] }
 0xe9a   :  { %3386 = vmatpush.msra.mxu2 %v3367_v42  ;;  %v3537_v42 = vld [vmem:[%s6430_s22 + $0x200] sm:$0xff] }
 0xe9b   :  { %4147 = vmatmul.msk.f32.vlgmr.msrb.gmra.mxu2 %vm472_vm6, %v3112_v21  ;;  %v3361_v21 = vld [vmem:[%s6428_s20 + $0x20] sm:$0xff] }
 0xe9c   :  { %v3062_v23 = vpop.f32.mrf.mxu1  ;;  %3387 = vmatpush.msra.mxu2 %v3366_v38  ;;  %v3536_v38 = vld [vmem:[%s6430_s22 + $0x1f8] sm:$0xff] }
 0xe9d   :  { %v3063_v15 = vadd.f32 %v3062_v23, %v3027_v2  ;;  %v3360_v2 = vld [vmem:[%s6428_s20 + $0x18] sm:$0xff] }
 0xe9e   :  { %3388 = vmatpush.msra.mxu2 %v3365_v40  ;;  %v3527_v40 = vld [vmem:[%s6430_s22 + $0x1b0] sm:$0xff] }
 0xe9f   :  { %v3107_v20 = vadd.f32 %v3100_v8, %v3063_v15  ;;  %v3359_v8 = vld [vmem:[%s6428_s20 + $0x10] sm:$0xff]  ;;  %v3358_v15 = vld [vmem:[%s6428_s20 + $0x8] sm:$0xff] }
 0xea0   :  { %3389 = vmatpush.msra.mxu2 %v3364_v57  ;;  %v3534_v57 = vld [vmem:[%s6430_s22 + $0x1e8] sm:$0xff] }
 0xea1   :  { %v3113_v10 = vadd.f32 %v4136_v9, %v3107_v20  ;;  %v3374_v20 = vld [vmem:[%s6428_s20 + $0x88] sm:$0xff] }
 0xea2   :  { %3390 = vmatpush.msra.mxu2 %v3363_v19  ;;  %v3525_v19 = vld [vmem:[%s6430_s22 + $0x1a0] sm:$0xff] }
 0xea3   :  { %4148 = vmatmul.msk.f32.gmra.mxu2 %vm472_vm6, %v3113_v10  ;;  %v3373_v10 = vld [vmem:[%s6428_s20 + $0x80] sm:$0xff] }
 0xea4   :  { %v3065_v16 = vpop.f32.mrf.mxu1  ;;  %3391 = vmatpush.msra.mxu2 %v3362_v61  ;;  %v3532_v61 = vld [vmem:[%s6430_s22 + $0x1d8] sm:$0xff] }
 0xea5   :  { %v3066_v22 = vadd.f32 %v3065_v16, %v3030_v26  ;;  %v3357_v16 = vld [vmem:[%s6428_s20] sm:$0xff] }
 0xea6   :  { %3392 = vmatpush.msra.mxu2 %v3361_v21  ;;  %v3523_v21 = vld [vmem:[%s6430_s22 + $0x190] sm:$0xff] }
 0xea7   :  { %v3108_v29 = vadd.f32 %v3103_v5, %v3066_v22 }
 0xea8   :  { %3393 = vmatpush.msra.mxu2 %v3360_v2  ;;  %v3530_v2 = vld [vmem:[%s6430_s22 + $0x1c8] sm:$0xff] }
 0xea9   :  { %v3114_v30 = vadd.f32 %v4137_v28, %v3108_v29  ;;  %v3503_v29 = vld [vmem:[%s6430_s22 + $0xf0] sm:$0xff] }
 0xeaa   :  { %3394 = vmatpush.msra.mxu2 %v3359_v8  ;;  %3553 = vmatpush.msra.mxu1 %v3503_v29  ;;  %v3528_v8 = vld [vmem:[%s6430_s22 + $0x1b8] sm:$0xff] }
 0xeab   :  { %4149 = vmatmul.msk.f32.gmra.mxu2 %vm472_vm6, %v3114_v30  ;;  %v3504_v30 = vld [vmem:[%s6430_s22 + $0xf8] sm:$0xff] }
 0xeac   :  { %3395 = vmatpush.msra.mxu2 %v3358_v15  ;;  %v3519_v15 = vld [vmem:[%s6430_s22 + $0x170] sm:$0xff] }
 0xeae   :  { %3396 = vmatpush.msra.mxu2 %v3357_v16  ;;  %v3515_v16 = vld [vmem:[%s6430_s22 + $0x150] sm:$0xff] }
 0xeb0   :  { %3613 = vmatpush.msrb.mxu2 %v3504_v30 }
 0xee8   :  { %v3243_v24 = vpop.f32.mrf.mxu1 }
 0xee9   :  { %v3244_v12 = vadd.f32 %v4212_v33, %v3243_v24  ;;  %v3501_v24 = vld [vmem:[%s6430_s22 + $0xe0] sm:$0xff] }
 0xeea   :  { %3554 = vmatpush.msra.mxu1 %v3501_v24  ;;  %v3518_v24 = vld [vmem:[%s6430_s22 + $0x168] sm:$0xff] }
 0xef0   :  { %v3246_v25 = vpop.f32.mrf.mxu1 }
 0xef1   :  { %v3247_v44 = vadd.f32 %v4212_v33, %v3246_v25  ;;  %v3502_v25 = vld [vmem:[%s6430_s22 + $0xe8] sm:$0xff] }
 0xef2   :  { %3614 = vmatpush.msrb.mxu2 %v3502_v25  ;;  %v3509_v25 = vld [vmem:[%s6430_s22 + $0x120] sm:$0xff] }
 0xef8   :  { %v3249_v27 = vpop.f32.mrf.mxu1 }
 0xef9   :  { %v3250_v43 = vadd.f32 %v4212_v33, %v3249_v27  ;;  %v3499_v27 = vld [vmem:[%s6430_s22 + $0xd0] sm:$0xff] }
 0xefa   :  { %3555 = vmatpush.msra.mxu1 %v3499_v27 }
 0xefb   :  { %v3263_v13 = vadd.f32 %v3250_v43, %v5830_v0  ;;  %v4213_v0 = vld [vmem:[%s6425_s17 + $0x2] ss:$0 sm:$0xff]  ;;  %s6483_s17 = smov 48  }
 0xefc   :  { %v3489_v43 = vld [vmem:[%s6430_s22 + $0x80] sm:$0xff] }
 0xf00   :  { %v3252_v31 = vpop.f32.mrf.mxu1 }
 0xf01   :  { %v3253_v39 = vadd.f32 %v4212_v33, %v3252_v31  ;;  %v3500_v31 = vld [vmem:[%s6430_s22 + $0xd8] sm:$0xff] }
 0xf02   :  { %3615 = vmatpush.msrb.mxu2 %v3500_v31  ;;  %v3516_v31 = vld [vmem:[%s6430_s22 + $0x158] sm:$0xff] }
 0xf03   :  { %v3264_v14 = vadd.f32 %v3253_v39, %v5835_v1  ;;  %v4224_v1 = vld [vmem:[%s6426_s3 + $0x4] sm:$0x7]  ;;  %v3491_v39 = vld [vmem:[%s6430_s22 + $0x90] sm:$0xff] }
 0xf08   :  { %v3255_v32 = vpop.f32.mrf.mxu1 }
 0xf09   :  { %v3256_v36 = vadd.f32 %v4212_v33, %v3255_v32  ;;  %v3497_v32 = vld [vmem:[%s6430_s22 + $0xc0] sm:$0xff] }
 0xf0a   :  { %3556 = vmatpush.msra.mxu1 %v3497_v32  ;;  %v3507_v32 = vld [vmem:[%s6430_s22 + $0x110] sm:$0xff] }
 0xf0b   :  { %v3265_v41 = vadd.f32 %v3256_v36, %v5840_v63  ;;  %v3261_v63 = vadd.f32 %v3244_v12, %v5820_v3  ;;  %v4225_v3 = vld [vmem:[%s6465_s6 + $0x28] sm:$0x1]  ;;  %v3493_v36 = vld [vmem:[%s6430_s22 + $0xa0] sm:$0xff] }
 0xf10   :  { %v3258_v34 = vpop.f32.mrf.mxu1 }
 0xf11   :  { %v3259_v35 = vadd.f32 %v4212_v33, %v3258_v34  ;;  %v3498_v33 = vld [vmem:[%s6430_s22 + $0xc8] sm:$0xff]  ;;  %v3495_v34 = vld [vmem:[%s6430_s22 + $0xb0] sm:$0xff] }
 0xf12   :  { %3616 = vmatpush.msrb.mxu2 %v3498_v33  ;;  %3557 = vmatpush.msra.mxu1 %v3495_v34  ;;  %v3514_v33 = vld [vmem:[%s6430_s22 + $0x148] sm:$0xff] }
 0xf13   :  { %v3266_v37 = vadd.f32 %v3259_v35, %v5845_v18  ;;  %v3262_v18 = vadd.f32 %v3247_v44, %v5825_v17  ;;  %v3496_v35 = vld [vmem:[%s6430_s22 + $0xb8] sm:$0xff]  ;;  %v3487_v44 = vld [vmem:[%s6430_s22 + $0x70] sm:$0xff] }
 0xf14   :  { %3617 = vmatpush.msrb.mxu2 %v3496_v35  ;;  %3558 = vmatpush.msra.mxu1 %v3493_v36  ;;  %v3544_v35 = vld [vmem:[%s6430_s22 + $0x238] sm:$0xff]  ;;  %v3542_v36 = vld [vmem:[%s6430_s22 + $0x228] sm:$0xff] }
 0xf15   :  { %4170 = vmatpush.xpose.msk.msrb.mxu3 %vm160_vm3, %v3266_v37  ;;  %v3494_v37 = vld [vmem:[%s6430_s22 + $0xa8] sm:$0xff] }
 0xf16   :  { %3618 = vmatpush.msrb.mxu2 %v3494_v37  ;;  %3559 = vmatpush.msra.mxu1 %v3491_v39  ;;  %v3540_v37 = vld [vmem:[%s6430_s22 + $0x218] sm:$0xff]  ;;  %v3538_v39 = vld [vmem:[%s6430_s22 + $0x208] sm:$0xff] }
 0xf18   :  { %3560 = vmatpush.msra.mxu1 %v3489_v43  ;;  %v3512_v43 = vld [vmem:[%s6430_s22 + $0x138] sm:$0xff] }
 0xf19   :  { %4171 = vmatpush.xpose.msk.msrb.mxu3 %vm160_vm3, %v3265_v41  ;;  %v3492_v41 = vld [vmem:[%s6430_s22 + $0x98] sm:$0xff] }
 0xf1a   :  { %3619 = vmatpush.msrb.mxu2 %v3492_v41  ;;  %3561 = vmatpush.msra.mxu1 %v3487_v44  ;;  %v3505_v41 = vld [vmem:[%s6430_s22 + $0x100] sm:$0xff]  ;;  %v3508_v44 = vld [vmem:[%s6430_s22 + $0x118] sm:$0xff] }
 0xf1d   :  { %4172 = vmatpush.xpose.msk.msrb.mxu3 %vm160_vm3, %v3264_v14  ;;  %v3490_v14 = vld [vmem:[%s6430_s22 + $0x88] sm:$0xff] }
 0xf1e   :  { %v3153_v45 = vpop.f32.mrf.mxu2  ;;  %3620 = vmatpush.msrb.mxu2 %v3490_v14  ;;  %v3510_v14 = vld [vmem:[%s6430_s22 + $0x128] sm:$0xff] }
 0xf1f   :  { %v3154_v48 = vadd.f32 %v4213_v0, %v3153_v45  ;;  %v4214_v45 = vld [vmem:[%s6485_s23] ss:$0 sm:$0xff] }
 0xf21   :  { %4173 = vmatpush.xpose.msk.msrb.mxu3 %vm160_vm3, %v3263_v13  ;;  %v3162_v51 = vadd.f32 %v4227_v50, %v3154_v48  ;;  %v3488_v13 = vld [vmem:[%s6430_s22 + $0x78] sm:$0xff]  ;;  %v3475_v50 = vld [vmem:[%s6430_s22 + $0x10] sm:$0xff] }
 0xf22   :  { %3621 = vmatpush.msrb.mxu2 %v3488_v13  ;;  %v3480_v48 = vld [vmem:[%s6430_s22 + $0x38] sm:$0xff]  ;;  %v3506_v13 = vld [vmem:[%s6430_s22 + $0x108] sm:$0xff] }
 0xf25   :  { %4174 = vmatpush.xpose.msk.msrb.mxu3 %vm160_vm3, %v3262_v18 }
 0xf26   :  { %v3156_v11 = vpop.f32.mrf.mxu2 }
 0xf27   :  { %v3157_v47 = vadd.f32 %v4213_v0, %v3156_v11 }
 0xf29   :  { %4175 = vmatpush.xpose.msk.msrb.mxu3 %vm160_vm3, %v3261_v63  ;;  %v3163_v4 = vadd.f32 %v4226_v49, %v3157_v47  ;;  %v3484_v47 = vld [vmem:[%s6430_s22 + $0x58] sm:$0xff]  ;;  %v3477_v49 = vld [vmem:[%s6430_s22 + $0x20] sm:$0xff] }
 0xf2c   :  { %4176 = vmatmul.msk.f32.vlgmr.msrb.gmra.mxu3 %vm160_vm3, %v4224_v1 }
 0xf2d   :  { %3415 = vmatpush.msra.mxu3 %v3374_v20  ;;  %v3517_v20 = vld [vmem:[%s6430_s22 + $0x160] sm:$0xff] }
 0xf2e   :  { %v3159_v46 = vpop.f32.mrf.mxu2 }
 0xf2f   :  { %v3160_v17 = vadd.f32 %v4213_v0, %v3159_v46  ;;  %3416 = vmatpush.msra.mxu3 %v3373_v10  ;;  %v3486_v0 = vld [vmem:[%s6430_s22 + $0x68] sm:$0xff]  ;;  %v3483_v46 = vld [vmem:[%s6430_s22 + $0x50] sm:$0xff]  ;;  %v3524_v10 = vld [vmem:[%s6430_s22 + $0x198] sm:$0xff] }
 0xf30   :  { %3622 = vmatpush.msrb.mxu2 %v3486_v0 }
 0xf31   :  { %v3164_v7 = vadd.f32 %v4225_v3, %v3160_v17  ;;  %v3481_v17 = vld [vmem:[%s6430_s22 + $0x40] sm:$0xff]  ;;  %v3482_v3 = vld [vmem:[%s6430_s22 + $0x48] sm:$0xff] }
 0xf32   :  { %3623 = vmatpush.msrb.mxu2 %v3484_v47 }
 0xf33   :  { %4150 = vmatpush.xpose.msk.msra.mxu0 %vm160_vm3, %v3164_v7  ;;  %v3479_v7 = vld [vmem:[%s6430_s22 + $0x30] sm:$0xff] }
 0xf34   :  { %3624 = vmatpush.msrb.mxu2 %v3482_v3 }
 0xf36   :  { %3625 = vmatpush.msrb.mxu2 %v3480_v48 }
 0xf37   :  { %4151 = vmatpush.xpose.msk.msra.mxu0 %vm160_vm3, %v3163_v4  ;;  %v3478_v4 = vld [vmem:[%s6430_s22 + $0x28] sm:$0xff] }
 0xf38   :  { %3626 = vmatpush.msrb.mxu2 %v3478_v4 }
 0xf3b   :  { %4152 = vmatpush.xpose.msk.msra.mxu0 %vm160_vm3, %v3162_v51  ;;  %v3476_v51 = vld [vmem:[%s6430_s22 + $0x18] sm:$0xff] }
 0xf3c   :  { %3627 = vmatpush.msrb.mxu2 %v3476_v51 }
 0xf3e   :  { %4153 = vmatmul.msk.f32.vlgmr.msra.gmra.mxu0 %vm160_vm3, %v4224_v1  ;;  %v3485_v1 = vld [vmem:[%s6430_s22 + $0x60] sm:$0xff] }
 0xf3f   :  { %3562 = vmatpush.msra.mxu1 %v3485_v1 }
 0xf41   :  { %3563 = vmatpush.msra.mxu1 %v3483_v46 }
 0xf43   :  { %3564 = vmatpush.msra.mxu1 %v3481_v17 }
 0xf45   :  { %3565 = vmatpush.msra.mxu1 %v3479_v7 }
 0xf47   :  { %3566 = vmatpush.msra.mxu1 %v3477_v49 }
 0xf49   :  { %3567 = vmatpush.msra.mxu1 %v3475_v50 }
 0xfaf   :  { %v3302_v52 = vpop.f32.mrf.mxu3 }
 0xfb0   :  { %4177 = vmatpush.msk.msrb.mxu0 %vm169_vm2, %v3302_v52  ;;  %3348 = vrot.lane.b32.xlu2 %v3302_v52, %s6483_s17 }
 0xfb1   :  { %4178 = vmatmul.msk.f32.vlgmr.msrb.gmra.mxu0 %vm160_vm3, %v6093_v53 }
 0xfb2   :  { %4179 = vmatpush.msk.msra.mxu0 %vm169_vm2, %v3302_v52  ;;  %v3473_v52 = vld [vmem:[%s6430_s22] sm:$0xff] }
 0xfb3   :  { %3568 = vmatpush.msra.mxu1 %v3473_v52 }
 0xfb5   :  { %3665 = vmatpush.msrb.mxu1 %v3544_v35 }
 0xfb7   :  { %3666 = vmatpush.msrb.mxu1 %v3542_v36 }
 0xfb9   :  { %4180 = vmatmul.msk.f32.vlgmr.msra.gmra.mxu0 %vm160_vm3, %v6101_v54  ;;  %3667 = vmatpush.msrb.mxu1 %v3540_v37 }
 0xfbb   :  { %v3191_v55 = vpop.f32.mrf.mxu0  ;;  %3668 = vmatpush.msrb.mxu1 %v3538_v39 }
 0xfbc   :  { %4154 = vst.msk [vmem:[%s6427_s24 + $0x4] sm:$0x7] %vm1418_vm7, %v3191_v55  ;;  %v3543_v55 = vld [vmem:[%s6430_s22 + $0x230] sm:$0xff] }
0x100a   :  { %v3349_v26 = vpop.permute.xlu2 %3348 }
0x102e   :  { %v3325_v23 = vpop.f32.mrf.mxu0 }
0x102f   :  { %v3355_v22 = vsel %vm272_vm5, %v3325_v23, %v3349_v26  ;;  %v3521_v23 = vld [vmem:[%s6430_s22 + $0x180] sm:$0xff]  ;;  %v3522_v26 = vld [vmem:[%s6430_s22 + $0x188] sm:$0xff] }
0x1036   :  { %v3345_v9 = vpop.f32.mrf.mxu0 }
0x1037   :  { %3352 = vrot.lane.b32.xlu2 %v3345_v9, %s6484_s29  ;;  %v3526_v9 = vld [vmem:[%s6430_s22 + $0x1a8] sm:$0xff] }
0x1091   :  { %v3353_v5 = vpop.permute.xlu2 %3352 }
0x1092   :  { %v3356_v28 = vsel %vm1588_vm9, %v3355_v22, %v3353_v5  ;;  %4181 = vmatmul.msk.f32.vlgmr.msra.gmra.mxu3 %vm1612_vm8, %v3353_v5  ;;  %v3513_v22 = vld [vmem:[%s6430_s22 + $0x140] sm:$0xff]  ;;  %v3520_v5 = vld [vmem:[%s6430_s22 + $0x178] sm:$0xff] }
0x1093   :  { %3397 = vmatmul.f32.vlgmr.msra.gmra.mxu2 %v3356_v28  ;;  %v3511_v28 = vld [vmem:[%s6430_s22 + $0x130] sm:$0xff] }
0x1115   :  { %v3418_v63 = vpop.f32.mrf.mxu3 }
0x1116   :  { %v3398_v12 = vpop.f32.mrf.mxu2 }
0x1117   :  { %v3399_v18 = vadd.f32 %v4214_v45, %v3398_v12 }
0x1119   :  { %v3419_v11 = vadd.f32 %v3418_v63, %v3399_v18  ;;  %v3545_v63 = vld [vmem:[%s6487_s1] sm:$0x3] }
0x111a   :  { %v3548_v1 = vperm.slane %v3545_v63, 1  ;;  %v3547_v46 = vperm.slane %v3545_v63, 0 }
0x111b   :  { %3464 = vrot.lane.b32.xlu1 %v3419_v11, %s6484_s29  ;;  %4182 = vmatpush.msk.msrb.mxu0 %vm169_vm2, %v3419_v11 }
0x111c   :  { %4184 = vmatpush.msk.msrb.mxu3 %vm169_vm2, %v3419_v11  ;;  %4183 = vmatmul.msk.f32.vlgmr.msrb.gmra.mxu0 %vm160_vm3, %v6093_v53  ;;  %v3474_v53 = vld [vmem:[%s6430_s22 + $0x8] sm:$0xff] }
0x111d   :  { %4185 = vmatmul.msk.f32.vlgmr.msrb.gmra.mxu3 %vm160_vm3, %v6101_v54  ;;  %3628 = vmatpush.msrb.mxu2 %v3474_v53  ;;  %v3535_v54 = vld [vmem:[%s6430_s22 + $0x1f0] sm:$0xff] }
0x111e   :  { %3573 = vmatpush.msra.mxu0 %v3535_v54  ;;  %3605 = vmatpush.msra.mxu3 %v3543_v55 }
0x1120   :  { %3574 = vmatpush.msra.mxu0 %v3533_v56  ;;  %3606 = vmatpush.msra.mxu3 %v3541_v58 }
0x1122   :  { %3575 = vmatpush.msra.mxu0 %v3531_v60  ;;  %3607 = vmatpush.msra.mxu3 %v3539_v62 }
0x1124   :  { %3576 = vmatpush.msra.mxu0 %v3529_v59  ;;  %3608 = vmatpush.msra.mxu3 %v3537_v42 }
0x1126   :  { %3633 = vmatpush.msrb.mxu3 %v3536_v38  ;;  %3577 = vmatpush.msra.mxu0 %v3527_v40 }
0x1128   :  { %3634 = vmatpush.msrb.mxu3 %v3534_v57  ;;  %3578 = vmatpush.msra.mxu0 %v3525_v19 }
0x112a   :  { %3635 = vmatpush.msrb.mxu3 %v3532_v61  ;;  %3579 = vmatpush.msra.mxu0 %v3523_v21 }
0x112c   :  { %3636 = vmatpush.msrb.mxu3 %v3530_v2  ;;  %3580 = vmatpush.msra.mxu0 %v3521_v23 }
0x112e   :  { %3637 = vmatpush.msrb.mxu3 %v3528_v8  ;;  %3581 = vmatpush.msra.mxu0 %v3519_v15 }
0x1130   :  { %3638 = vmatpush.msrb.mxu3 %v3526_v9  ;;  %3582 = vmatpush.msra.mxu0 %v3517_v20 }
0x1132   :  { %3639 = vmatpush.msrb.mxu3 %v3524_v10  ;;  %3583 = vmatpush.msra.mxu0 %v3515_v16 }
0x1134   :  { %3640 = vmatpush.msrb.mxu3 %v3522_v26  ;;  %3584 = vmatpush.msra.mxu0 %v3513_v22 }
0x1136   :  { %3641 = vmatpush.msrb.mxu3 %v3520_v5  ;;  %3585 = vmatpush.msra.mxu0 %v3511_v28 }
0x1138   :  { %3642 = vmatpush.msrb.mxu3 %v3518_v24  ;;  %3586 = vmatpush.msra.mxu0 %v3509_v25 }
0x113a   :  { %3643 = vmatpush.msrb.mxu3 %v3516_v31  ;;  %3587 = vmatpush.msra.mxu0 %v3507_v32 }
0x113c   :  { %3644 = vmatpush.msrb.mxu3 %v3514_v33  ;;  %3588 = vmatpush.msra.mxu0 %v3505_v41 }
0x113e   :  { %3645 = vmatpush.msrb.mxu3 %v3512_v43 }
0x1140   :  { %3646 = vmatpush.msrb.mxu3 %v3510_v14 }
0x1142   :  { %3647 = vmatpush.msrb.mxu3 %v3508_v44 }
0x1144   :  { %3648 = vmatpush.msrb.mxu3 %v3506_v13 }
0x118d   :  { %v3465_v29 = vpop.permute.xlu1 %3464 }
0x1199   :  { %v3441_v30 = vpop.f32.mrf.mxu0 }
0x119a   :  { %v3471_v27 = vsel %vm1588_vm9, %v3441_v30, %v3465_v29 }
0x119b   :  { %3569 = vmatmul.f32.vlgmr.msra.gmra.mxu1 %v3471_v27  ;;  %3629 = vmatmul.f32.vlgmr.msrb.gmra.mxu2 %v3471_v27 }
0x11a0   :  { %v3461_v34 = vpop.f32.mrf.mxu3 }
0x11a1   :  { %3468 = vrot.lane.b32.xlu0 %v3461_v34, %s6486_s5 }
0x1213   :  { %v3469_v45 = vpop.permute.xlu0 %3468 }
0x1214   :  { %v3472_v12 = vsel %vm472_vm6, %v3465_v29, %v3469_v45  ;;  %4186 = vmatmul.msk.f32.vlgmr.msra.gmra.mxu3 %vm388_vm4, %v3469_v45  ;;  %4187 = vmatmul.msk.f32.vlgmr.msrb.gmra.mxu1 %vm388_vm4, %v3469_v45 }
0x1215   :  { %3589 = vmatmul.f32.vlgmr.msra.gmra.mxu0 %v3472_v12 }
0x1218   :  { %v3570_v11 = vpop.f32.mrf.mxu1 }
0x1219   :  { %v3571_v7 = vadd.f32 %v3570_v11, %v3547_v46 }
0x121c   :  { %3649 = vmatmul.f32.vlgmr.msrb.gmra.mxu3 %v3472_v12 }
0x121e   :  { %v3630_v0 = vpop.f32.mrf.mxu2 }
0x121f   :  { %v3631_v47 = vadd.f32 %v3630_v0, %v3548_v1 }
0x1291   :  { %v3670_v49 = vpop.f32.mrf.mxu1 }
0x1292   :  { %v3590_v17 = vpop.f32.mrf.mxu0 }
0x1293   :  { %v3591_v4 = vadd.f32 %v3590_v17, %v3571_v7 }
0x1297   :  { %v3610_v18 = vpop.f32.mrf.mxu3 }
0x1298   :  { %v3611_v51 = vadd.f32 %v3610_v18, %v3591_v4 }
0x129f   :  { %v3650_v3 = vpop.f32.mrf.mxu3 }
0x12a0   :  { %v3651_v48 = vadd.f32 %v3650_v3, %v3631_v47 }
0x12a2   :  { %v3671_v50 = vadd.f32 %v3670_v49, %v3651_v48 }
0x12a4   :  { %v3675_v52 = vrot.slane %v3671_v50, 4 }
0x12a6   :  { %v3676_v53 = vsel %vm1910_vm11, %v3611_v51, %v3675_v52 }
0x12a7   :  { %4188 = vst.msk [vmem:[%s6488_s25 + $0x8] sm:$0x77] %vm5439_vm12, %v3676_v53 }

</bundles_post_ra>
